<compile_context>
chip_gen: v6e
topology: v6e:2x2x1
jax: 0.10.0
libtpu: 0.0.40
codegen_flags: <defaults>
</compile_context>

<pallas_src>
import jax
import jax.numpy as jnp
from jax.experimental import pallas as pl
from jax.experimental.pallas import tpu as pltpu


def _residual_block_kernel(x_ref, o_ref):
    # residual = shortcut(x) = x ; x = blocks(x) = x ; x += residual ; relu
    x = x_ref[...]
    y = x + x
    o_ref[...] = jnp.maximum(y, jnp.zeros_like(y))


_MAX_LANES = 8192                   # wide lane-dense rows -> unmasked full-width vst
_TILE_BYTES = 8 * 1024 * 1024       # 8 MiB blocks: 2 arrays x 2 bufs = 32 MiB, fits v7x's 64 MiB
_SMALL_BYTES = 1 * 1024 * 1024      # below this, fused XLA beats a pallas_call launch
_MIN_GRID = 4                       # >= 2 grid steps per TensorCore on v7x
_VMEM_LIMIT = 48 * 1024 * 1024      # > v5e's 16 MiB scoped default, headroom under v7x's 64 MiB


def _sublane_multiple(dtype):
    # dtype-aware sublane packing: f32 -> 8, bf16/f16 -> 16, int8/fp8 -> 32
    itemsize = jnp.dtype(dtype).itemsize
    return max(8, 32 // itemsize)


def _tensorcores_per_chip():
    # Best-effort TC count (2 on v7x, 1 on v5e/v6e).  Defaults to 1 so the
    # tile-shrinking never fires on single-core chips if detection fails.
    try:
        info = pltpu.get_tpu_info()
        for attr in ("tensorcores_per_chip", "num_tensorcores", "num_cores",
                     "cores_per_chip"):
            v = getattr(info, attr, None)
            if isinstance(v, int) and v >= 1:
                return v
    except Exception:
        pass
    try:
        if "v7" in jax.devices()[0].device_kind.lower():
            return 2
    except Exception:
        pass
    return 1


def _pick_lanes(n):
    """Largest multiple of 128 (<= _MAX_LANES) that divides n, else None."""
    top = min(_MAX_LANES, (n // 128) * 128)
    for lanes in range(top, 0, -128):
        if n % lanes == 0:
            return lanes
    return None


def _pick_tile_rows(rows, lanes, itemsize, sub):
    # Largest row-tile (multiple of the sublane pack) within the byte budget.
    budget_rows = max(sub, (_TILE_BYTES // (lanes * itemsize)) // sub * sub)
    tile_rows = min(rows, budget_rows)
    # v7x only: give each of the 2 TensorCores at least 2 blocks so both DMA
    # engines stream concurrently.  On v5e/v6e the grid is a serial loop, so
    # shrinking tiles would only add per-step overhead.
    if _tensorcores_per_chip() >= 2 and rows > sub:
        target = ((rows + _MIN_GRID - 1) // _MIN_GRID + sub - 1) // sub * sub
        tile_rows = min(tile_rows, max(sub, target))
    return tile_rows


def _run_pallas(x2d, tile_rows):
    rows, lanes = x2d.shape
    itemsize = jnp.dtype(x2d.dtype).itemsize
    elems = rows * lanes
    # NOTE: pipeline_mode=pl.Buffered(3) on in_specs is a possible 0-3% sweep;
    # left at the default double-buffering for compile safety.
    return pl.pallas_call(
        _residual_block_kernel,
        out_shape=jax.ShapeDtypeStruct((rows, lanes), x2d.dtype),
        grid_spec=pltpu.PrefetchScalarGridSpec(
            num_scalar_prefetch=0,
            grid=(pl.cdiv(rows, tile_rows),),     # partial last block is masked
            in_specs=[pl.BlockSpec((tile_rows, lanes), lambda i: (i, 0))],
            out_specs=pl.BlockSpec((tile_rows, lanes), lambda i: (i, 0)),
        ),
        compiler_params=pltpu.CompilerParams(
            dimension_semantics=("parallel",),    # megacore sharding on v7x
            vmem_limit_bytes=_VMEM_LIMIT,
        ),
        cost_estimate=pl.CostEstimate(
            flops=2 * elems,                      # add + relu per element touched
            transcendentals=0,
            bytes_accessed=2 * elems * itemsize,  # 1 read + 1 write of the slab
        ),
    )(x2d)


def base_residual_block(x, *, activation="relu"):
    """JAX/Pallas equivalent of BaseResidualBlock.forward (Identity blocks/shortcut)."""
    assert activation == "relu", "only relu wired up (matches activation_dict['relu'])"
    orig_shape = x.shape
    dtype = x.dtype
    itemsize = jnp.dtype(dtype).itemsize
    sub = _sublane_multiple(dtype)
    n = x.size

    # --- tiny inputs: fused XLA elementwise is faster than any kernel launch ---
    if n * itemsize < _SMALL_BYTES:
        y = x + x
        return jnp.maximum(y, jnp.zeros_like(y))

    flat = x.reshape(-1)

    # --- aligned path: zero-copy reshape, no padding, no post-slice -----------
    lanes = _pick_lanes(n)
    if lanes is not None:
        rows = n // lanes
        tile_rows = _pick_tile_rows(rows, lanes, itemsize, sub)
        out2d = _run_pallas(flat.reshape(rows, lanes), tile_rows)
        return out2d.reshape(orig_shape)

    # --- ragged path (n % 128 != 0): kernel on the aligned bulk prefix, tiny
    # (< lanes) tail in plain XLA.  No full-array pad/slice round trips.
    lanes = min(_MAX_LANES, (n // 128) * 128)
    bulk = (n // lanes) * lanes
    rows = bulk // lanes
    tile_rows = _pick_tile_rows(rows, lanes, itemsize, sub)
    bulk_out = _run_pallas(flat[:bulk].reshape(rows, lanes), tile_rows).reshape(-1)
    tail = flat[bulk:]
    tail_out = jnp.maximum(tail + tail, jnp.zeros_like(tail))
    # TODO(synk): the concatenate is one residual HBM write pass; eliminating it
    # would need donated/in-place output support that pallas_call can't express
    # for a ragged tail.
    out = jnp.concatenate([bulk_out, tail_out])
    return out.reshape(orig_shape)


if __name__ == "__main__":
    key = jax.random.PRNGKey(0)
    k1, k2, k3, k4 = jax.random.split(key, 4)

    # typical module-sized NCHW input -> small-input fast path
    x1 = jax.random.normal(k1, (2, 4, 16, 16), dtype=jnp.float32)
    o1 = jax.block_until_ready(base_residual_block(x1))
    assert o1.shape == x1.shape and o1.dtype == x1.dtype
    assert jnp.allclose(o1, jnp.maximum(x1 + x1, 0.0), atol=1e-6)

    # ragged tiny shape -> small-input fast path
    x2 = jax.random.normal(k2, (3, 5, 7, 9), dtype=jnp.float32)
    o2 = jax.block_until_ready(base_residual_block(x2))
    assert o2.shape == x2.shape and jnp.allclose(o2, jnp.maximum(x2 + x2, 0.0), atol=1e-6)

    # large, 128-aligned element count -> Pallas kernel, zero-copy reshape
    x3 = jax.random.normal(k3, (2, 16, 128, 128), dtype=jnp.float32)
    o3 = jax.block_until_ready(base_residual_block(x3))
    assert o3.shape == x3.shape and jnp.allclose(o3, jnp.maximum(x3 + x3, 0.0), atol=1e-6)

    # large, ragged element count -> Pallas kernel on the bulk + XLA tail
    x4 = jax.random.normal(k4, (1048577,), dtype=jnp.float32)
    o4 = jax.block_until_ready(base_residual_block(x4))
    assert o4.shape == x4.shape and jnp.allclose(o4, jnp.maximum(x4 + x4, 0.0), atol=1e-6)

    print("KERNEL_OK")
</pallas_src>

<mosaic_0001>
module attributes {stable_mosaic.version = 11 : i64} {
  func.func @_residual_block_kernel(%arg0: i32, %arg1: memref<64x8192xf32, #tpu.memory_space<vmem>>, %arg2: memref<64x8192xf32, #tpu.memory_space<vmem>>) attributes {dimension_semantics = [#tpu.dimension_semantics<parallel>], iteration_bounds = array<i64: 1>, scalar_prefetch = 0 : i64, scratch_operands = 0 : i64, tpu.core_type = #tpu.core_type<tc>, window_params = [{transform_indices = @transform_0, window_bounds = array<i64: 64, 8192>}, {transform_indices = @transform_1, window_bounds = array<i64: 64, 8192>}]} {
    %c0 = arith.constant 0 : index
    %c0_0 = arith.constant 0 : index
    %0 = vector.load %arg1[%c0, %c0_0] : memref<64x8192xf32, #tpu.memory_space<vmem>>, vector<64x8192xf32>
    %1 = arith.addf %0, %0 : vector<64x8192xf32>
    %cst = arith.constant 0.000000e+00 : f32
    %2 = vector.broadcast %cst : f32 to vector<64x8192xf32>
    %3 = arith.maximumf %1, %2 : vector<64x8192xf32>
    %c0_1 = arith.constant 0 : index
    %c0_2 = arith.constant 0 : index
    %4 = vector.load %arg2[%c0_1, %c0_2] : memref<64x8192xf32, #tpu.memory_space<vmem>>, vector<64x8192xf32>
    tpu.vector_store %arg2[%c0_1, %c0_2], %3 {strides = array<i32>} : memref<64x8192xf32, #tpu.memory_space<vmem>>, vector<64x8192xf32>,
    return
  }
  func.func @transform_0(%arg0: i32) -> (i32, i32) {
    %c0_i32 = arith.constant 0 : i32
    %c0_i32_0 = arith.constant 0 : i32
    return %arg0, %c0_i32 : i32, i32
  }
  func.func @transform_1(%arg0: i32) -> (i32, i32) {
    %c0_i32 = arith.constant 0 : i32
    %c0_i32_0 = arith.constant 0 : i32
    return %arg0, %c0_i32 : i32, i32
  }
}

</mosaic_0001>

<bundles_post_ra>
// kernel: tpu_custom_call.1
= control target key start
LH: loop header
LB: loop body
LE: loop exit
PB: predicated region body
PF: predicated region fallthrough
CT: control target
= control target key end

     0   :  { %6 = vsyncpa [#allocation3], 0  ;;  %s2162_s0 = inlined_call_operand.hbm [shape: f32[64,8192], index: 0, kind: input, shape index: {}]   ;;  %s2163_s1 = inlined_call_operand.hbm [shape: f32[64,8192], index: 1, kind: output, shape index: {}]  }
   0x1   :  { %7 = vsyncpa [#allocation4], 0  ;;  %s2136_s6 = smov [#allocation2]  }
   0x2   :  { %s13_s7 = sshll.u32 %s2136_s6, 4  ;;  %s14_s7 = int_to_ptr.vmem [resolvable:$true] %s13_s7 }
   0x3   :  { %s2100_s8 = scalar_lea.vmem %s14_s7, 65536  ;;  %p2105_p1 = scmp.lt.s32.totalorder %s14_s7, %s14_s7 }
   0x4   :  { %p2101_p0 = scmp.ne.s32.totalorder %s14_s7, %s2100_s8  ;;  %p2106_p2 = scmp.lt.s32.totalorder %s2100_s8, %s2100_s8 }
   0x6   :  { %p2107_p3 = por %p2106_p2, %p2105_p1 }
   0x8   :  { %p2108_p4 = pnand %p2107_p3, %p2101_p0 }
   0xa   :  { %2111 = shalt.err (!%p2108_p4)
}
   0xb   :  { %s2137_s9 = smov 8192   ;;  %s2138_s10 = smov 512  }
   0xc   :  { %19 = dma.hbm_to_vmem [thread:$0]  %s2162_s0, 65536, %s14_s7, [#allocation3], %s2137_s9, %s2137_s9, %s2138_s10  }
   0xd   :  { %2132 = dma.done.wait [#allocation3], 65536  }
   0xe   :  { %2133 = vsyncadd [#allocation3], 4294901760  ;;  %v23_v0 = vld [vmem:[#allocation2] sm:$0xff]  ;;  %v24_v1 = vld [vmem:[#allocation2 + $0x8] sm:$0xff]  ;;  %s2139_s0 = smov [#allocation5]  }
   0xf   :  { %v25_v2 = vld [vmem:[#allocation2 + $0x10] sm:$0xff]  ;;  %v535_v3 = vadd.f32 %v23_v0, %v23_v0  ;;  %v536_v4 = vadd.f32 %v24_v1, %v24_v1  ;;  %v26_v6 = vld [vmem:[#allocation2 + $0x18] sm:$0xff]  ;;  %v27_v7 = vld [vmem:[#allocation2 + $0x20] sm:$0xff]  ;;  %s2076_s13 = sshll.u32 %s2139_s0, 4  ;;  %s2077_s13 = int_to_ptr.vmem [resolvable:$true] %s2076_s13 }
  0x10   :  { %v537_v5 = vadd.f32 %v25_v2, %v25_v2  ;;  %v28_v8 = vld [vmem:[#allocation2 + $0x28] sm:$0xff]  ;;  %v538_v9 = vadd.f32 %v26_v6, %v26_v6  ;;  %v539_v10 = vadd.f32 %v27_v7, %v27_v7  ;;  %v29_v12 = vld [vmem:[#allocation2 + $0x30] sm:$0xff]  ;;  %v30_v13 = vld [vmem:[#allocation2 + $0x38] sm:$0xff]  ;;  %s2112_s14 = scalar_lea.vmem %s2077_s13, 65536  ;;  %p2117_p6 = scmp.lt.s32.totalorder %s2077_s13, %s2077_s13 }
  0x11   :  { %v540_v11 = vadd.f32 %v28_v8, %v28_v8  ;;  %v31_v14 = vld [vmem:[#allocation2 + $0x40] sm:$0xff]  ;;  %v1047_v15 = vmax.f32 %v535_v3, 0.0  ;;  %v1048_v16 = vmax.f32 %v536_v4, 0.0  ;;  %v541_v18 = vadd.f32 %v29_v12, %v29_v12  ;;  %v32_v19 = vld [vmem:[#allocation2 + $0x48] sm:$0xff]  ;;  %v33_v20 = vld [vmem:[#allocation2 + $0x50] sm:$0xff]  ;;  %p2113_p5 = scmp.ne.s32.totalorder %s2077_s13, %s2112_s14  ;;  %p2118_p7 = scmp.lt.s32.totalorder %s2112_s14, %s2112_s14 }
  0x12   :  { %v1049_v17 = vmax.f32 %v537_v5, 0.0  ;;  %v34_v21 = vld [vmem:[#allocation2 + $0x58] sm:$0xff]  ;;  %v1050_v22 = vmax.f32 %v538_v9, 0.0  ;;  %v1051_v23 = vmax.f32 %v539_v10, 0.0  ;;  %v542_v25 = vadd.f32 %v30_v13, %v30_v13  ;;  %v35_v26 = vld [vmem:[#allocation2 + $0x60] sm:$0xff]  ;;  %v36_v27 = vld [vmem:[#allocation2 + $0x68] sm:$0xff] }
  0x13   :  { %v1052_v24 = vmax.f32 %v540_v11, 0.0  ;;  %v37_v28 = vld [vmem:[#allocation2 + $0x70] sm:$0xff]  ;;  %1559 = vst [vmem:[#allocation5] sm:$0xff] %v1047_v15  ;;  %1560 = vst [vmem:[#allocation5 + $0x8] sm:$0xff] %v1048_v16  ;;  %v1053_v29 = vmax.f32 %v541_v18, 0.0  ;;  %v543_v30 = vadd.f32 %v31_v14, %v31_v14  ;;  %v544_v31 = vadd.f32 %v32_v19, %v32_v19  ;;  %v38_v33 = vld [vmem:[#allocation2 + $0x78] sm:$0xff]  ;;  %p2119_p8 = por %p2118_p7, %p2117_p6 }
  0x14   :  { %1561 = vst [vmem:[#allocation5 + $0x10] sm:$0xff] %v1049_v17  ;;  %v545_v32 = vadd.f32 %v33_v20, %v33_v20  ;;  %1562 = vst [vmem:[#allocation5 + $0x18] sm:$0xff] %v1050_v22  ;;  %v1054_v34 = vmax.f32 %v542_v25, 0.0  ;;  %v546_v35 = vadd.f32 %v34_v21, %v34_v21  ;;  %v547_v36 = vadd.f32 %v35_v26, %v35_v26  ;;  %v39_v38 = vld [vmem:[#allocation2 + $0x80] sm:$0xff]  ;;  %v40_v39 = vld [vmem:[#allocation2 + $0x88] sm:$0xff] }
  0x15   :  { %1563 = vst [vmem:[#allocation5 + $0x20] sm:$0xff] %v1051_v23  ;;  %1564 = vst [vmem:[#allocation5 + $0x28] sm:$0xff] %v1052_v24  ;;  %v548_v37 = vadd.f32 %v36_v27, %v36_v27  ;;  %v41_v40 = vld [vmem:[#allocation2 + $0x90] sm:$0xff]  ;;  %v1055_v41 = vmax.f32 %v543_v30, 0.0  ;;  %v1056_v42 = vmax.f32 %v544_v31, 0.0  ;;  %v549_v44 = vadd.f32 %v37_v28, %v37_v28  ;;  %v42_v45 = vld [vmem:[#allocation2 + $0x98] sm:$0xff]  ;;  %p2120_p9 = pnand %p2119_p8, %p2113_p5 }
  0x16   :  { %1565 = vst [vmem:[#allocation5 + $0x30] sm:$0xff] %v1053_v29  ;;  %v1057_v43 = vmax.f32 %v545_v32, 0.0  ;;  %v43_v46 = vld [vmem:[#allocation2 + $0xa0] sm:$0xff]  ;;  %v44_v47 = vld [vmem:[#allocation2 + $0xa8] sm:$0xff]  ;;  %1566 = vst [vmem:[#allocation5 + $0x38] sm:$0xff] %v1054_v34  ;;  %v1058_v48 = vmax.f32 %v546_v35, 0.0  ;;  %v550_v51 = vadd.f32 %v38_v33, %v38_v33  ;;  %v551_v54 = vadd.f32 %v39_v38, %v39_v38 }
  0x17   :  { %v1059_v49 = vmax.f32 %v547_v36, 0.0  ;;  %v1060_v50 = vmax.f32 %v548_v37, 0.0  ;;  %v45_v52 = vld [vmem:[#allocation2 + $0xb0] sm:$0xff]  ;;  %1567 = vst [vmem:[#allocation5 + $0x40] sm:$0xff] %v1055_v41  ;;  %1568 = vst [vmem:[#allocation5 + $0x48] sm:$0xff] %v1056_v42  ;;  %v1061_v53 = vmax.f32 %v549_v44, 0.0  ;;  %v552_v55 = vadd.f32 %v40_v39, %v40_v39 }
  0x18   :  { %1569 = vst [vmem:[#allocation5 + $0x50] sm:$0xff] %v1057_v43  ;;  %v553_v56 = vadd.f32 %v41_v40, %v41_v40  ;;  %v46_v57 = vld [vmem:[#allocation2 + $0xb8] sm:$0xff]  ;;  %1570 = vst [vmem:[#allocation5 + $0x58] sm:$0xff] %v1058_v48  ;;  %v1062_v58 = vmax.f32 %v550_v51, 0.0  ;;  %v554_v59 = vadd.f32 %v42_v45, %v42_v45  ;;  %v555_v60 = vadd.f32 %v43_v46, %v43_v46  ;;  %v47_v62 = vld [vmem:[#allocation2 + $0xc0] sm:$0xff] }
  0x19   :  { %1571 = vst [vmem:[#allocation5 + $0x60] sm:$0xff] %v1059_v49  ;;  %1572 = vst [vmem:[#allocation5 + $0x68] sm:$0xff] %v1060_v50  ;;  %v556_v61 = vadd.f32 %v44_v47, %v44_v47  ;;  %v48_v63 = vld [vmem:[#allocation2 + $0xc8] sm:$0xff]  ;;  %v49_v0 = vld [vmem:[#allocation2 + $0xd0] sm:$0xff]  ;;  %v1063_v1 = vmax.f32 %v551_v54, 0.0  ;;  %v1064_v2 = vmax.f32 %v552_v55, 0.0  ;;  %v557_v4 = vadd.f32 %v45_v52, %v45_v52 }
  0x1a   :  { %1573 = vst [vmem:[#allocation5 + $0x70] sm:$0xff] %v1061_v53  ;;  %v1065_v3 = vmax.f32 %v553_v56, 0.0  ;;  %v50_v5 = vld [vmem:[#allocation2 + $0xd8] sm:$0xff]  ;;  %v51_v6 = vld [vmem:[#allocation2 + $0xe0] sm:$0xff]  ;;  %v52_v7 = vld [vmem:[#allocation2 + $0xe8] sm:$0xff]  ;;  %v1066_v8 = vmax.f32 %v554_v59, 0.0  ;;  %v558_v11 = vadd.f32 %v46_v57, %v46_v57  ;;  %v559_v14 = vadd.f32 %v47_v62, %v47_v62 }
  0x1b   :  { %1574 = vst [vmem:[#allocation5 + $0x78] sm:$0xff] %v1062_v58  ;;  %v1067_v9 = vmax.f32 %v555_v60, 0.0  ;;  %v1068_v10 = vmax.f32 %v556_v61, 0.0  ;;  %v53_v12 = vld [vmem:[#allocation2 + $0xf0] sm:$0xff]  ;;  %1575 = vst [vmem:[#allocation5 + $0x80] sm:$0xff] %v1063_v1  ;;  %v1069_v13 = vmax.f32 %v557_v4, 0.0  ;;  %v560_v15 = vadd.f32 %v48_v63, %v48_v63 }
  0x1c   :  { %1576 = vst [vmem:[#allocation5 + $0x88] sm:$0xff] %v1064_v2  ;;  %1577 = vst [vmem:[#allocation5 + $0x90] sm:$0xff] %v1065_v3  ;;  %v561_v16 = vadd.f32 %v49_v0, %v49_v0  ;;  %v54_v17 = vld [vmem:[#allocation2 + $0xf8] sm:$0xff]  ;;  %v1070_v18 = vmax.f32 %v558_v11, 0.0  ;;  %v562_v19 = vadd.f32 %v50_v5, %v50_v5  ;;  %v563_v20 = vadd.f32 %v51_v6, %v51_v6  ;;  %v55_v22 = vld [vmem:[#allocation2 + $0x100] sm:$0xff] }
  0x1d   :  { %1578 = vst [vmem:[#allocation5 + $0x98] sm:$0xff] %v1066_v8  ;;  %1579 = vst [vmem:[#allocation5 + $0xa0] sm:$0xff] %v1067_v9  ;;  %v564_v21 = vadd.f32 %v52_v7, %v52_v7  ;;  %v56_v23 = vld [vmem:[#allocation2 + $0x108] sm:$0xff]  ;;  %v57_v24 = vld [vmem:[#allocation2 + $0x110] sm:$0xff]  ;;  %v1071_v25 = vmax.f32 %v559_v14, 0.0  ;;  %v1072_v26 = vmax.f32 %v560_v15, 0.0  ;;  %v565_v28 = vadd.f32 %v53_v12, %v53_v12 }
  0x1e   :  { %1580 = vst [vmem:[#allocation5 + $0xa8] sm:$0xff] %v1068_v10  ;;  %1581 = vst [vmem:[#allocation5 + $0xb0] sm:$0xff] %v1069_v13  ;;  %v1073_v27 = vmax.f32 %v561_v16, 0.0  ;;  %v58_v29 = vld [vmem:[#allocation2 + $0x118] sm:$0xff]  ;;  %v59_v30 = vld [vmem:[#allocation2 + $0x120] sm:$0xff]  ;;  %v1074_v32 = vmax.f32 %v562_v19, 0.0  ;;  %v566_v35 = vadd.f32 %v54_v17, %v54_v17  ;;  %v567_v38 = vadd.f32 %v55_v22, %v55_v22 }
  0x1f   :  { %v60_v31 = vld [vmem:[#allocation2 + $0x128] sm:$0xff]  ;;  %1582 = vst [vmem:[#allocation5 + $0xb8] sm:$0xff] %v1070_v18  ;;  %v1075_v33 = vmax.f32 %v563_v20, 0.0  ;;  %v1076_v34 = vmax.f32 %v564_v21, 0.0  ;;  %v61_v36 = vld [vmem:[#allocation2 + $0x130] sm:$0xff]  ;;  %1583 = vst [vmem:[#allocation5 + $0xc0] sm:$0xff] %v1071_v25  ;;  %v568_v39 = vadd.f32 %v56_v23, %v56_v23  ;;  %v569_v40 = vadd.f32 %v57_v24, %v57_v24 }
  0x20   :  { %1584 = vst [vmem:[#allocation5 + $0xc8] sm:$0xff] %v1072_v26  ;;  %1585 = vst [vmem:[#allocation5 + $0xd0] sm:$0xff] %v1073_v27  ;;  %v1077_v37 = vmax.f32 %v565_v28, 0.0  ;;  %v62_v41 = vld [vmem:[#allocation2 + $0x138] sm:$0xff]  ;;  %v1078_v42 = vmax.f32 %v566_v35, 0.0  ;;  %v570_v43 = vadd.f32 %v58_v29, %v58_v29  ;;  %v571_v44 = vadd.f32 %v59_v30, %v59_v30  ;;  %v63_v46 = vld [vmem:[#allocation2 + $0x140] sm:$0xff] }
  0x21   :  { %1586 = vst [vmem:[#allocation5 + $0xd8] sm:$0xff] %v1074_v32  ;;  %1587 = vst [vmem:[#allocation5 + $0xe0] sm:$0xff] %v1075_v33  ;;  %v572_v45 = vadd.f32 %v60_v31, %v60_v31  ;;  %v64_v47 = vld [vmem:[#allocation2 + $0x148] sm:$0xff]  ;;  %v65_v48 = vld [vmem:[#allocation2 + $0x150] sm:$0xff]  ;;  %v1079_v49 = vmax.f32 %v567_v38, 0.0  ;;  %v1080_v50 = vmax.f32 %v568_v39, 0.0  ;;  %v573_v52 = vadd.f32 %v61_v36, %v61_v36 }
  0x22   :  { %1588 = vst [vmem:[#allocation5 + $0xe8] sm:$0xff] %v1076_v34  ;;  %1589 = vst [vmem:[#allocation5 + $0xf0] sm:$0xff] %v1077_v37  ;;  %v1081_v51 = vmax.f32 %v569_v40, 0.0  ;;  %v66_v53 = vld [vmem:[#allocation2 + $0x158] sm:$0xff]  ;;  %v67_v54 = vld [vmem:[#allocation2 + $0x160] sm:$0xff]  ;;  %v1082_v56 = vmax.f32 %v570_v43, 0.0  ;;  %v574_v59 = vadd.f32 %v62_v41, %v62_v41  ;;  %v575_v62 = vadd.f32 %v63_v46, %v63_v46 }
  0x23   :  { %v68_v55 = vld [vmem:[#allocation2 + $0x168] sm:$0xff]  ;;  %1590 = vst [vmem:[#allocation5 + $0xf8] sm:$0xff] %v1078_v42  ;;  %v1083_v57 = vmax.f32 %v571_v44, 0.0  ;;  %v1084_v58 = vmax.f32 %v572_v45, 0.0  ;;  %v69_v60 = vld [vmem:[#allocation2 + $0x170] sm:$0xff]  ;;  %1591 = vst [vmem:[#allocation5 + $0x100] sm:$0xff] %v1079_v49  ;;  %v576_v63 = vadd.f32 %v64_v47, %v64_v47  ;;  %v577_v0 = vadd.f32 %v65_v48, %v65_v48 }
  0x24   :  { %1592 = vst [vmem:[#allocation5 + $0x108] sm:$0xff] %v1080_v50  ;;  %1593 = vst [vmem:[#allocation5 + $0x110] sm:$0xff] %v1081_v51  ;;  %v1085_v61 = vmax.f32 %v573_v52, 0.0  ;;  %v70_v1 = vld [vmem:[#allocation2 + $0x178] sm:$0xff]  ;;  %v1086_v2 = vmax.f32 %v574_v59, 0.0  ;;  %v578_v3 = vadd.f32 %v66_v53, %v66_v53  ;;  %v579_v4 = vadd.f32 %v67_v54, %v67_v54  ;;  %v71_v6 = vld [vmem:[#allocation2 + $0x180] sm:$0xff] }
  0x25   :  { %1594 = vst [vmem:[#allocation5 + $0x118] sm:$0xff] %v1082_v56  ;;  %1595 = vst [vmem:[#allocation5 + $0x120] sm:$0xff] %v1083_v57  ;;  %v580_v5 = vadd.f32 %v68_v55, %v68_v55  ;;  %v72_v7 = vld [vmem:[#allocation2 + $0x188] sm:$0xff]  ;;  %v73_v8 = vld [vmem:[#allocation2 + $0x190] sm:$0xff]  ;;  %v1087_v9 = vmax.f32 %v575_v62, 0.0  ;;  %v1088_v10 = vmax.f32 %v576_v63, 0.0  ;;  %v581_v12 = vadd.f32 %v69_v60, %v69_v60 }
  0x26   :  { %1596 = vst [vmem:[#allocation5 + $0x128] sm:$0xff] %v1084_v58  ;;  %1597 = vst [vmem:[#allocation5 + $0x130] sm:$0xff] %v1085_v61  ;;  %v1089_v11 = vmax.f32 %v577_v0, 0.0  ;;  %v74_v13 = vld [vmem:[#allocation2 + $0x198] sm:$0xff]  ;;  %v75_v14 = vld [vmem:[#allocation2 + $0x1a0] sm:$0xff]  ;;  %v1090_v16 = vmax.f32 %v578_v3, 0.0  ;;  %v582_v19 = vadd.f32 %v70_v1, %v70_v1  ;;  %v583_v22 = vadd.f32 %v71_v6, %v71_v6 }
  0x27   :  { %v76_v15 = vld [vmem:[#allocation2 + $0x1a8] sm:$0xff]  ;;  %1598 = vst [vmem:[#allocation5 + $0x138] sm:$0xff] %v1086_v2  ;;  %v1091_v17 = vmax.f32 %v579_v4, 0.0  ;;  %v1092_v18 = vmax.f32 %v580_v5, 0.0  ;;  %v77_v20 = vld [vmem:[#allocation2 + $0x1b0] sm:$0xff]  ;;  %1599 = vst [vmem:[#allocation5 + $0x140] sm:$0xff] %v1087_v9  ;;  %v584_v23 = vadd.f32 %v72_v7, %v72_v7  ;;  %v585_v24 = vadd.f32 %v73_v8, %v73_v8 }
  0x28   :  { %1600 = vst [vmem:[#allocation5 + $0x148] sm:$0xff] %v1088_v10  ;;  %1601 = vst [vmem:[#allocation5 + $0x150] sm:$0xff] %v1089_v11  ;;  %v1093_v21 = vmax.f32 %v581_v12, 0.0  ;;  %v78_v25 = vld [vmem:[#allocation2 + $0x1b8] sm:$0xff]  ;;  %v1094_v26 = vmax.f32 %v582_v19, 0.0  ;;  %v586_v27 = vadd.f32 %v74_v13, %v74_v13  ;;  %v587_v28 = vadd.f32 %v75_v14, %v75_v14  ;;  %v79_v30 = vld [vmem:[#allocation2 + $0x1c0] sm:$0xff] }
  0x29   :  { %1602 = vst [vmem:[#allocation5 + $0x158] sm:$0xff] %v1090_v16  ;;  %1603 = vst [vmem:[#allocation5 + $0x160] sm:$0xff] %v1091_v17  ;;  %v588_v29 = vadd.f32 %v76_v15, %v76_v15  ;;  %v80_v31 = vld [vmem:[#allocation2 + $0x1c8] sm:$0xff]  ;;  %v81_v32 = vld [vmem:[#allocation2 + $0x1d0] sm:$0xff]  ;;  %v1095_v33 = vmax.f32 %v583_v22, 0.0  ;;  %v1096_v34 = vmax.f32 %v584_v23, 0.0  ;;  %v589_v36 = vadd.f32 %v77_v20, %v77_v20 }
  0x2a   :  { %1604 = vst [vmem:[#allocation5 + $0x168] sm:$0xff] %v1092_v18  ;;  %1605 = vst [vmem:[#allocation5 + $0x170] sm:$0xff] %v1093_v21  ;;  %v1097_v35 = vmax.f32 %v585_v24, 0.0  ;;  %v82_v37 = vld [vmem:[#allocation2 + $0x1d8] sm:$0xff]  ;;  %v83_v38 = vld [vmem:[#allocation2 + $0x1e0] sm:$0xff]  ;;  %v1098_v40 = vmax.f32 %v586_v27, 0.0  ;;  %v590_v43 = vadd.f32 %v78_v25, %v78_v25  ;;  %v591_v46 = vadd.f32 %v79_v30, %v79_v30 }
  0x2b   :  { %v84_v39 = vld [vmem:[#allocation2 + $0x1e8] sm:$0xff]  ;;  %1606 = vst [vmem:[#allocation5 + $0x178] sm:$0xff] %v1094_v26  ;;  %v1099_v41 = vmax.f32 %v587_v28, 0.0  ;;  %v1100_v42 = vmax.f32 %v588_v29, 0.0  ;;  %v85_v44 = vld [vmem:[#allocation2 + $0x1f0] sm:$0xff]  ;;  %1607 = vst [vmem:[#allocation5 + $0x180] sm:$0xff] %v1095_v33  ;;  %v592_v47 = vadd.f32 %v80_v31, %v80_v31  ;;  %v593_v48 = vadd.f32 %v81_v32, %v81_v32 }
  0x2c   :  { %1608 = vst [vmem:[#allocation5 + $0x188] sm:$0xff] %v1096_v34  ;;  %1609 = vst [vmem:[#allocation5 + $0x190] sm:$0xff] %v1097_v35  ;;  %v1101_v45 = vmax.f32 %v589_v36, 0.0  ;;  %v86_v49 = vld [vmem:[#allocation2 + $0x1f8] sm:$0xff]  ;;  %v1102_v50 = vmax.f32 %v590_v43, 0.0  ;;  %v594_v51 = vadd.f32 %v82_v37, %v82_v37  ;;  %v595_v52 = vadd.f32 %v83_v38, %v83_v38  ;;  %v87_v54 = vld [vmem:[#allocation2 + $0x200] sm:$0xff] }
  0x2d   :  { %1610 = vst [vmem:[#allocation5 + $0x198] sm:$0xff] %v1098_v40  ;;  %1611 = vst [vmem:[#allocation5 + $0x1a0] sm:$0xff] %v1099_v41  ;;  %v596_v53 = vadd.f32 %v84_v39, %v84_v39  ;;  %v88_v55 = vld [vmem:[#allocation2 + $0x208] sm:$0xff]  ;;  %v89_v56 = vld [vmem:[#allocation2 + $0x210] sm:$0xff]  ;;  %v1103_v57 = vmax.f32 %v591_v46, 0.0  ;;  %v1104_v58 = vmax.f32 %v592_v47, 0.0  ;;  %v597_v60 = vadd.f32 %v85_v44, %v85_v44 }
  0x2e   :  { %1612 = vst [vmem:[#allocation5 + $0x1a8] sm:$0xff] %v1100_v42  ;;  %1613 = vst [vmem:[#allocation5 + $0x1b0] sm:$0xff] %v1101_v45  ;;  %v1105_v59 = vmax.f32 %v593_v48, 0.0  ;;  %v90_v61 = vld [vmem:[#allocation2 + $0x218] sm:$0xff]  ;;  %v91_v62 = vld [vmem:[#allocation2 + $0x220] sm:$0xff]  ;;  %v1106_v0 = vmax.f32 %v594_v51, 0.0  ;;  %v598_v3 = vadd.f32 %v86_v49, %v86_v49  ;;  %v599_v6 = vadd.f32 %v87_v54, %v87_v54 }
  0x2f   :  { %v92_v63 = vld [vmem:[#allocation2 + $0x228] sm:$0xff]  ;;  %1614 = vst [vmem:[#allocation5 + $0x1b8] sm:$0xff] %v1102_v50  ;;  %v1107_v1 = vmax.f32 %v595_v52, 0.0  ;;  %v1108_v2 = vmax.f32 %v596_v53, 0.0  ;;  %v93_v4 = vld [vmem:[#allocation2 + $0x230] sm:$0xff]  ;;  %1615 = vst [vmem:[#allocation5 + $0x1c0] sm:$0xff] %v1103_v57  ;;  %v600_v7 = vadd.f32 %v88_v55, %v88_v55  ;;  %v601_v8 = vadd.f32 %v89_v56, %v89_v56 }
  0x30   :  { %1616 = vst [vmem:[#allocation5 + $0x1c8] sm:$0xff] %v1104_v58  ;;  %1617 = vst [vmem:[#allocation5 + $0x1d0] sm:$0xff] %v1105_v59  ;;  %v1109_v5 = vmax.f32 %v597_v60, 0.0  ;;  %v94_v9 = vld [vmem:[#allocation2 + $0x238] sm:$0xff]  ;;  %v1110_v10 = vmax.f32 %v598_v3, 0.0  ;;  %v602_v11 = vadd.f32 %v90_v61, %v90_v61  ;;  %v603_v12 = vadd.f32 %v91_v62, %v91_v62  ;;  %v95_v14 = vld [vmem:[#allocation2 + $0x240] sm:$0xff] }
  0x31   :  { %1618 = vst [vmem:[#allocation5 + $0x1d8] sm:$0xff] %v1106_v0  ;;  %1619 = vst [vmem:[#allocation5 + $0x1e0] sm:$0xff] %v1107_v1  ;;  %v604_v13 = vadd.f32 %v92_v63, %v92_v63  ;;  %v96_v15 = vld [vmem:[#allocation2 + $0x248] sm:$0xff]  ;;  %v97_v16 = vld [vmem:[#allocation2 + $0x250] sm:$0xff]  ;;  %v1111_v17 = vmax.f32 %v599_v6, 0.0  ;;  %v1112_v18 = vmax.f32 %v600_v7, 0.0  ;;  %v605_v20 = vadd.f32 %v93_v4, %v93_v4 }
  0x32   :  { %1620 = vst [vmem:[#allocation5 + $0x1e8] sm:$0xff] %v1108_v2  ;;  %1621 = vst [vmem:[#allocation5 + $0x1f0] sm:$0xff] %v1109_v5  ;;  %v1113_v19 = vmax.f32 %v601_v8, 0.0  ;;  %v98_v21 = vld [vmem:[#allocation2 + $0x258] sm:$0xff]  ;;  %v99_v22 = vld [vmem:[#allocation2 + $0x260] sm:$0xff]  ;;  %v1114_v24 = vmax.f32 %v602_v11, 0.0  ;;  %v606_v27 = vadd.f32 %v94_v9, %v94_v9  ;;  %v607_v30 = vadd.f32 %v95_v14, %v95_v14 }
  0x33   :  { %v100_v23 = vld [vmem:[#allocation2 + $0x268] sm:$0xff]  ;;  %1622 = vst [vmem:[#allocation5 + $0x1f8] sm:$0xff] %v1110_v10  ;;  %v1115_v25 = vmax.f32 %v603_v12, 0.0  ;;  %v1116_v26 = vmax.f32 %v604_v13, 0.0  ;;  %v101_v28 = vld [vmem:[#allocation2 + $0x270] sm:$0xff]  ;;  %1623 = vst [vmem:[#allocation5 + $0x200] sm:$0xff] %v1111_v17  ;;  %v608_v31 = vadd.f32 %v96_v15, %v96_v15  ;;  %v609_v32 = vadd.f32 %v97_v16, %v97_v16 }
  0x34   :  { %1624 = vst [vmem:[#allocation5 + $0x208] sm:$0xff] %v1112_v18  ;;  %1625 = vst [vmem:[#allocation5 + $0x210] sm:$0xff] %v1113_v19  ;;  %v1117_v29 = vmax.f32 %v605_v20, 0.0  ;;  %v102_v33 = vld [vmem:[#allocation2 + $0x278] sm:$0xff]  ;;  %v1118_v34 = vmax.f32 %v606_v27, 0.0  ;;  %v610_v35 = vadd.f32 %v98_v21, %v98_v21  ;;  %v611_v36 = vadd.f32 %v99_v22, %v99_v22  ;;  %v103_v38 = vld [vmem:[#allocation2 + $0x280] sm:$0xff] }
  0x35   :  { %1626 = vst [vmem:[#allocation5 + $0x218] sm:$0xff] %v1114_v24  ;;  %1627 = vst [vmem:[#allocation5 + $0x220] sm:$0xff] %v1115_v25  ;;  %v612_v37 = vadd.f32 %v100_v23, %v100_v23  ;;  %v104_v39 = vld [vmem:[#allocation2 + $0x288] sm:$0xff]  ;;  %v105_v40 = vld [vmem:[#allocation2 + $0x290] sm:$0xff]  ;;  %v1119_v41 = vmax.f32 %v607_v30, 0.0  ;;  %v1120_v42 = vmax.f32 %v608_v31, 0.0  ;;  %v613_v44 = vadd.f32 %v101_v28, %v101_v28 }
  0x36   :  { %1628 = vst [vmem:[#allocation5 + $0x228] sm:$0xff] %v1116_v26  ;;  %1629 = vst [vmem:[#allocation5 + $0x230] sm:$0xff] %v1117_v29  ;;  %v1121_v43 = vmax.f32 %v609_v32, 0.0  ;;  %v106_v45 = vld [vmem:[#allocation2 + $0x298] sm:$0xff]  ;;  %v107_v46 = vld [vmem:[#allocation2 + $0x2a0] sm:$0xff]  ;;  %v1122_v48 = vmax.f32 %v610_v35, 0.0  ;;  %v614_v51 = vadd.f32 %v102_v33, %v102_v33  ;;  %v615_v54 = vadd.f32 %v103_v38, %v103_v38 }
  0x37   :  { %v108_v47 = vld [vmem:[#allocation2 + $0x2a8] sm:$0xff]  ;;  %1630 = vst [vmem:[#allocation5 + $0x238] sm:$0xff] %v1118_v34  ;;  %v1123_v49 = vmax.f32 %v611_v36, 0.0  ;;  %v1124_v50 = vmax.f32 %v612_v37, 0.0  ;;  %v109_v52 = vld [vmem:[#allocation2 + $0x2b0] sm:$0xff]  ;;  %1631 = vst [vmem:[#allocation5 + $0x240] sm:$0xff] %v1119_v41  ;;  %v616_v55 = vadd.f32 %v104_v39, %v104_v39  ;;  %v617_v56 = vadd.f32 %v105_v40, %v105_v40 }
  0x38   :  { %1632 = vst [vmem:[#allocation5 + $0x248] sm:$0xff] %v1120_v42  ;;  %1633 = vst [vmem:[#allocation5 + $0x250] sm:$0xff] %v1121_v43  ;;  %v1125_v53 = vmax.f32 %v613_v44, 0.0  ;;  %v110_v57 = vld [vmem:[#allocation2 + $0x2b8] sm:$0xff]  ;;  %v1126_v58 = vmax.f32 %v614_v51, 0.0  ;;  %v618_v59 = vadd.f32 %v106_v45, %v106_v45  ;;  %v619_v60 = vadd.f32 %v107_v46, %v107_v46  ;;  %v111_v62 = vld [vmem:[#allocation2 + $0x2c0] sm:$0xff] }
  0x39   :  { %1634 = vst [vmem:[#allocation5 + $0x258] sm:$0xff] %v1122_v48  ;;  %1635 = vst [vmem:[#allocation5 + $0x260] sm:$0xff] %v1123_v49  ;;  %v620_v61 = vadd.f32 %v108_v47, %v108_v47  ;;  %v112_v63 = vld [vmem:[#allocation2 + $0x2c8] sm:$0xff]  ;;  %v113_v0 = vld [vmem:[#allocation2 + $0x2d0] sm:$0xff]  ;;  %v1127_v1 = vmax.f32 %v615_v54, 0.0  ;;  %v1128_v2 = vmax.f32 %v616_v55, 0.0  ;;  %v621_v4 = vadd.f32 %v109_v52, %v109_v52 }
  0x3a   :  { %1636 = vst [vmem:[#allocation5 + $0x268] sm:$0xff] %v1124_v50  ;;  %1637 = vst [vmem:[#allocation5 + $0x270] sm:$0xff] %v1125_v53  ;;  %v1129_v3 = vmax.f32 %v617_v56, 0.0  ;;  %v114_v5 = vld [vmem:[#allocation2 + $0x2d8] sm:$0xff]  ;;  %v115_v6 = vld [vmem:[#allocation2 + $0x2e0] sm:$0xff]  ;;  %v1130_v8 = vmax.f32 %v618_v59, 0.0  ;;  %v622_v11 = vadd.f32 %v110_v57, %v110_v57  ;;  %v623_v14 = vadd.f32 %v111_v62, %v111_v62 }
  0x3b   :  { %v116_v7 = vld [vmem:[#allocation2 + $0x2e8] sm:$0xff]  ;;  %1638 = vst [vmem:[#allocation5 + $0x278] sm:$0xff] %v1126_v58  ;;  %v1131_v9 = vmax.f32 %v619_v60, 0.0  ;;  %v1132_v10 = vmax.f32 %v620_v61, 0.0  ;;  %v117_v12 = vld [vmem:[#allocation2 + $0x2f0] sm:$0xff]  ;;  %1639 = vst [vmem:[#allocation5 + $0x280] sm:$0xff] %v1127_v1  ;;  %v624_v15 = vadd.f32 %v112_v63, %v112_v63  ;;  %v625_v16 = vadd.f32 %v113_v0, %v113_v0 }
  0x3c   :  { %1640 = vst [vmem:[#allocation5 + $0x288] sm:$0xff] %v1128_v2  ;;  %1641 = vst [vmem:[#allocation5 + $0x290] sm:$0xff] %v1129_v3  ;;  %v1133_v13 = vmax.f32 %v621_v4, 0.0  ;;  %v118_v17 = vld [vmem:[#allocation2 + $0x2f8] sm:$0xff]  ;;  %v1134_v18 = vmax.f32 %v622_v11, 0.0  ;;  %v626_v19 = vadd.f32 %v114_v5, %v114_v5  ;;  %v627_v20 = vadd.f32 %v115_v6, %v115_v6  ;;  %v119_v22 = vld [vmem:[#allocation2 + $0x300] sm:$0xff] }
  0x3d   :  { %1642 = vst [vmem:[#allocation5 + $0x298] sm:$0xff] %v1130_v8  ;;  %1643 = vst [vmem:[#allocation5 + $0x2a0] sm:$0xff] %v1131_v9  ;;  %v628_v21 = vadd.f32 %v116_v7, %v116_v7  ;;  %v120_v23 = vld [vmem:[#allocation2 + $0x308] sm:$0xff]  ;;  %v121_v24 = vld [vmem:[#allocation2 + $0x310] sm:$0xff]  ;;  %v1135_v25 = vmax.f32 %v623_v14, 0.0  ;;  %v1136_v26 = vmax.f32 %v624_v15, 0.0  ;;  %v629_v28 = vadd.f32 %v117_v12, %v117_v12 }
  0x3e   :  { %1644 = vst [vmem:[#allocation5 + $0x2a8] sm:$0xff] %v1132_v10  ;;  %1645 = vst [vmem:[#allocation5 + $0x2b0] sm:$0xff] %v1133_v13  ;;  %v1137_v27 = vmax.f32 %v625_v16, 0.0  ;;  %v122_v29 = vld [vmem:[#allocation2 + $0x318] sm:$0xff]  ;;  %v123_v30 = vld [vmem:[#allocation2 + $0x320] sm:$0xff]  ;;  %v1138_v32 = vmax.f32 %v626_v19, 0.0  ;;  %v630_v35 = vadd.f32 %v118_v17, %v118_v17  ;;  %v631_v38 = vadd.f32 %v119_v22, %v119_v22 }
  0x3f   :  { %v124_v31 = vld [vmem:[#allocation2 + $0x328] sm:$0xff]  ;;  %1646 = vst [vmem:[#allocation5 + $0x2b8] sm:$0xff] %v1134_v18  ;;  %v1139_v33 = vmax.f32 %v627_v20, 0.0  ;;  %v1140_v34 = vmax.f32 %v628_v21, 0.0  ;;  %v125_v36 = vld [vmem:[#allocation2 + $0x330] sm:$0xff]  ;;  %1647 = vst [vmem:[#allocation5 + $0x2c0] sm:$0xff] %v1135_v25  ;;  %v632_v39 = vadd.f32 %v120_v23, %v120_v23  ;;  %v633_v40 = vadd.f32 %v121_v24, %v121_v24 }
  0x40   :  { %1648 = vst [vmem:[#allocation5 + $0x2c8] sm:$0xff] %v1136_v26  ;;  %1649 = vst [vmem:[#allocation5 + $0x2d0] sm:$0xff] %v1137_v27  ;;  %v1141_v37 = vmax.f32 %v629_v28, 0.0  ;;  %v126_v41 = vld [vmem:[#allocation2 + $0x338] sm:$0xff]  ;;  %v1142_v42 = vmax.f32 %v630_v35, 0.0  ;;  %v634_v43 = vadd.f32 %v122_v29, %v122_v29  ;;  %v635_v44 = vadd.f32 %v123_v30, %v123_v30  ;;  %v127_v46 = vld [vmem:[#allocation2 + $0x340] sm:$0xff] }
  0x41   :  { %1650 = vst [vmem:[#allocation5 + $0x2d8] sm:$0xff] %v1138_v32  ;;  %1651 = vst [vmem:[#allocation5 + $0x2e0] sm:$0xff] %v1139_v33  ;;  %v636_v45 = vadd.f32 %v124_v31, %v124_v31  ;;  %v128_v47 = vld [vmem:[#allocation2 + $0x348] sm:$0xff]  ;;  %v129_v48 = vld [vmem:[#allocation2 + $0x350] sm:$0xff]  ;;  %v1143_v49 = vmax.f32 %v631_v38, 0.0  ;;  %v1144_v50 = vmax.f32 %v632_v39, 0.0  ;;  %v637_v52 = vadd.f32 %v125_v36, %v125_v36 }
  0x42   :  { %1652 = vst [vmem:[#allocation5 + $0x2e8] sm:$0xff] %v1140_v34  ;;  %1653 = vst [vmem:[#allocation5 + $0x2f0] sm:$0xff] %v1141_v37  ;;  %v1145_v51 = vmax.f32 %v633_v40, 0.0  ;;  %v130_v53 = vld [vmem:[#allocation2 + $0x358] sm:$0xff]  ;;  %v131_v54 = vld [vmem:[#allocation2 + $0x360] sm:$0xff]  ;;  %v1146_v56 = vmax.f32 %v634_v43, 0.0  ;;  %v638_v59 = vadd.f32 %v126_v41, %v126_v41  ;;  %v639_v62 = vadd.f32 %v127_v46, %v127_v46 }
  0x43   :  { %v132_v55 = vld [vmem:[#allocation2 + $0x368] sm:$0xff]  ;;  %1654 = vst [vmem:[#allocation5 + $0x2f8] sm:$0xff] %v1142_v42  ;;  %v1147_v57 = vmax.f32 %v635_v44, 0.0  ;;  %v1148_v58 = vmax.f32 %v636_v45, 0.0  ;;  %v133_v60 = vld [vmem:[#allocation2 + $0x370] sm:$0xff]  ;;  %1655 = vst [vmem:[#allocation5 + $0x300] sm:$0xff] %v1143_v49  ;;  %v640_v63 = vadd.f32 %v128_v47, %v128_v47  ;;  %v641_v0 = vadd.f32 %v129_v48, %v129_v48 }
  0x44   :  { %1656 = vst [vmem:[#allocation5 + $0x308] sm:$0xff] %v1144_v50  ;;  %1657 = vst [vmem:[#allocation5 + $0x310] sm:$0xff] %v1145_v51  ;;  %v1149_v61 = vmax.f32 %v637_v52, 0.0  ;;  %v134_v1 = vld [vmem:[#allocation2 + $0x378] sm:$0xff]  ;;  %v1150_v2 = vmax.f32 %v638_v59, 0.0  ;;  %v642_v3 = vadd.f32 %v130_v53, %v130_v53  ;;  %v643_v4 = vadd.f32 %v131_v54, %v131_v54  ;;  %v135_v6 = vld [vmem:[#allocation2 + $0x380] sm:$0xff] }
  0x45   :  { %1658 = vst [vmem:[#allocation5 + $0x318] sm:$0xff] %v1146_v56  ;;  %1659 = vst [vmem:[#allocation5 + $0x320] sm:$0xff] %v1147_v57  ;;  %v644_v5 = vadd.f32 %v132_v55, %v132_v55  ;;  %v136_v7 = vld [vmem:[#allocation2 + $0x388] sm:$0xff]  ;;  %v137_v8 = vld [vmem:[#allocation2 + $0x390] sm:$0xff]  ;;  %v1151_v9 = vmax.f32 %v639_v62, 0.0  ;;  %v1152_v10 = vmax.f32 %v640_v63, 0.0  ;;  %v645_v12 = vadd.f32 %v133_v60, %v133_v60 }
  0x46   :  { %1660 = vst [vmem:[#allocation5 + $0x328] sm:$0xff] %v1148_v58  ;;  %1661 = vst [vmem:[#allocation5 + $0x330] sm:$0xff] %v1149_v61  ;;  %v1153_v11 = vmax.f32 %v641_v0, 0.0  ;;  %v138_v13 = vld [vmem:[#allocation2 + $0x398] sm:$0xff]  ;;  %v139_v14 = vld [vmem:[#allocation2 + $0x3a0] sm:$0xff]  ;;  %v1154_v16 = vmax.f32 %v642_v3, 0.0  ;;  %v646_v19 = vadd.f32 %v134_v1, %v134_v1  ;;  %v647_v22 = vadd.f32 %v135_v6, %v135_v6 }
  0x47   :  { %v140_v15 = vld [vmem:[#allocation2 + $0x3a8] sm:$0xff]  ;;  %1662 = vst [vmem:[#allocation5 + $0x338] sm:$0xff] %v1150_v2  ;;  %v1155_v17 = vmax.f32 %v643_v4, 0.0  ;;  %v1156_v18 = vmax.f32 %v644_v5, 0.0  ;;  %v141_v20 = vld [vmem:[#allocation2 + $0x3b0] sm:$0xff]  ;;  %1663 = vst [vmem:[#allocation5 + $0x340] sm:$0xff] %v1151_v9  ;;  %v648_v23 = vadd.f32 %v136_v7, %v136_v7  ;;  %v649_v24 = vadd.f32 %v137_v8, %v137_v8 }
  0x48   :  { %1664 = vst [vmem:[#allocation5 + $0x348] sm:$0xff] %v1152_v10  ;;  %1665 = vst [vmem:[#allocation5 + $0x350] sm:$0xff] %v1153_v11  ;;  %v1157_v21 = vmax.f32 %v645_v12, 0.0  ;;  %v142_v25 = vld [vmem:[#allocation2 + $0x3b8] sm:$0xff]  ;;  %v1158_v26 = vmax.f32 %v646_v19, 0.0  ;;  %v650_v27 = vadd.f32 %v138_v13, %v138_v13  ;;  %v651_v28 = vadd.f32 %v139_v14, %v139_v14  ;;  %v143_v30 = vld [vmem:[#allocation2 + $0x3c0] sm:$0xff] }
  0x49   :  { %1666 = vst [vmem:[#allocation5 + $0x358] sm:$0xff] %v1154_v16  ;;  %1667 = vst [vmem:[#allocation5 + $0x360] sm:$0xff] %v1155_v17  ;;  %v652_v29 = vadd.f32 %v140_v15, %v140_v15  ;;  %v144_v31 = vld [vmem:[#allocation2 + $0x3c8] sm:$0xff]  ;;  %v145_v32 = vld [vmem:[#allocation2 + $0x3d0] sm:$0xff]  ;;  %v1159_v33 = vmax.f32 %v647_v22, 0.0  ;;  %v1160_v34 = vmax.f32 %v648_v23, 0.0  ;;  %v653_v36 = vadd.f32 %v141_v20, %v141_v20 }
  0x4a   :  { %1668 = vst [vmem:[#allocation5 + $0x368] sm:$0xff] %v1156_v18  ;;  %1669 = vst [vmem:[#allocation5 + $0x370] sm:$0xff] %v1157_v21  ;;  %v1161_v35 = vmax.f32 %v649_v24, 0.0  ;;  %v146_v37 = vld [vmem:[#allocation2 + $0x3d8] sm:$0xff]  ;;  %v147_v38 = vld [vmem:[#allocation2 + $0x3e0] sm:$0xff]  ;;  %v1162_v40 = vmax.f32 %v650_v27, 0.0  ;;  %v654_v43 = vadd.f32 %v142_v25, %v142_v25  ;;  %v655_v46 = vadd.f32 %v143_v30, %v143_v30 }
  0x4b   :  { %v148_v39 = vld [vmem:[#allocation2 + $0x3e8] sm:$0xff]  ;;  %1670 = vst [vmem:[#allocation5 + $0x378] sm:$0xff] %v1158_v26  ;;  %v1163_v41 = vmax.f32 %v651_v28, 0.0  ;;  %v1164_v42 = vmax.f32 %v652_v29, 0.0  ;;  %v149_v44 = vld [vmem:[#allocation2 + $0x3f0] sm:$0xff]  ;;  %1671 = vst [vmem:[#allocation5 + $0x380] sm:$0xff] %v1159_v33  ;;  %v656_v47 = vadd.f32 %v144_v31, %v144_v31  ;;  %v657_v48 = vadd.f32 %v145_v32, %v145_v32 }
  0x4c   :  { %1672 = vst [vmem:[#allocation5 + $0x388] sm:$0xff] %v1160_v34  ;;  %1673 = vst [vmem:[#allocation5 + $0x390] sm:$0xff] %v1161_v35  ;;  %v1165_v45 = vmax.f32 %v653_v36, 0.0  ;;  %v150_v49 = vld [vmem:[#allocation2 + $0x3f8] sm:$0xff]  ;;  %v1166_v50 = vmax.f32 %v654_v43, 0.0  ;;  %v658_v51 = vadd.f32 %v146_v37, %v146_v37  ;;  %v659_v52 = vadd.f32 %v147_v38, %v147_v38  ;;  %v151_v54 = vld [vmem:[#allocation2 + $0x400] sm:$0xff] }
  0x4d   :  { %1674 = vst [vmem:[#allocation5 + $0x398] sm:$0xff] %v1162_v40  ;;  %1675 = vst [vmem:[#allocation5 + $0x3a0] sm:$0xff] %v1163_v41  ;;  %v660_v53 = vadd.f32 %v148_v39, %v148_v39  ;;  %v152_v55 = vld [vmem:[#allocation2 + $0x408] sm:$0xff]  ;;  %v153_v56 = vld [vmem:[#allocation2 + $0x410] sm:$0xff]  ;;  %v1167_v57 = vmax.f32 %v655_v46, 0.0  ;;  %v1168_v58 = vmax.f32 %v656_v47, 0.0  ;;  %v661_v60 = vadd.f32 %v149_v44, %v149_v44 }
  0x4e   :  { %1676 = vst [vmem:[#allocation5 + $0x3a8] sm:$0xff] %v1164_v42  ;;  %1677 = vst [vmem:[#allocation5 + $0x3b0] sm:$0xff] %v1165_v45  ;;  %v1169_v59 = vmax.f32 %v657_v48, 0.0  ;;  %v154_v61 = vld [vmem:[#allocation2 + $0x418] sm:$0xff]  ;;  %v155_v62 = vld [vmem:[#allocation2 + $0x420] sm:$0xff]  ;;  %v1170_v0 = vmax.f32 %v658_v51, 0.0  ;;  %v662_v3 = vadd.f32 %v150_v49, %v150_v49  ;;  %v663_v6 = vadd.f32 %v151_v54, %v151_v54 }
  0x4f   :  { %v156_v63 = vld [vmem:[#allocation2 + $0x428] sm:$0xff]  ;;  %1678 = vst [vmem:[#allocation5 + $0x3b8] sm:$0xff] %v1166_v50  ;;  %v1171_v1 = vmax.f32 %v659_v52, 0.0  ;;  %v1172_v2 = vmax.f32 %v660_v53, 0.0  ;;  %v157_v4 = vld [vmem:[#allocation2 + $0x430] sm:$0xff]  ;;  %1679 = vst [vmem:[#allocation5 + $0x3c0] sm:$0xff] %v1167_v57  ;;  %v664_v7 = vadd.f32 %v152_v55, %v152_v55  ;;  %v665_v8 = vadd.f32 %v153_v56, %v153_v56 }
  0x50   :  { %1680 = vst [vmem:[#allocation5 + $0x3c8] sm:$0xff] %v1168_v58  ;;  %1681 = vst [vmem:[#allocation5 + $0x3d0] sm:$0xff] %v1169_v59  ;;  %v1173_v5 = vmax.f32 %v661_v60, 0.0  ;;  %v158_v9 = vld [vmem:[#allocation2 + $0x438] sm:$0xff]  ;;  %v1174_v10 = vmax.f32 %v662_v3, 0.0  ;;  %v666_v11 = vadd.f32 %v154_v61, %v154_v61  ;;  %v667_v12 = vadd.f32 %v155_v62, %v155_v62  ;;  %v159_v14 = vld [vmem:[#allocation2 + $0x440] sm:$0xff] }
  0x51   :  { %1682 = vst [vmem:[#allocation5 + $0x3d8] sm:$0xff] %v1170_v0  ;;  %1683 = vst [vmem:[#allocation5 + $0x3e0] sm:$0xff] %v1171_v1  ;;  %v668_v13 = vadd.f32 %v156_v63, %v156_v63  ;;  %v160_v15 = vld [vmem:[#allocation2 + $0x448] sm:$0xff]  ;;  %v161_v16 = vld [vmem:[#allocation2 + $0x450] sm:$0xff]  ;;  %v1175_v17 = vmax.f32 %v663_v6, 0.0  ;;  %v1176_v18 = vmax.f32 %v664_v7, 0.0  ;;  %v669_v20 = vadd.f32 %v157_v4, %v157_v4 }
  0x52   :  { %1684 = vst [vmem:[#allocation5 + $0x3e8] sm:$0xff] %v1172_v2  ;;  %1685 = vst [vmem:[#allocation5 + $0x3f0] sm:$0xff] %v1173_v5  ;;  %v1177_v19 = vmax.f32 %v665_v8, 0.0  ;;  %v162_v21 = vld [vmem:[#allocation2 + $0x458] sm:$0xff]  ;;  %v163_v22 = vld [vmem:[#allocation2 + $0x460] sm:$0xff]  ;;  %v1178_v24 = vmax.f32 %v666_v11, 0.0  ;;  %v670_v27 = vadd.f32 %v158_v9, %v158_v9  ;;  %v671_v30 = vadd.f32 %v159_v14, %v159_v14 }
  0x53   :  { %v164_v23 = vld [vmem:[#allocation2 + $0x468] sm:$0xff]  ;;  %1686 = vst [vmem:[#allocation5 + $0x3f8] sm:$0xff] %v1174_v10  ;;  %v1179_v25 = vmax.f32 %v667_v12, 0.0  ;;  %v1180_v26 = vmax.f32 %v668_v13, 0.0  ;;  %v165_v28 = vld [vmem:[#allocation2 + $0x470] sm:$0xff]  ;;  %1687 = vst [vmem:[#allocation5 + $0x400] sm:$0xff] %v1175_v17  ;;  %v672_v31 = vadd.f32 %v160_v15, %v160_v15  ;;  %v673_v32 = vadd.f32 %v161_v16, %v161_v16 }
  0x54   :  { %1688 = vst [vmem:[#allocation5 + $0x408] sm:$0xff] %v1176_v18  ;;  %1689 = vst [vmem:[#allocation5 + $0x410] sm:$0xff] %v1177_v19  ;;  %v1181_v29 = vmax.f32 %v669_v20, 0.0  ;;  %v166_v33 = vld [vmem:[#allocation2 + $0x478] sm:$0xff]  ;;  %v1182_v34 = vmax.f32 %v670_v27, 0.0  ;;  %v674_v35 = vadd.f32 %v162_v21, %v162_v21  ;;  %v675_v36 = vadd.f32 %v163_v22, %v163_v22  ;;  %v167_v38 = vld [vmem:[#allocation2 + $0x480] sm:$0xff] }
  0x55   :  { %1690 = vst [vmem:[#allocation5 + $0x418] sm:$0xff] %v1178_v24  ;;  %1691 = vst [vmem:[#allocation5 + $0x420] sm:$0xff] %v1179_v25  ;;  %v676_v37 = vadd.f32 %v164_v23, %v164_v23  ;;  %v168_v39 = vld [vmem:[#allocation2 + $0x488] sm:$0xff]  ;;  %v169_v40 = vld [vmem:[#allocation2 + $0x490] sm:$0xff]  ;;  %v1183_v41 = vmax.f32 %v671_v30, 0.0  ;;  %v1184_v42 = vmax.f32 %v672_v31, 0.0  ;;  %v677_v44 = vadd.f32 %v165_v28, %v165_v28 }
  0x56   :  { %1692 = vst [vmem:[#allocation5 + $0x428] sm:$0xff] %v1180_v26  ;;  %1693 = vst [vmem:[#allocation5 + $0x430] sm:$0xff] %v1181_v29  ;;  %v1185_v43 = vmax.f32 %v673_v32, 0.0  ;;  %v170_v45 = vld [vmem:[#allocation2 + $0x498] sm:$0xff]  ;;  %v171_v46 = vld [vmem:[#allocation2 + $0x4a0] sm:$0xff]  ;;  %v1186_v48 = vmax.f32 %v674_v35, 0.0  ;;  %v678_v51 = vadd.f32 %v166_v33, %v166_v33  ;;  %v679_v54 = vadd.f32 %v167_v38, %v167_v38 }
  0x57   :  { %v172_v47 = vld [vmem:[#allocation2 + $0x4a8] sm:$0xff]  ;;  %1694 = vst [vmem:[#allocation5 + $0x438] sm:$0xff] %v1182_v34  ;;  %v1187_v49 = vmax.f32 %v675_v36, 0.0  ;;  %v1188_v50 = vmax.f32 %v676_v37, 0.0  ;;  %v173_v52 = vld [vmem:[#allocation2 + $0x4b0] sm:$0xff]  ;;  %1695 = vst [vmem:[#allocation5 + $0x440] sm:$0xff] %v1183_v41  ;;  %v680_v55 = vadd.f32 %v168_v39, %v168_v39  ;;  %v681_v56 = vadd.f32 %v169_v40, %v169_v40 }
  0x58   :  { %1696 = vst [vmem:[#allocation5 + $0x448] sm:$0xff] %v1184_v42  ;;  %1697 = vst [vmem:[#allocation5 + $0x450] sm:$0xff] %v1185_v43  ;;  %v1189_v53 = vmax.f32 %v677_v44, 0.0  ;;  %v174_v57 = vld [vmem:[#allocation2 + $0x4b8] sm:$0xff]  ;;  %v1190_v58 = vmax.f32 %v678_v51, 0.0  ;;  %v682_v59 = vadd.f32 %v170_v45, %v170_v45  ;;  %v683_v60 = vadd.f32 %v171_v46, %v171_v46  ;;  %v175_v62 = vld [vmem:[#allocation2 + $0x4c0] sm:$0xff] }
  0x59   :  { %1698 = vst [vmem:[#allocation5 + $0x458] sm:$0xff] %v1186_v48  ;;  %1699 = vst [vmem:[#allocation5 + $0x460] sm:$0xff] %v1187_v49  ;;  %v684_v61 = vadd.f32 %v172_v47, %v172_v47  ;;  %v176_v63 = vld [vmem:[#allocation2 + $0x4c8] sm:$0xff]  ;;  %v177_v0 = vld [vmem:[#allocation2 + $0x4d0] sm:$0xff]  ;;  %v1191_v1 = vmax.f32 %v679_v54, 0.0  ;;  %v1192_v2 = vmax.f32 %v680_v55, 0.0  ;;  %v685_v4 = vadd.f32 %v173_v52, %v173_v52 }
  0x5a   :  { %1700 = vst [vmem:[#allocation5 + $0x468] sm:$0xff] %v1188_v50  ;;  %1701 = vst [vmem:[#allocation5 + $0x470] sm:$0xff] %v1189_v53  ;;  %v1193_v3 = vmax.f32 %v681_v56, 0.0  ;;  %v178_v5 = vld [vmem:[#allocation2 + $0x4d8] sm:$0xff]  ;;  %v179_v6 = vld [vmem:[#allocation2 + $0x4e0] sm:$0xff]  ;;  %v1194_v8 = vmax.f32 %v682_v59, 0.0  ;;  %v686_v11 = vadd.f32 %v174_v57, %v174_v57  ;;  %v687_v14 = vadd.f32 %v175_v62, %v175_v62 }
  0x5b   :  { %v180_v7 = vld [vmem:[#allocation2 + $0x4e8] sm:$0xff]  ;;  %1702 = vst [vmem:[#allocation5 + $0x478] sm:$0xff] %v1190_v58  ;;  %v1195_v9 = vmax.f32 %v683_v60, 0.0  ;;  %v1196_v10 = vmax.f32 %v684_v61, 0.0  ;;  %v181_v12 = vld [vmem:[#allocation2 + $0x4f0] sm:$0xff]  ;;  %1703 = vst [vmem:[#allocation5 + $0x480] sm:$0xff] %v1191_v1  ;;  %v688_v15 = vadd.f32 %v176_v63, %v176_v63  ;;  %v689_v16 = vadd.f32 %v177_v0, %v177_v0 }
  0x5c   :  { %1704 = vst [vmem:[#allocation5 + $0x488] sm:$0xff] %v1192_v2  ;;  %1705 = vst [vmem:[#allocation5 + $0x490] sm:$0xff] %v1193_v3  ;;  %v1197_v13 = vmax.f32 %v685_v4, 0.0  ;;  %v182_v17 = vld [vmem:[#allocation2 + $0x4f8] sm:$0xff]  ;;  %v1198_v18 = vmax.f32 %v686_v11, 0.0  ;;  %v690_v19 = vadd.f32 %v178_v5, %v178_v5  ;;  %v691_v20 = vadd.f32 %v179_v6, %v179_v6  ;;  %v183_v22 = vld [vmem:[#allocation2 + $0x500] sm:$0xff] }
  0x5d   :  { %1706 = vst [vmem:[#allocation5 + $0x498] sm:$0xff] %v1194_v8  ;;  %1707 = vst [vmem:[#allocation5 + $0x4a0] sm:$0xff] %v1195_v9  ;;  %v692_v21 = vadd.f32 %v180_v7, %v180_v7  ;;  %v184_v23 = vld [vmem:[#allocation2 + $0x508] sm:$0xff]  ;;  %v185_v24 = vld [vmem:[#allocation2 + $0x510] sm:$0xff]  ;;  %v1199_v25 = vmax.f32 %v687_v14, 0.0  ;;  %v1200_v26 = vmax.f32 %v688_v15, 0.0  ;;  %v693_v28 = vadd.f32 %v181_v12, %v181_v12 }
  0x5e   :  { %1708 = vst [vmem:[#allocation5 + $0x4a8] sm:$0xff] %v1196_v10  ;;  %1709 = vst [vmem:[#allocation5 + $0x4b0] sm:$0xff] %v1197_v13  ;;  %v1201_v27 = vmax.f32 %v689_v16, 0.0  ;;  %v186_v29 = vld [vmem:[#allocation2 + $0x518] sm:$0xff]  ;;  %v187_v30 = vld [vmem:[#allocation2 + $0x520] sm:$0xff]  ;;  %v1202_v32 = vmax.f32 %v690_v19, 0.0  ;;  %v694_v35 = vadd.f32 %v182_v17, %v182_v17  ;;  %v695_v38 = vadd.f32 %v183_v22, %v183_v22 }
  0x5f   :  { %v188_v31 = vld [vmem:[#allocation2 + $0x528] sm:$0xff]  ;;  %1710 = vst [vmem:[#allocation5 + $0x4b8] sm:$0xff] %v1198_v18  ;;  %v1203_v33 = vmax.f32 %v691_v20, 0.0  ;;  %v1204_v34 = vmax.f32 %v692_v21, 0.0  ;;  %v189_v36 = vld [vmem:[#allocation2 + $0x530] sm:$0xff]  ;;  %1711 = vst [vmem:[#allocation5 + $0x4c0] sm:$0xff] %v1199_v25  ;;  %v696_v39 = vadd.f32 %v184_v23, %v184_v23  ;;  %v697_v40 = vadd.f32 %v185_v24, %v185_v24 }
  0x60   :  { %1712 = vst [vmem:[#allocation5 + $0x4c8] sm:$0xff] %v1200_v26  ;;  %1713 = vst [vmem:[#allocation5 + $0x4d0] sm:$0xff] %v1201_v27  ;;  %v1205_v37 = vmax.f32 %v693_v28, 0.0  ;;  %v190_v41 = vld [vmem:[#allocation2 + $0x538] sm:$0xff]  ;;  %v1206_v42 = vmax.f32 %v694_v35, 0.0  ;;  %v698_v43 = vadd.f32 %v186_v29, %v186_v29  ;;  %v699_v44 = vadd.f32 %v187_v30, %v187_v30  ;;  %v191_v46 = vld [vmem:[#allocation2 + $0x540] sm:$0xff] }
  0x61   :  { %1714 = vst [vmem:[#allocation5 + $0x4d8] sm:$0xff] %v1202_v32  ;;  %1715 = vst [vmem:[#allocation5 + $0x4e0] sm:$0xff] %v1203_v33  ;;  %v700_v45 = vadd.f32 %v188_v31, %v188_v31  ;;  %v192_v47 = vld [vmem:[#allocation2 + $0x548] sm:$0xff]  ;;  %v193_v48 = vld [vmem:[#allocation2 + $0x550] sm:$0xff]  ;;  %v1207_v49 = vmax.f32 %v695_v38, 0.0  ;;  %v1208_v50 = vmax.f32 %v696_v39, 0.0  ;;  %v701_v52 = vadd.f32 %v189_v36, %v189_v36 }
  0x62   :  { %1716 = vst [vmem:[#allocation5 + $0x4e8] sm:$0xff] %v1204_v34  ;;  %1717 = vst [vmem:[#allocation5 + $0x4f0] sm:$0xff] %v1205_v37  ;;  %v1209_v51 = vmax.f32 %v697_v40, 0.0  ;;  %v194_v53 = vld [vmem:[#allocation2 + $0x558] sm:$0xff]  ;;  %v195_v54 = vld [vmem:[#allocation2 + $0x560] sm:$0xff]  ;;  %v1210_v56 = vmax.f32 %v698_v43, 0.0  ;;  %v702_v59 = vadd.f32 %v190_v41, %v190_v41  ;;  %v703_v62 = vadd.f32 %v191_v46, %v191_v46 }
  0x63   :  { %v196_v55 = vld [vmem:[#allocation2 + $0x568] sm:$0xff]  ;;  %1718 = vst [vmem:[#allocation5 + $0x4f8] sm:$0xff] %v1206_v42  ;;  %v1211_v57 = vmax.f32 %v699_v44, 0.0  ;;  %v1212_v58 = vmax.f32 %v700_v45, 0.0  ;;  %v197_v60 = vld [vmem:[#allocation2 + $0x570] sm:$0xff]  ;;  %1719 = vst [vmem:[#allocation5 + $0x500] sm:$0xff] %v1207_v49  ;;  %v704_v63 = vadd.f32 %v192_v47, %v192_v47  ;;  %v705_v0 = vadd.f32 %v193_v48, %v193_v48 }
  0x64   :  { %1720 = vst [vmem:[#allocation5 + $0x508] sm:$0xff] %v1208_v50  ;;  %1721 = vst [vmem:[#allocation5 + $0x510] sm:$0xff] %v1209_v51  ;;  %v1213_v61 = vmax.f32 %v701_v52, 0.0  ;;  %v198_v1 = vld [vmem:[#allocation2 + $0x578] sm:$0xff]  ;;  %v1214_v2 = vmax.f32 %v702_v59, 0.0  ;;  %v706_v3 = vadd.f32 %v194_v53, %v194_v53  ;;  %v707_v4 = vadd.f32 %v195_v54, %v195_v54  ;;  %v199_v6 = vld [vmem:[#allocation2 + $0x580] sm:$0xff] }
  0x65   :  { %1722 = vst [vmem:[#allocation5 + $0x518] sm:$0xff] %v1210_v56  ;;  %1723 = vst [vmem:[#allocation5 + $0x520] sm:$0xff] %v1211_v57  ;;  %v708_v5 = vadd.f32 %v196_v55, %v196_v55  ;;  %v200_v7 = vld [vmem:[#allocation2 + $0x588] sm:$0xff]  ;;  %v201_v8 = vld [vmem:[#allocation2 + $0x590] sm:$0xff]  ;;  %v1215_v9 = vmax.f32 %v703_v62, 0.0  ;;  %v1216_v10 = vmax.f32 %v704_v63, 0.0  ;;  %v709_v12 = vadd.f32 %v197_v60, %v197_v60 }
  0x66   :  { %1724 = vst [vmem:[#allocation5 + $0x528] sm:$0xff] %v1212_v58  ;;  %1725 = vst [vmem:[#allocation5 + $0x530] sm:$0xff] %v1213_v61  ;;  %v1217_v11 = vmax.f32 %v705_v0, 0.0  ;;  %v202_v13 = vld [vmem:[#allocation2 + $0x598] sm:$0xff]  ;;  %v203_v14 = vld [vmem:[#allocation2 + $0x5a0] sm:$0xff]  ;;  %v1218_v16 = vmax.f32 %v706_v3, 0.0  ;;  %v710_v19 = vadd.f32 %v198_v1, %v198_v1  ;;  %v711_v22 = vadd.f32 %v199_v6, %v199_v6 }
  0x67   :  { %v204_v15 = vld [vmem:[#allocation2 + $0x5a8] sm:$0xff]  ;;  %1726 = vst [vmem:[#allocation5 + $0x538] sm:$0xff] %v1214_v2  ;;  %v1219_v17 = vmax.f32 %v707_v4, 0.0  ;;  %v1220_v18 = vmax.f32 %v708_v5, 0.0  ;;  %v205_v20 = vld [vmem:[#allocation2 + $0x5b0] sm:$0xff]  ;;  %1727 = vst [vmem:[#allocation5 + $0x540] sm:$0xff] %v1215_v9  ;;  %v712_v23 = vadd.f32 %v200_v7, %v200_v7  ;;  %v713_v24 = vadd.f32 %v201_v8, %v201_v8 }
  0x68   :  { %1728 = vst [vmem:[#allocation5 + $0x548] sm:$0xff] %v1216_v10  ;;  %1729 = vst [vmem:[#allocation5 + $0x550] sm:$0xff] %v1217_v11  ;;  %v1221_v21 = vmax.f32 %v709_v12, 0.0  ;;  %v206_v25 = vld [vmem:[#allocation2 + $0x5b8] sm:$0xff]  ;;  %v1222_v26 = vmax.f32 %v710_v19, 0.0  ;;  %v714_v27 = vadd.f32 %v202_v13, %v202_v13  ;;  %v715_v28 = vadd.f32 %v203_v14, %v203_v14  ;;  %v207_v30 = vld [vmem:[#allocation2 + $0x5c0] sm:$0xff] }
  0x69   :  { %1730 = vst [vmem:[#allocation5 + $0x558] sm:$0xff] %v1218_v16  ;;  %1731 = vst [vmem:[#allocation5 + $0x560] sm:$0xff] %v1219_v17  ;;  %v716_v29 = vadd.f32 %v204_v15, %v204_v15  ;;  %v208_v31 = vld [vmem:[#allocation2 + $0x5c8] sm:$0xff]  ;;  %v209_v32 = vld [vmem:[#allocation2 + $0x5d0] sm:$0xff]  ;;  %v1223_v33 = vmax.f32 %v711_v22, 0.0  ;;  %v1224_v34 = vmax.f32 %v712_v23, 0.0  ;;  %v717_v36 = vadd.f32 %v205_v20, %v205_v20 }
  0x6a   :  { %1732 = vst [vmem:[#allocation5 + $0x568] sm:$0xff] %v1220_v18  ;;  %1733 = vst [vmem:[#allocation5 + $0x570] sm:$0xff] %v1221_v21  ;;  %v1225_v35 = vmax.f32 %v713_v24, 0.0  ;;  %v210_v37 = vld [vmem:[#allocation2 + $0x5d8] sm:$0xff]  ;;  %v211_v38 = vld [vmem:[#allocation2 + $0x5e0] sm:$0xff]  ;;  %v1226_v40 = vmax.f32 %v714_v27, 0.0  ;;  %v718_v43 = vadd.f32 %v206_v25, %v206_v25  ;;  %v719_v46 = vadd.f32 %v207_v30, %v207_v30 }
  0x6b   :  { %v212_v39 = vld [vmem:[#allocation2 + $0x5e8] sm:$0xff]  ;;  %1734 = vst [vmem:[#allocation5 + $0x578] sm:$0xff] %v1222_v26  ;;  %v1227_v41 = vmax.f32 %v715_v28, 0.0  ;;  %v1228_v42 = vmax.f32 %v716_v29, 0.0  ;;  %v213_v44 = vld [vmem:[#allocation2 + $0x5f0] sm:$0xff]  ;;  %1735 = vst [vmem:[#allocation5 + $0x580] sm:$0xff] %v1223_v33  ;;  %v720_v47 = vadd.f32 %v208_v31, %v208_v31  ;;  %v721_v48 = vadd.f32 %v209_v32, %v209_v32 }
  0x6c   :  { %1736 = vst [vmem:[#allocation5 + $0x588] sm:$0xff] %v1224_v34  ;;  %1737 = vst [vmem:[#allocation5 + $0x590] sm:$0xff] %v1225_v35  ;;  %v1229_v45 = vmax.f32 %v717_v36, 0.0  ;;  %v214_v49 = vld [vmem:[#allocation2 + $0x5f8] sm:$0xff]  ;;  %v1230_v50 = vmax.f32 %v718_v43, 0.0  ;;  %v722_v51 = vadd.f32 %v210_v37, %v210_v37  ;;  %v723_v52 = vadd.f32 %v211_v38, %v211_v38  ;;  %v215_v54 = vld [vmem:[#allocation2 + $0x600] sm:$0xff] }
  0x6d   :  { %1738 = vst [vmem:[#allocation5 + $0x598] sm:$0xff] %v1226_v40  ;;  %1739 = vst [vmem:[#allocation5 + $0x5a0] sm:$0xff] %v1227_v41  ;;  %v724_v53 = vadd.f32 %v212_v39, %v212_v39  ;;  %v216_v55 = vld [vmem:[#allocation2 + $0x608] sm:$0xff]  ;;  %v217_v56 = vld [vmem:[#allocation2 + $0x610] sm:$0xff]  ;;  %v1231_v57 = vmax.f32 %v719_v46, 0.0  ;;  %v1232_v58 = vmax.f32 %v720_v47, 0.0  ;;  %v725_v60 = vadd.f32 %v213_v44, %v213_v44 }
  0x6e   :  { %1740 = vst [vmem:[#allocation5 + $0x5a8] sm:$0xff] %v1228_v42  ;;  %1741 = vst [vmem:[#allocation5 + $0x5b0] sm:$0xff] %v1229_v45  ;;  %v1233_v59 = vmax.f32 %v721_v48, 0.0  ;;  %v218_v61 = vld [vmem:[#allocation2 + $0x618] sm:$0xff]  ;;  %v219_v62 = vld [vmem:[#allocation2 + $0x620] sm:$0xff]  ;;  %v1234_v0 = vmax.f32 %v722_v51, 0.0  ;;  %v726_v3 = vadd.f32 %v214_v49, %v214_v49  ;;  %v727_v6 = vadd.f32 %v215_v54, %v215_v54 }
  0x6f   :  { %v220_v63 = vld [vmem:[#allocation2 + $0x628] sm:$0xff]  ;;  %1742 = vst [vmem:[#allocation5 + $0x5b8] sm:$0xff] %v1230_v50  ;;  %v1235_v1 = vmax.f32 %v723_v52, 0.0  ;;  %v1236_v2 = vmax.f32 %v724_v53, 0.0  ;;  %v221_v4 = vld [vmem:[#allocation2 + $0x630] sm:$0xff]  ;;  %1743 = vst [vmem:[#allocation5 + $0x5c0] sm:$0xff] %v1231_v57  ;;  %v728_v7 = vadd.f32 %v216_v55, %v216_v55  ;;  %v729_v8 = vadd.f32 %v217_v56, %v217_v56 }
  0x70   :  { %1744 = vst [vmem:[#allocation5 + $0x5c8] sm:$0xff] %v1232_v58  ;;  %1745 = vst [vmem:[#allocation5 + $0x5d0] sm:$0xff] %v1233_v59  ;;  %v1237_v5 = vmax.f32 %v725_v60, 0.0  ;;  %v222_v9 = vld [vmem:[#allocation2 + $0x638] sm:$0xff]  ;;  %v1238_v10 = vmax.f32 %v726_v3, 0.0  ;;  %v730_v11 = vadd.f32 %v218_v61, %v218_v61  ;;  %v731_v12 = vadd.f32 %v219_v62, %v219_v62  ;;  %v223_v14 = vld [vmem:[#allocation2 + $0x640] sm:$0xff] }
  0x71   :  { %1746 = vst [vmem:[#allocation5 + $0x5d8] sm:$0xff] %v1234_v0  ;;  %1747 = vst [vmem:[#allocation5 + $0x5e0] sm:$0xff] %v1235_v1  ;;  %v732_v13 = vadd.f32 %v220_v63, %v220_v63  ;;  %v224_v15 = vld [vmem:[#allocation2 + $0x648] sm:$0xff]  ;;  %v225_v16 = vld [vmem:[#allocation2 + $0x650] sm:$0xff]  ;;  %v1239_v17 = vmax.f32 %v727_v6, 0.0  ;;  %v1240_v18 = vmax.f32 %v728_v7, 0.0  ;;  %v733_v20 = vadd.f32 %v221_v4, %v221_v4 }
  0x72   :  { %1748 = vst [vmem:[#allocation5 + $0x5e8] sm:$0xff] %v1236_v2  ;;  %1749 = vst [vmem:[#allocation5 + $0x5f0] sm:$0xff] %v1237_v5  ;;  %v1241_v19 = vmax.f32 %v729_v8, 0.0  ;;  %v226_v21 = vld [vmem:[#allocation2 + $0x658] sm:$0xff]  ;;  %v227_v22 = vld [vmem:[#allocation2 + $0x660] sm:$0xff]  ;;  %v1242_v24 = vmax.f32 %v730_v11, 0.0  ;;  %v734_v27 = vadd.f32 %v222_v9, %v222_v9  ;;  %v735_v30 = vadd.f32 %v223_v14, %v223_v14 }
  0x73   :  { %v228_v23 = vld [vmem:[#allocation2 + $0x668] sm:$0xff]  ;;  %1750 = vst [vmem:[#allocation5 + $0x5f8] sm:$0xff] %v1238_v10  ;;  %v1243_v25 = vmax.f32 %v731_v12, 0.0  ;;  %v1244_v26 = vmax.f32 %v732_v13, 0.0  ;;  %v229_v28 = vld [vmem:[#allocation2 + $0x670] sm:$0xff]  ;;  %1751 = vst [vmem:[#allocation5 + $0x600] sm:$0xff] %v1239_v17  ;;  %v736_v31 = vadd.f32 %v224_v15, %v224_v15  ;;  %v737_v32 = vadd.f32 %v225_v16, %v225_v16 }
  0x74   :  { %1752 = vst [vmem:[#allocation5 + $0x608] sm:$0xff] %v1240_v18  ;;  %1753 = vst [vmem:[#allocation5 + $0x610] sm:$0xff] %v1241_v19  ;;  %v1245_v29 = vmax.f32 %v733_v20, 0.0  ;;  %v230_v33 = vld [vmem:[#allocation2 + $0x678] sm:$0xff]  ;;  %v1246_v34 = vmax.f32 %v734_v27, 0.0  ;;  %v738_v35 = vadd.f32 %v226_v21, %v226_v21  ;;  %v739_v36 = vadd.f32 %v227_v22, %v227_v22  ;;  %v231_v38 = vld [vmem:[#allocation2 + $0x680] sm:$0xff] }
  0x75   :  { %1754 = vst [vmem:[#allocation5 + $0x618] sm:$0xff] %v1242_v24  ;;  %1755 = vst [vmem:[#allocation5 + $0x620] sm:$0xff] %v1243_v25  ;;  %v740_v37 = vadd.f32 %v228_v23, %v228_v23  ;;  %v232_v39 = vld [vmem:[#allocation2 + $0x688] sm:$0xff]  ;;  %v233_v40 = vld [vmem:[#allocation2 + $0x690] sm:$0xff]  ;;  %v1247_v41 = vmax.f32 %v735_v30, 0.0  ;;  %v1248_v42 = vmax.f32 %v736_v31, 0.0  ;;  %v741_v44 = vadd.f32 %v229_v28, %v229_v28 }
  0x76   :  { %1756 = vst [vmem:[#allocation5 + $0x628] sm:$0xff] %v1244_v26  ;;  %1757 = vst [vmem:[#allocation5 + $0x630] sm:$0xff] %v1245_v29  ;;  %v1249_v43 = vmax.f32 %v737_v32, 0.0  ;;  %v234_v45 = vld [vmem:[#allocation2 + $0x698] sm:$0xff]  ;;  %v235_v46 = vld [vmem:[#allocation2 + $0x6a0] sm:$0xff]  ;;  %v1250_v48 = vmax.f32 %v738_v35, 0.0  ;;  %v742_v51 = vadd.f32 %v230_v33, %v230_v33  ;;  %v743_v54 = vadd.f32 %v231_v38, %v231_v38 }
  0x77   :  { %v236_v47 = vld [vmem:[#allocation2 + $0x6a8] sm:$0xff]  ;;  %1758 = vst [vmem:[#allocation5 + $0x638] sm:$0xff] %v1246_v34  ;;  %v1251_v49 = vmax.f32 %v739_v36, 0.0  ;;  %v1252_v50 = vmax.f32 %v740_v37, 0.0  ;;  %v237_v52 = vld [vmem:[#allocation2 + $0x6b0] sm:$0xff]  ;;  %1759 = vst [vmem:[#allocation5 + $0x640] sm:$0xff] %v1247_v41  ;;  %v744_v55 = vadd.f32 %v232_v39, %v232_v39  ;;  %v745_v56 = vadd.f32 %v233_v40, %v233_v40 }
  0x78   :  { %1760 = vst [vmem:[#allocation5 + $0x648] sm:$0xff] %v1248_v42  ;;  %1761 = vst [vmem:[#allocation5 + $0x650] sm:$0xff] %v1249_v43  ;;  %v1253_v53 = vmax.f32 %v741_v44, 0.0  ;;  %v238_v57 = vld [vmem:[#allocation2 + $0x6b8] sm:$0xff]  ;;  %v1254_v58 = vmax.f32 %v742_v51, 0.0  ;;  %v746_v59 = vadd.f32 %v234_v45, %v234_v45  ;;  %v747_v60 = vadd.f32 %v235_v46, %v235_v46  ;;  %v239_v62 = vld [vmem:[#allocation2 + $0x6c0] sm:$0xff] }
  0x79   :  { %1762 = vst [vmem:[#allocation5 + $0x658] sm:$0xff] %v1250_v48  ;;  %1763 = vst [vmem:[#allocation5 + $0x660] sm:$0xff] %v1251_v49  ;;  %v748_v61 = vadd.f32 %v236_v47, %v236_v47  ;;  %v240_v63 = vld [vmem:[#allocation2 + $0x6c8] sm:$0xff]  ;;  %v241_v0 = vld [vmem:[#allocation2 + $0x6d0] sm:$0xff]  ;;  %v1255_v1 = vmax.f32 %v743_v54, 0.0  ;;  %v1256_v2 = vmax.f32 %v744_v55, 0.0  ;;  %v749_v4 = vadd.f32 %v237_v52, %v237_v52 }
  0x7a   :  { %1764 = vst [vmem:[#allocation5 + $0x668] sm:$0xff] %v1252_v50  ;;  %1765 = vst [vmem:[#allocation5 + $0x670] sm:$0xff] %v1253_v53  ;;  %v1257_v3 = vmax.f32 %v745_v56, 0.0  ;;  %v242_v5 = vld [vmem:[#allocation2 + $0x6d8] sm:$0xff]  ;;  %v243_v6 = vld [vmem:[#allocation2 + $0x6e0] sm:$0xff]  ;;  %v1258_v8 = vmax.f32 %v746_v59, 0.0  ;;  %v750_v11 = vadd.f32 %v238_v57, %v238_v57  ;;  %v751_v14 = vadd.f32 %v239_v62, %v239_v62 }
  0x7b   :  { %v244_v7 = vld [vmem:[#allocation2 + $0x6e8] sm:$0xff]  ;;  %1766 = vst [vmem:[#allocation5 + $0x678] sm:$0xff] %v1254_v58  ;;  %v1259_v9 = vmax.f32 %v747_v60, 0.0  ;;  %v1260_v10 = vmax.f32 %v748_v61, 0.0  ;;  %v245_v12 = vld [vmem:[#allocation2 + $0x6f0] sm:$0xff]  ;;  %1767 = vst [vmem:[#allocation5 + $0x680] sm:$0xff] %v1255_v1  ;;  %v752_v15 = vadd.f32 %v240_v63, %v240_v63  ;;  %v753_v16 = vadd.f32 %v241_v0, %v241_v0 }
  0x7c   :  { %1768 = vst [vmem:[#allocation5 + $0x688] sm:$0xff] %v1256_v2  ;;  %1769 = vst [vmem:[#allocation5 + $0x690] sm:$0xff] %v1257_v3  ;;  %v1261_v13 = vmax.f32 %v749_v4, 0.0  ;;  %v246_v17 = vld [vmem:[#allocation2 + $0x6f8] sm:$0xff]  ;;  %v1262_v18 = vmax.f32 %v750_v11, 0.0  ;;  %v754_v19 = vadd.f32 %v242_v5, %v242_v5  ;;  %v755_v20 = vadd.f32 %v243_v6, %v243_v6  ;;  %v247_v22 = vld [vmem:[#allocation2 + $0x700] sm:$0xff] }
  0x7d   :  { %1770 = vst [vmem:[#allocation5 + $0x698] sm:$0xff] %v1258_v8  ;;  %1771 = vst [vmem:[#allocation5 + $0x6a0] sm:$0xff] %v1259_v9  ;;  %v756_v21 = vadd.f32 %v244_v7, %v244_v7  ;;  %v248_v23 = vld [vmem:[#allocation2 + $0x708] sm:$0xff]  ;;  %v249_v24 = vld [vmem:[#allocation2 + $0x710] sm:$0xff]  ;;  %v1263_v25 = vmax.f32 %v751_v14, 0.0  ;;  %v1264_v26 = vmax.f32 %v752_v15, 0.0  ;;  %v757_v28 = vadd.f32 %v245_v12, %v245_v12 }
  0x7e   :  { %1772 = vst [vmem:[#allocation5 + $0x6a8] sm:$0xff] %v1260_v10  ;;  %1773 = vst [vmem:[#allocation5 + $0x6b0] sm:$0xff] %v1261_v13  ;;  %v1265_v27 = vmax.f32 %v753_v16, 0.0  ;;  %v250_v29 = vld [vmem:[#allocation2 + $0x718] sm:$0xff]  ;;  %v251_v30 = vld [vmem:[#allocation2 + $0x720] sm:$0xff]  ;;  %v1266_v32 = vmax.f32 %v754_v19, 0.0  ;;  %v758_v35 = vadd.f32 %v246_v17, %v246_v17  ;;  %v759_v38 = vadd.f32 %v247_v22, %v247_v22 }
  0x7f   :  { %v252_v31 = vld [vmem:[#allocation2 + $0x728] sm:$0xff]  ;;  %1774 = vst [vmem:[#allocation5 + $0x6b8] sm:$0xff] %v1262_v18  ;;  %v1267_v33 = vmax.f32 %v755_v20, 0.0  ;;  %v1268_v34 = vmax.f32 %v756_v21, 0.0  ;;  %v253_v36 = vld [vmem:[#allocation2 + $0x730] sm:$0xff]  ;;  %1775 = vst [vmem:[#allocation5 + $0x6c0] sm:$0xff] %v1263_v25  ;;  %v760_v39 = vadd.f32 %v248_v23, %v248_v23  ;;  %v761_v40 = vadd.f32 %v249_v24, %v249_v24 }
  0x80   :  { %1776 = vst [vmem:[#allocation5 + $0x6c8] sm:$0xff] %v1264_v26  ;;  %1777 = vst [vmem:[#allocation5 + $0x6d0] sm:$0xff] %v1265_v27  ;;  %v1269_v37 = vmax.f32 %v757_v28, 0.0  ;;  %v254_v41 = vld [vmem:[#allocation2 + $0x738] sm:$0xff]  ;;  %v1270_v42 = vmax.f32 %v758_v35, 0.0  ;;  %v762_v43 = vadd.f32 %v250_v29, %v250_v29  ;;  %v763_v44 = vadd.f32 %v251_v30, %v251_v30  ;;  %v255_v46 = vld [vmem:[#allocation2 + $0x740] sm:$0xff] }
  0x81   :  { %1778 = vst [vmem:[#allocation5 + $0x6d8] sm:$0xff] %v1266_v32  ;;  %1779 = vst [vmem:[#allocation5 + $0x6e0] sm:$0xff] %v1267_v33  ;;  %v764_v45 = vadd.f32 %v252_v31, %v252_v31  ;;  %v256_v47 = vld [vmem:[#allocation2 + $0x748] sm:$0xff]  ;;  %v257_v48 = vld [vmem:[#allocation2 + $0x750] sm:$0xff]  ;;  %v1271_v49 = vmax.f32 %v759_v38, 0.0  ;;  %v1272_v50 = vmax.f32 %v760_v39, 0.0  ;;  %v765_v52 = vadd.f32 %v253_v36, %v253_v36 }
  0x82   :  { %1780 = vst [vmem:[#allocation5 + $0x6e8] sm:$0xff] %v1268_v34  ;;  %1781 = vst [vmem:[#allocation5 + $0x6f0] sm:$0xff] %v1269_v37  ;;  %v1273_v51 = vmax.f32 %v761_v40, 0.0  ;;  %v258_v53 = vld [vmem:[#allocation2 + $0x758] sm:$0xff]  ;;  %v259_v54 = vld [vmem:[#allocation2 + $0x760] sm:$0xff]  ;;  %v1274_v56 = vmax.f32 %v762_v43, 0.0  ;;  %v766_v59 = vadd.f32 %v254_v41, %v254_v41  ;;  %v767_v62 = vadd.f32 %v255_v46, %v255_v46 }
  0x83   :  { %v260_v55 = vld [vmem:[#allocation2 + $0x768] sm:$0xff]  ;;  %1782 = vst [vmem:[#allocation5 + $0x6f8] sm:$0xff] %v1270_v42  ;;  %v1275_v57 = vmax.f32 %v763_v44, 0.0  ;;  %v1276_v58 = vmax.f32 %v764_v45, 0.0  ;;  %v261_v60 = vld [vmem:[#allocation2 + $0x770] sm:$0xff]  ;;  %1783 = vst [vmem:[#allocation5 + $0x700] sm:$0xff] %v1271_v49  ;;  %v768_v63 = vadd.f32 %v256_v47, %v256_v47  ;;  %v769_v0 = vadd.f32 %v257_v48, %v257_v48 }
  0x84   :  { %1784 = vst [vmem:[#allocation5 + $0x708] sm:$0xff] %v1272_v50  ;;  %1785 = vst [vmem:[#allocation5 + $0x710] sm:$0xff] %v1273_v51  ;;  %v1277_v61 = vmax.f32 %v765_v52, 0.0  ;;  %v262_v1 = vld [vmem:[#allocation2 + $0x778] sm:$0xff]  ;;  %v1278_v2 = vmax.f32 %v766_v59, 0.0  ;;  %v770_v3 = vadd.f32 %v258_v53, %v258_v53  ;;  %v771_v4 = vadd.f32 %v259_v54, %v259_v54  ;;  %v263_v6 = vld [vmem:[#allocation2 + $0x780] sm:$0xff] }
  0x85   :  { %1786 = vst [vmem:[#allocation5 + $0x718] sm:$0xff] %v1274_v56  ;;  %1787 = vst [vmem:[#allocation5 + $0x720] sm:$0xff] %v1275_v57  ;;  %v772_v5 = vadd.f32 %v260_v55, %v260_v55  ;;  %v264_v7 = vld [vmem:[#allocation2 + $0x788] sm:$0xff]  ;;  %v265_v8 = vld [vmem:[#allocation2 + $0x790] sm:$0xff]  ;;  %v1279_v9 = vmax.f32 %v767_v62, 0.0  ;;  %v1280_v10 = vmax.f32 %v768_v63, 0.0  ;;  %v773_v12 = vadd.f32 %v261_v60, %v261_v60 }
  0x86   :  { %1788 = vst [vmem:[#allocation5 + $0x728] sm:$0xff] %v1276_v58  ;;  %1789 = vst [vmem:[#allocation5 + $0x730] sm:$0xff] %v1277_v61  ;;  %v1281_v11 = vmax.f32 %v769_v0, 0.0  ;;  %v266_v13 = vld [vmem:[#allocation2 + $0x798] sm:$0xff]  ;;  %v267_v14 = vld [vmem:[#allocation2 + $0x7a0] sm:$0xff]  ;;  %v1282_v16 = vmax.f32 %v770_v3, 0.0  ;;  %v774_v19 = vadd.f32 %v262_v1, %v262_v1  ;;  %v775_v22 = vadd.f32 %v263_v6, %v263_v6 }
  0x87   :  { %v268_v15 = vld [vmem:[#allocation2 + $0x7a8] sm:$0xff]  ;;  %1790 = vst [vmem:[#allocation5 + $0x738] sm:$0xff] %v1278_v2  ;;  %v1283_v17 = vmax.f32 %v771_v4, 0.0  ;;  %v1284_v18 = vmax.f32 %v772_v5, 0.0  ;;  %v269_v20 = vld [vmem:[#allocation2 + $0x7b0] sm:$0xff]  ;;  %1791 = vst [vmem:[#allocation5 + $0x740] sm:$0xff] %v1279_v9  ;;  %v776_v23 = vadd.f32 %v264_v7, %v264_v7  ;;  %v777_v24 = vadd.f32 %v265_v8, %v265_v8 }
  0x88   :  { %1792 = vst [vmem:[#allocation5 + $0x748] sm:$0xff] %v1280_v10  ;;  %1793 = vst [vmem:[#allocation5 + $0x750] sm:$0xff] %v1281_v11  ;;  %v1285_v21 = vmax.f32 %v773_v12, 0.0  ;;  %v270_v25 = vld [vmem:[#allocation2 + $0x7b8] sm:$0xff]  ;;  %v1286_v26 = vmax.f32 %v774_v19, 0.0  ;;  %v778_v27 = vadd.f32 %v266_v13, %v266_v13  ;;  %v779_v28 = vadd.f32 %v267_v14, %v267_v14  ;;  %v271_v30 = vld [vmem:[#allocation2 + $0x7c0] sm:$0xff] }
  0x89   :  { %1794 = vst [vmem:[#allocation5 + $0x758] sm:$0xff] %v1282_v16  ;;  %1795 = vst [vmem:[#allocation5 + $0x760] sm:$0xff] %v1283_v17  ;;  %v780_v29 = vadd.f32 %v268_v15, %v268_v15  ;;  %v272_v31 = vld [vmem:[#allocation2 + $0x7c8] sm:$0xff]  ;;  %v273_v32 = vld [vmem:[#allocation2 + $0x7d0] sm:$0xff]  ;;  %v1287_v33 = vmax.f32 %v775_v22, 0.0  ;;  %v1288_v34 = vmax.f32 %v776_v23, 0.0  ;;  %v781_v36 = vadd.f32 %v269_v20, %v269_v20 }
  0x8a   :  { %1796 = vst [vmem:[#allocation5 + $0x768] sm:$0xff] %v1284_v18  ;;  %1797 = vst [vmem:[#allocation5 + $0x770] sm:$0xff] %v1285_v21  ;;  %v1289_v35 = vmax.f32 %v777_v24, 0.0  ;;  %v274_v37 = vld [vmem:[#allocation2 + $0x7d8] sm:$0xff]  ;;  %v275_v38 = vld [vmem:[#allocation2 + $0x7e0] sm:$0xff]  ;;  %v1290_v40 = vmax.f32 %v778_v27, 0.0  ;;  %v782_v43 = vadd.f32 %v270_v25, %v270_v25  ;;  %v783_v46 = vadd.f32 %v271_v30, %v271_v30 }
  0x8b   :  { %v276_v39 = vld [vmem:[#allocation2 + $0x7e8] sm:$0xff]  ;;  %1798 = vst [vmem:[#allocation5 + $0x778] sm:$0xff] %v1286_v26  ;;  %v1291_v41 = vmax.f32 %v779_v28, 0.0  ;;  %v1292_v42 = vmax.f32 %v780_v29, 0.0  ;;  %v277_v44 = vld [vmem:[#allocation2 + $0x7f0] sm:$0xff]  ;;  %1799 = vst [vmem:[#allocation5 + $0x780] sm:$0xff] %v1287_v33  ;;  %v784_v47 = vadd.f32 %v272_v31, %v272_v31  ;;  %v785_v48 = vadd.f32 %v273_v32, %v273_v32 }
  0x8c   :  { %1800 = vst [vmem:[#allocation5 + $0x788] sm:$0xff] %v1288_v34  ;;  %1801 = vst [vmem:[#allocation5 + $0x790] sm:$0xff] %v1289_v35  ;;  %v1293_v45 = vmax.f32 %v781_v36, 0.0  ;;  %v278_v49 = vld [vmem:[#allocation2 + $0x7f8] sm:$0xff]  ;;  %v1294_v50 = vmax.f32 %v782_v43, 0.0  ;;  %v786_v51 = vadd.f32 %v274_v37, %v274_v37  ;;  %v787_v52 = vadd.f32 %v275_v38, %v275_v38  ;;  %v279_v54 = vld [vmem:[#allocation2 + $0x800] sm:$0xff] }
  0x8d   :  { %1802 = vst [vmem:[#allocation5 + $0x798] sm:$0xff] %v1290_v40  ;;  %1803 = vst [vmem:[#allocation5 + $0x7a0] sm:$0xff] %v1291_v41  ;;  %v788_v53 = vadd.f32 %v276_v39, %v276_v39  ;;  %v280_v55 = vld [vmem:[#allocation2 + $0x808] sm:$0xff]  ;;  %v281_v56 = vld [vmem:[#allocation2 + $0x810] sm:$0xff]  ;;  %v1295_v57 = vmax.f32 %v783_v46, 0.0  ;;  %v1296_v58 = vmax.f32 %v784_v47, 0.0  ;;  %v789_v60 = vadd.f32 %v277_v44, %v277_v44 }
  0x8e   :  { %1804 = vst [vmem:[#allocation5 + $0x7a8] sm:$0xff] %v1292_v42  ;;  %1805 = vst [vmem:[#allocation5 + $0x7b0] sm:$0xff] %v1293_v45  ;;  %v1297_v59 = vmax.f32 %v785_v48, 0.0  ;;  %v282_v61 = vld [vmem:[#allocation2 + $0x818] sm:$0xff]  ;;  %v283_v62 = vld [vmem:[#allocation2 + $0x820] sm:$0xff]  ;;  %v1298_v0 = vmax.f32 %v786_v51, 0.0  ;;  %v790_v3 = vadd.f32 %v278_v49, %v278_v49  ;;  %v791_v6 = vadd.f32 %v279_v54, %v279_v54 }
  0x8f   :  { %v284_v63 = vld [vmem:[#allocation2 + $0x828] sm:$0xff]  ;;  %1806 = vst [vmem:[#allocation5 + $0x7b8] sm:$0xff] %v1294_v50  ;;  %v1299_v1 = vmax.f32 %v787_v52, 0.0  ;;  %v1300_v2 = vmax.f32 %v788_v53, 0.0  ;;  %v285_v4 = vld [vmem:[#allocation2 + $0x830] sm:$0xff]  ;;  %1807 = vst [vmem:[#allocation5 + $0x7c0] sm:$0xff] %v1295_v57  ;;  %v792_v7 = vadd.f32 %v280_v55, %v280_v55  ;;  %v793_v8 = vadd.f32 %v281_v56, %v281_v56 }
  0x90   :  { %1808 = vst [vmem:[#allocation5 + $0x7c8] sm:$0xff] %v1296_v58  ;;  %1809 = vst [vmem:[#allocation5 + $0x7d0] sm:$0xff] %v1297_v59  ;;  %v1301_v5 = vmax.f32 %v789_v60, 0.0  ;;  %v286_v9 = vld [vmem:[#allocation2 + $0x838] sm:$0xff]  ;;  %v1302_v10 = vmax.f32 %v790_v3, 0.0  ;;  %v794_v11 = vadd.f32 %v282_v61, %v282_v61  ;;  %v795_v12 = vadd.f32 %v283_v62, %v283_v62  ;;  %v287_v14 = vld [vmem:[#allocation2 + $0x840] sm:$0xff] }
  0x91   :  { %1810 = vst [vmem:[#allocation5 + $0x7d8] sm:$0xff] %v1298_v0  ;;  %1811 = vst [vmem:[#allocation5 + $0x7e0] sm:$0xff] %v1299_v1  ;;  %v796_v13 = vadd.f32 %v284_v63, %v284_v63  ;;  %v288_v15 = vld [vmem:[#allocation2 + $0x848] sm:$0xff]  ;;  %v289_v16 = vld [vmem:[#allocation2 + $0x850] sm:$0xff]  ;;  %v1303_v17 = vmax.f32 %v791_v6, 0.0  ;;  %v1304_v18 = vmax.f32 %v792_v7, 0.0  ;;  %v797_v20 = vadd.f32 %v285_v4, %v285_v4 }
  0x92   :  { %1812 = vst [vmem:[#allocation5 + $0x7e8] sm:$0xff] %v1300_v2  ;;  %1813 = vst [vmem:[#allocation5 + $0x7f0] sm:$0xff] %v1301_v5  ;;  %v1305_v19 = vmax.f32 %v793_v8, 0.0  ;;  %v290_v21 = vld [vmem:[#allocation2 + $0x858] sm:$0xff]  ;;  %v291_v22 = vld [vmem:[#allocation2 + $0x860] sm:$0xff]  ;;  %v1306_v24 = vmax.f32 %v794_v11, 0.0  ;;  %v798_v27 = vadd.f32 %v286_v9, %v286_v9  ;;  %v799_v30 = vadd.f32 %v287_v14, %v287_v14 }
  0x93   :  { %v292_v23 = vld [vmem:[#allocation2 + $0x868] sm:$0xff]  ;;  %1814 = vst [vmem:[#allocation5 + $0x7f8] sm:$0xff] %v1302_v10  ;;  %v1307_v25 = vmax.f32 %v795_v12, 0.0  ;;  %v1308_v26 = vmax.f32 %v796_v13, 0.0  ;;  %v293_v28 = vld [vmem:[#allocation2 + $0x870] sm:$0xff]  ;;  %1815 = vst [vmem:[#allocation5 + $0x800] sm:$0xff] %v1303_v17  ;;  %v800_v31 = vadd.f32 %v288_v15, %v288_v15  ;;  %v801_v32 = vadd.f32 %v289_v16, %v289_v16 }
  0x94   :  { %1816 = vst [vmem:[#allocation5 + $0x808] sm:$0xff] %v1304_v18  ;;  %1817 = vst [vmem:[#allocation5 + $0x810] sm:$0xff] %v1305_v19  ;;  %v1309_v29 = vmax.f32 %v797_v20, 0.0  ;;  %v294_v33 = vld [vmem:[#allocation2 + $0x878] sm:$0xff]  ;;  %v1310_v34 = vmax.f32 %v798_v27, 0.0  ;;  %v802_v35 = vadd.f32 %v290_v21, %v290_v21  ;;  %v803_v36 = vadd.f32 %v291_v22, %v291_v22  ;;  %v295_v38 = vld [vmem:[#allocation2 + $0x880] sm:$0xff] }
  0x95   :  { %1818 = vst [vmem:[#allocation5 + $0x818] sm:$0xff] %v1306_v24  ;;  %1819 = vst [vmem:[#allocation5 + $0x820] sm:$0xff] %v1307_v25  ;;  %v804_v37 = vadd.f32 %v292_v23, %v292_v23  ;;  %v296_v39 = vld [vmem:[#allocation2 + $0x888] sm:$0xff]  ;;  %v297_v40 = vld [vmem:[#allocation2 + $0x890] sm:$0xff]  ;;  %v1311_v41 = vmax.f32 %v799_v30, 0.0  ;;  %v1312_v42 = vmax.f32 %v800_v31, 0.0  ;;  %v805_v44 = vadd.f32 %v293_v28, %v293_v28 }
  0x96   :  { %1820 = vst [vmem:[#allocation5 + $0x828] sm:$0xff] %v1308_v26  ;;  %1821 = vst [vmem:[#allocation5 + $0x830] sm:$0xff] %v1309_v29  ;;  %v1313_v43 = vmax.f32 %v801_v32, 0.0  ;;  %v298_v45 = vld [vmem:[#allocation2 + $0x898] sm:$0xff]  ;;  %v299_v46 = vld [vmem:[#allocation2 + $0x8a0] sm:$0xff]  ;;  %v1314_v48 = vmax.f32 %v802_v35, 0.0  ;;  %v806_v51 = vadd.f32 %v294_v33, %v294_v33  ;;  %v807_v54 = vadd.f32 %v295_v38, %v295_v38 }
  0x97   :  { %v300_v47 = vld [vmem:[#allocation2 + $0x8a8] sm:$0xff]  ;;  %1822 = vst [vmem:[#allocation5 + $0x838] sm:$0xff] %v1310_v34  ;;  %v1315_v49 = vmax.f32 %v803_v36, 0.0  ;;  %v1316_v50 = vmax.f32 %v804_v37, 0.0  ;;  %v301_v52 = vld [vmem:[#allocation2 + $0x8b0] sm:$0xff]  ;;  %1823 = vst [vmem:[#allocation5 + $0x840] sm:$0xff] %v1311_v41  ;;  %v808_v55 = vadd.f32 %v296_v39, %v296_v39  ;;  %v809_v56 = vadd.f32 %v297_v40, %v297_v40 }
  0x98   :  { %1824 = vst [vmem:[#allocation5 + $0x848] sm:$0xff] %v1312_v42  ;;  %1825 = vst [vmem:[#allocation5 + $0x850] sm:$0xff] %v1313_v43  ;;  %v1317_v53 = vmax.f32 %v805_v44, 0.0  ;;  %v302_v57 = vld [vmem:[#allocation2 + $0x8b8] sm:$0xff]  ;;  %v1318_v58 = vmax.f32 %v806_v51, 0.0  ;;  %v810_v59 = vadd.f32 %v298_v45, %v298_v45  ;;  %v811_v60 = vadd.f32 %v299_v46, %v299_v46  ;;  %v303_v62 = vld [vmem:[#allocation2 + $0x8c0] sm:$0xff] }
  0x99   :  { %1826 = vst [vmem:[#allocation5 + $0x858] sm:$0xff] %v1314_v48  ;;  %1827 = vst [vmem:[#allocation5 + $0x860] sm:$0xff] %v1315_v49  ;;  %v812_v61 = vadd.f32 %v300_v47, %v300_v47  ;;  %v304_v63 = vld [vmem:[#allocation2 + $0x8c8] sm:$0xff]  ;;  %v305_v0 = vld [vmem:[#allocation2 + $0x8d0] sm:$0xff]  ;;  %v1319_v1 = vmax.f32 %v807_v54, 0.0  ;;  %v1320_v2 = vmax.f32 %v808_v55, 0.0  ;;  %v813_v4 = vadd.f32 %v301_v52, %v301_v52 }
  0x9a   :  { %1828 = vst [vmem:[#allocation5 + $0x868] sm:$0xff] %v1316_v50  ;;  %1829 = vst [vmem:[#allocation5 + $0x870] sm:$0xff] %v1317_v53  ;;  %v1321_v3 = vmax.f32 %v809_v56, 0.0  ;;  %v306_v5 = vld [vmem:[#allocation2 + $0x8d8] sm:$0xff]  ;;  %v307_v6 = vld [vmem:[#allocation2 + $0x8e0] sm:$0xff]  ;;  %v1322_v8 = vmax.f32 %v810_v59, 0.0  ;;  %v814_v11 = vadd.f32 %v302_v57, %v302_v57  ;;  %v815_v14 = vadd.f32 %v303_v62, %v303_v62 }
  0x9b   :  { %v308_v7 = vld [vmem:[#allocation2 + $0x8e8] sm:$0xff]  ;;  %1830 = vst [vmem:[#allocation5 + $0x878] sm:$0xff] %v1318_v58  ;;  %v1323_v9 = vmax.f32 %v811_v60, 0.0  ;;  %v1324_v10 = vmax.f32 %v812_v61, 0.0  ;;  %v309_v12 = vld [vmem:[#allocation2 + $0x8f0] sm:$0xff]  ;;  %1831 = vst [vmem:[#allocation5 + $0x880] sm:$0xff] %v1319_v1  ;;  %v816_v15 = vadd.f32 %v304_v63, %v304_v63  ;;  %v817_v16 = vadd.f32 %v305_v0, %v305_v0 }
  0x9c   :  { %1832 = vst [vmem:[#allocation5 + $0x888] sm:$0xff] %v1320_v2  ;;  %1833 = vst [vmem:[#allocation5 + $0x890] sm:$0xff] %v1321_v3  ;;  %v1325_v13 = vmax.f32 %v813_v4, 0.0  ;;  %v310_v17 = vld [vmem:[#allocation2 + $0x8f8] sm:$0xff]  ;;  %v1326_v18 = vmax.f32 %v814_v11, 0.0  ;;  %v818_v19 = vadd.f32 %v306_v5, %v306_v5  ;;  %v819_v20 = vadd.f32 %v307_v6, %v307_v6  ;;  %v311_v22 = vld [vmem:[#allocation2 + $0x900] sm:$0xff] }
  0x9d   :  { %1834 = vst [vmem:[#allocation5 + $0x898] sm:$0xff] %v1322_v8  ;;  %1835 = vst [vmem:[#allocation5 + $0x8a0] sm:$0xff] %v1323_v9  ;;  %v820_v21 = vadd.f32 %v308_v7, %v308_v7  ;;  %v312_v23 = vld [vmem:[#allocation2 + $0x908] sm:$0xff]  ;;  %v313_v24 = vld [vmem:[#allocation2 + $0x910] sm:$0xff]  ;;  %v1327_v25 = vmax.f32 %v815_v14, 0.0  ;;  %v1328_v26 = vmax.f32 %v816_v15, 0.0  ;;  %v821_v28 = vadd.f32 %v309_v12, %v309_v12 }
  0x9e   :  { %1836 = vst [vmem:[#allocation5 + $0x8a8] sm:$0xff] %v1324_v10  ;;  %1837 = vst [vmem:[#allocation5 + $0x8b0] sm:$0xff] %v1325_v13  ;;  %v1329_v27 = vmax.f32 %v817_v16, 0.0  ;;  %v314_v29 = vld [vmem:[#allocation2 + $0x918] sm:$0xff]  ;;  %v315_v30 = vld [vmem:[#allocation2 + $0x920] sm:$0xff]  ;;  %v1330_v32 = vmax.f32 %v818_v19, 0.0  ;;  %v822_v35 = vadd.f32 %v310_v17, %v310_v17  ;;  %v823_v38 = vadd.f32 %v311_v22, %v311_v22 }
  0x9f   :  { %v316_v31 = vld [vmem:[#allocation2 + $0x928] sm:$0xff]  ;;  %1838 = vst [vmem:[#allocation5 + $0x8b8] sm:$0xff] %v1326_v18  ;;  %v1331_v33 = vmax.f32 %v819_v20, 0.0  ;;  %v1332_v34 = vmax.f32 %v820_v21, 0.0  ;;  %v317_v36 = vld [vmem:[#allocation2 + $0x930] sm:$0xff]  ;;  %1839 = vst [vmem:[#allocation5 + $0x8c0] sm:$0xff] %v1327_v25  ;;  %v824_v39 = vadd.f32 %v312_v23, %v312_v23  ;;  %v825_v40 = vadd.f32 %v313_v24, %v313_v24 }
  0xa0   :  { %1840 = vst [vmem:[#allocation5 + $0x8c8] sm:$0xff] %v1328_v26  ;;  %1841 = vst [vmem:[#allocation5 + $0x8d0] sm:$0xff] %v1329_v27  ;;  %v1333_v37 = vmax.f32 %v821_v28, 0.0  ;;  %v318_v41 = vld [vmem:[#allocation2 + $0x938] sm:$0xff]  ;;  %v1334_v42 = vmax.f32 %v822_v35, 0.0  ;;  %v826_v43 = vadd.f32 %v314_v29, %v314_v29  ;;  %v827_v44 = vadd.f32 %v315_v30, %v315_v30  ;;  %v319_v46 = vld [vmem:[#allocation2 + $0x940] sm:$0xff] }
  0xa1   :  { %1842 = vst [vmem:[#allocation5 + $0x8d8] sm:$0xff] %v1330_v32  ;;  %1843 = vst [vmem:[#allocation5 + $0x8e0] sm:$0xff] %v1331_v33  ;;  %v828_v45 = vadd.f32 %v316_v31, %v316_v31  ;;  %v320_v47 = vld [vmem:[#allocation2 + $0x948] sm:$0xff]  ;;  %v321_v48 = vld [vmem:[#allocation2 + $0x950] sm:$0xff]  ;;  %v1335_v49 = vmax.f32 %v823_v38, 0.0  ;;  %v1336_v50 = vmax.f32 %v824_v39, 0.0  ;;  %v829_v52 = vadd.f32 %v317_v36, %v317_v36 }
  0xa2   :  { %1844 = vst [vmem:[#allocation5 + $0x8e8] sm:$0xff] %v1332_v34  ;;  %1845 = vst [vmem:[#allocation5 + $0x8f0] sm:$0xff] %v1333_v37  ;;  %v1337_v51 = vmax.f32 %v825_v40, 0.0  ;;  %v322_v53 = vld [vmem:[#allocation2 + $0x958] sm:$0xff]  ;;  %v323_v54 = vld [vmem:[#allocation2 + $0x960] sm:$0xff]  ;;  %v1338_v56 = vmax.f32 %v826_v43, 0.0  ;;  %v830_v59 = vadd.f32 %v318_v41, %v318_v41  ;;  %v831_v62 = vadd.f32 %v319_v46, %v319_v46 }
  0xa3   :  { %v324_v55 = vld [vmem:[#allocation2 + $0x968] sm:$0xff]  ;;  %1846 = vst [vmem:[#allocation5 + $0x8f8] sm:$0xff] %v1334_v42  ;;  %v1339_v57 = vmax.f32 %v827_v44, 0.0  ;;  %v1340_v58 = vmax.f32 %v828_v45, 0.0  ;;  %v325_v60 = vld [vmem:[#allocation2 + $0x970] sm:$0xff]  ;;  %1847 = vst [vmem:[#allocation5 + $0x900] sm:$0xff] %v1335_v49  ;;  %v832_v63 = vadd.f32 %v320_v47, %v320_v47  ;;  %v833_v0 = vadd.f32 %v321_v48, %v321_v48 }
  0xa4   :  { %1848 = vst [vmem:[#allocation5 + $0x908] sm:$0xff] %v1336_v50  ;;  %1849 = vst [vmem:[#allocation5 + $0x910] sm:$0xff] %v1337_v51  ;;  %v1341_v61 = vmax.f32 %v829_v52, 0.0  ;;  %v326_v1 = vld [vmem:[#allocation2 + $0x978] sm:$0xff]  ;;  %v1342_v2 = vmax.f32 %v830_v59, 0.0  ;;  %v834_v3 = vadd.f32 %v322_v53, %v322_v53  ;;  %v835_v4 = vadd.f32 %v323_v54, %v323_v54  ;;  %v327_v6 = vld [vmem:[#allocation2 + $0x980] sm:$0xff] }
  0xa5   :  { %1850 = vst [vmem:[#allocation5 + $0x918] sm:$0xff] %v1338_v56  ;;  %1851 = vst [vmem:[#allocation5 + $0x920] sm:$0xff] %v1339_v57  ;;  %v836_v5 = vadd.f32 %v324_v55, %v324_v55  ;;  %v328_v7 = vld [vmem:[#allocation2 + $0x988] sm:$0xff]  ;;  %v329_v8 = vld [vmem:[#allocation2 + $0x990] sm:$0xff]  ;;  %v1343_v9 = vmax.f32 %v831_v62, 0.0  ;;  %v1344_v10 = vmax.f32 %v832_v63, 0.0  ;;  %v837_v12 = vadd.f32 %v325_v60, %v325_v60 }
  0xa6   :  { %1852 = vst [vmem:[#allocation5 + $0x928] sm:$0xff] %v1340_v58  ;;  %1853 = vst [vmem:[#allocation5 + $0x930] sm:$0xff] %v1341_v61  ;;  %v1345_v11 = vmax.f32 %v833_v0, 0.0  ;;  %v330_v13 = vld [vmem:[#allocation2 + $0x998] sm:$0xff]  ;;  %v331_v14 = vld [vmem:[#allocation2 + $0x9a0] sm:$0xff]  ;;  %v1346_v16 = vmax.f32 %v834_v3, 0.0  ;;  %v838_v19 = vadd.f32 %v326_v1, %v326_v1  ;;  %v839_v22 = vadd.f32 %v327_v6, %v327_v6 }
  0xa7   :  { %v332_v15 = vld [vmem:[#allocation2 + $0x9a8] sm:$0xff]  ;;  %1854 = vst [vmem:[#allocation5 + $0x938] sm:$0xff] %v1342_v2  ;;  %v1347_v17 = vmax.f32 %v835_v4, 0.0  ;;  %v1348_v18 = vmax.f32 %v836_v5, 0.0  ;;  %v333_v20 = vld [vmem:[#allocation2 + $0x9b0] sm:$0xff]  ;;  %1855 = vst [vmem:[#allocation5 + $0x940] sm:$0xff] %v1343_v9  ;;  %v840_v23 = vadd.f32 %v328_v7, %v328_v7  ;;  %v841_v24 = vadd.f32 %v329_v8, %v329_v8 }
  0xa8   :  { %1856 = vst [vmem:[#allocation5 + $0x948] sm:$0xff] %v1344_v10  ;;  %1857 = vst [vmem:[#allocation5 + $0x950] sm:$0xff] %v1345_v11  ;;  %v1349_v21 = vmax.f32 %v837_v12, 0.0  ;;  %v334_v25 = vld [vmem:[#allocation2 + $0x9b8] sm:$0xff]  ;;  %v1350_v26 = vmax.f32 %v838_v19, 0.0  ;;  %v842_v27 = vadd.f32 %v330_v13, %v330_v13  ;;  %v843_v28 = vadd.f32 %v331_v14, %v331_v14  ;;  %v335_v30 = vld [vmem:[#allocation2 + $0x9c0] sm:$0xff] }
  0xa9   :  { %1858 = vst [vmem:[#allocation5 + $0x958] sm:$0xff] %v1346_v16  ;;  %1859 = vst [vmem:[#allocation5 + $0x960] sm:$0xff] %v1347_v17  ;;  %v844_v29 = vadd.f32 %v332_v15, %v332_v15  ;;  %v336_v31 = vld [vmem:[#allocation2 + $0x9c8] sm:$0xff]  ;;  %v337_v32 = vld [vmem:[#allocation2 + $0x9d0] sm:$0xff]  ;;  %v1351_v33 = vmax.f32 %v839_v22, 0.0  ;;  %v1352_v34 = vmax.f32 %v840_v23, 0.0  ;;  %v845_v36 = vadd.f32 %v333_v20, %v333_v20 }
  0xaa   :  { %1860 = vst [vmem:[#allocation5 + $0x968] sm:$0xff] %v1348_v18  ;;  %1861 = vst [vmem:[#allocation5 + $0x970] sm:$0xff] %v1349_v21  ;;  %v1353_v35 = vmax.f32 %v841_v24, 0.0  ;;  %v338_v37 = vld [vmem:[#allocation2 + $0x9d8] sm:$0xff]  ;;  %v339_v38 = vld [vmem:[#allocation2 + $0x9e0] sm:$0xff]  ;;  %v1354_v40 = vmax.f32 %v842_v27, 0.0  ;;  %v846_v43 = vadd.f32 %v334_v25, %v334_v25  ;;  %v847_v46 = vadd.f32 %v335_v30, %v335_v30 }
  0xab   :  { %v340_v39 = vld [vmem:[#allocation2 + $0x9e8] sm:$0xff]  ;;  %1862 = vst [vmem:[#allocation5 + $0x978] sm:$0xff] %v1350_v26  ;;  %v1355_v41 = vmax.f32 %v843_v28, 0.0  ;;  %v1356_v42 = vmax.f32 %v844_v29, 0.0  ;;  %v341_v44 = vld [vmem:[#allocation2 + $0x9f0] sm:$0xff]  ;;  %1863 = vst [vmem:[#allocation5 + $0x980] sm:$0xff] %v1351_v33  ;;  %v848_v47 = vadd.f32 %v336_v31, %v336_v31  ;;  %v849_v48 = vadd.f32 %v337_v32, %v337_v32 }
  0xac   :  { %1864 = vst [vmem:[#allocation5 + $0x988] sm:$0xff] %v1352_v34  ;;  %1865 = vst [vmem:[#allocation5 + $0x990] sm:$0xff] %v1353_v35  ;;  %v1357_v45 = vmax.f32 %v845_v36, 0.0  ;;  %v342_v49 = vld [vmem:[#allocation2 + $0x9f8] sm:$0xff]  ;;  %v1358_v50 = vmax.f32 %v846_v43, 0.0  ;;  %v850_v51 = vadd.f32 %v338_v37, %v338_v37  ;;  %v851_v52 = vadd.f32 %v339_v38, %v339_v38  ;;  %v343_v54 = vld [vmem:[#allocation2 + $0xa00] sm:$0xff] }
  0xad   :  { %1866 = vst [vmem:[#allocation5 + $0x998] sm:$0xff] %v1354_v40  ;;  %1867 = vst [vmem:[#allocation5 + $0x9a0] sm:$0xff] %v1355_v41  ;;  %v852_v53 = vadd.f32 %v340_v39, %v340_v39  ;;  %v344_v55 = vld [vmem:[#allocation2 + $0xa08] sm:$0xff]  ;;  %v345_v56 = vld [vmem:[#allocation2 + $0xa10] sm:$0xff]  ;;  %v1359_v57 = vmax.f32 %v847_v46, 0.0  ;;  %v1360_v58 = vmax.f32 %v848_v47, 0.0  ;;  %v853_v60 = vadd.f32 %v341_v44, %v341_v44 }
  0xae   :  { %1868 = vst [vmem:[#allocation5 + $0x9a8] sm:$0xff] %v1356_v42  ;;  %1869 = vst [vmem:[#allocation5 + $0x9b0] sm:$0xff] %v1357_v45  ;;  %v1361_v59 = vmax.f32 %v849_v48, 0.0  ;;  %v346_v61 = vld [vmem:[#allocation2 + $0xa18] sm:$0xff]  ;;  %v347_v62 = vld [vmem:[#allocation2 + $0xa20] sm:$0xff]  ;;  %v1362_v0 = vmax.f32 %v850_v51, 0.0  ;;  %v854_v3 = vadd.f32 %v342_v49, %v342_v49  ;;  %v855_v6 = vadd.f32 %v343_v54, %v343_v54 }
  0xaf   :  { %v348_v63 = vld [vmem:[#allocation2 + $0xa28] sm:$0xff]  ;;  %1870 = vst [vmem:[#allocation5 + $0x9b8] sm:$0xff] %v1358_v50  ;;  %v1363_v1 = vmax.f32 %v851_v52, 0.0  ;;  %v1364_v2 = vmax.f32 %v852_v53, 0.0  ;;  %v349_v4 = vld [vmem:[#allocation2 + $0xa30] sm:$0xff]  ;;  %1871 = vst [vmem:[#allocation5 + $0x9c0] sm:$0xff] %v1359_v57  ;;  %v856_v7 = vadd.f32 %v344_v55, %v344_v55  ;;  %v857_v8 = vadd.f32 %v345_v56, %v345_v56 }
  0xb0   :  { %1872 = vst [vmem:[#allocation5 + $0x9c8] sm:$0xff] %v1360_v58  ;;  %1873 = vst [vmem:[#allocation5 + $0x9d0] sm:$0xff] %v1361_v59  ;;  %v1365_v5 = vmax.f32 %v853_v60, 0.0  ;;  %v350_v9 = vld [vmem:[#allocation2 + $0xa38] sm:$0xff]  ;;  %v1366_v10 = vmax.f32 %v854_v3, 0.0  ;;  %v858_v11 = vadd.f32 %v346_v61, %v346_v61  ;;  %v859_v12 = vadd.f32 %v347_v62, %v347_v62  ;;  %v351_v14 = vld [vmem:[#allocation2 + $0xa40] sm:$0xff] }
  0xb1   :  { %1874 = vst [vmem:[#allocation5 + $0x9d8] sm:$0xff] %v1362_v0  ;;  %1875 = vst [vmem:[#allocation5 + $0x9e0] sm:$0xff] %v1363_v1  ;;  %v860_v13 = vadd.f32 %v348_v63, %v348_v63  ;;  %v352_v15 = vld [vmem:[#allocation2 + $0xa48] sm:$0xff]  ;;  %v353_v16 = vld [vmem:[#allocation2 + $0xa50] sm:$0xff]  ;;  %v1367_v17 = vmax.f32 %v855_v6, 0.0  ;;  %v1368_v18 = vmax.f32 %v856_v7, 0.0  ;;  %v861_v20 = vadd.f32 %v349_v4, %v349_v4 }
  0xb2   :  { %1876 = vst [vmem:[#allocation5 + $0x9e8] sm:$0xff] %v1364_v2  ;;  %1877 = vst [vmem:[#allocation5 + $0x9f0] sm:$0xff] %v1365_v5  ;;  %v1369_v19 = vmax.f32 %v857_v8, 0.0  ;;  %v354_v21 = vld [vmem:[#allocation2 + $0xa58] sm:$0xff]  ;;  %v355_v22 = vld [vmem:[#allocation2 + $0xa60] sm:$0xff]  ;;  %v1370_v24 = vmax.f32 %v858_v11, 0.0  ;;  %v862_v27 = vadd.f32 %v350_v9, %v350_v9  ;;  %v863_v30 = vadd.f32 %v351_v14, %v351_v14 }
  0xb3   :  { %v356_v23 = vld [vmem:[#allocation2 + $0xa68] sm:$0xff]  ;;  %1878 = vst [vmem:[#allocation5 + $0x9f8] sm:$0xff] %v1366_v10  ;;  %v1371_v25 = vmax.f32 %v859_v12, 0.0  ;;  %v1372_v26 = vmax.f32 %v860_v13, 0.0  ;;  %v357_v28 = vld [vmem:[#allocation2 + $0xa70] sm:$0xff]  ;;  %1879 = vst [vmem:[#allocation5 + $0xa00] sm:$0xff] %v1367_v17  ;;  %v864_v31 = vadd.f32 %v352_v15, %v352_v15  ;;  %v865_v32 = vadd.f32 %v353_v16, %v353_v16 }
  0xb4   :  { %1880 = vst [vmem:[#allocation5 + $0xa08] sm:$0xff] %v1368_v18  ;;  %1881 = vst [vmem:[#allocation5 + $0xa10] sm:$0xff] %v1369_v19  ;;  %v1373_v29 = vmax.f32 %v861_v20, 0.0  ;;  %v358_v33 = vld [vmem:[#allocation2 + $0xa78] sm:$0xff]  ;;  %v1374_v34 = vmax.f32 %v862_v27, 0.0  ;;  %v866_v35 = vadd.f32 %v354_v21, %v354_v21  ;;  %v867_v36 = vadd.f32 %v355_v22, %v355_v22  ;;  %v359_v38 = vld [vmem:[#allocation2 + $0xa80] sm:$0xff] }
  0xb5   :  { %1882 = vst [vmem:[#allocation5 + $0xa18] sm:$0xff] %v1370_v24  ;;  %1883 = vst [vmem:[#allocation5 + $0xa20] sm:$0xff] %v1371_v25  ;;  %v868_v37 = vadd.f32 %v356_v23, %v356_v23  ;;  %v360_v39 = vld [vmem:[#allocation2 + $0xa88] sm:$0xff]  ;;  %v361_v40 = vld [vmem:[#allocation2 + $0xa90] sm:$0xff]  ;;  %v1375_v41 = vmax.f32 %v863_v30, 0.0  ;;  %v1376_v42 = vmax.f32 %v864_v31, 0.0  ;;  %v869_v44 = vadd.f32 %v357_v28, %v357_v28 }
  0xb6   :  { %1884 = vst [vmem:[#allocation5 + $0xa28] sm:$0xff] %v1372_v26  ;;  %1885 = vst [vmem:[#allocation5 + $0xa30] sm:$0xff] %v1373_v29  ;;  %v1377_v43 = vmax.f32 %v865_v32, 0.0  ;;  %v362_v45 = vld [vmem:[#allocation2 + $0xa98] sm:$0xff]  ;;  %v363_v46 = vld [vmem:[#allocation2 + $0xaa0] sm:$0xff]  ;;  %v1378_v48 = vmax.f32 %v866_v35, 0.0  ;;  %v870_v51 = vadd.f32 %v358_v33, %v358_v33  ;;  %v871_v54 = vadd.f32 %v359_v38, %v359_v38 }
  0xb7   :  { %v364_v47 = vld [vmem:[#allocation2 + $0xaa8] sm:$0xff]  ;;  %1886 = vst [vmem:[#allocation5 + $0xa38] sm:$0xff] %v1374_v34  ;;  %v1379_v49 = vmax.f32 %v867_v36, 0.0  ;;  %v1380_v50 = vmax.f32 %v868_v37, 0.0  ;;  %v365_v52 = vld [vmem:[#allocation2 + $0xab0] sm:$0xff]  ;;  %1887 = vst [vmem:[#allocation5 + $0xa40] sm:$0xff] %v1375_v41  ;;  %v872_v55 = vadd.f32 %v360_v39, %v360_v39  ;;  %v873_v56 = vadd.f32 %v361_v40, %v361_v40 }
  0xb8   :  { %1888 = vst [vmem:[#allocation5 + $0xa48] sm:$0xff] %v1376_v42  ;;  %1889 = vst [vmem:[#allocation5 + $0xa50] sm:$0xff] %v1377_v43  ;;  %v1381_v53 = vmax.f32 %v869_v44, 0.0  ;;  %v366_v57 = vld [vmem:[#allocation2 + $0xab8] sm:$0xff]  ;;  %v1382_v58 = vmax.f32 %v870_v51, 0.0  ;;  %v874_v59 = vadd.f32 %v362_v45, %v362_v45  ;;  %v875_v60 = vadd.f32 %v363_v46, %v363_v46  ;;  %v367_v62 = vld [vmem:[#allocation2 + $0xac0] sm:$0xff] }
  0xb9   :  { %1890 = vst [vmem:[#allocation5 + $0xa58] sm:$0xff] %v1378_v48  ;;  %1891 = vst [vmem:[#allocation5 + $0xa60] sm:$0xff] %v1379_v49  ;;  %v876_v61 = vadd.f32 %v364_v47, %v364_v47  ;;  %v368_v63 = vld [vmem:[#allocation2 + $0xac8] sm:$0xff]  ;;  %v369_v0 = vld [vmem:[#allocation2 + $0xad0] sm:$0xff]  ;;  %v1383_v1 = vmax.f32 %v871_v54, 0.0  ;;  %v1384_v2 = vmax.f32 %v872_v55, 0.0  ;;  %v877_v4 = vadd.f32 %v365_v52, %v365_v52 }
  0xba   :  { %1892 = vst [vmem:[#allocation5 + $0xa68] sm:$0xff] %v1380_v50  ;;  %1893 = vst [vmem:[#allocation5 + $0xa70] sm:$0xff] %v1381_v53  ;;  %v1385_v3 = vmax.f32 %v873_v56, 0.0  ;;  %v370_v5 = vld [vmem:[#allocation2 + $0xad8] sm:$0xff]  ;;  %v371_v6 = vld [vmem:[#allocation2 + $0xae0] sm:$0xff]  ;;  %v1386_v8 = vmax.f32 %v874_v59, 0.0  ;;  %v878_v11 = vadd.f32 %v366_v57, %v366_v57  ;;  %v879_v14 = vadd.f32 %v367_v62, %v367_v62 }
  0xbb   :  { %v372_v7 = vld [vmem:[#allocation2 + $0xae8] sm:$0xff]  ;;  %1894 = vst [vmem:[#allocation5 + $0xa78] sm:$0xff] %v1382_v58  ;;  %v1387_v9 = vmax.f32 %v875_v60, 0.0  ;;  %v1388_v10 = vmax.f32 %v876_v61, 0.0  ;;  %v373_v12 = vld [vmem:[#allocation2 + $0xaf0] sm:$0xff]  ;;  %1895 = vst [vmem:[#allocation5 + $0xa80] sm:$0xff] %v1383_v1  ;;  %v880_v15 = vadd.f32 %v368_v63, %v368_v63  ;;  %v881_v16 = vadd.f32 %v369_v0, %v369_v0 }
  0xbc   :  { %1896 = vst [vmem:[#allocation5 + $0xa88] sm:$0xff] %v1384_v2  ;;  %1897 = vst [vmem:[#allocation5 + $0xa90] sm:$0xff] %v1385_v3  ;;  %v1389_v13 = vmax.f32 %v877_v4, 0.0  ;;  %v374_v17 = vld [vmem:[#allocation2 + $0xaf8] sm:$0xff]  ;;  %v1390_v18 = vmax.f32 %v878_v11, 0.0  ;;  %v882_v19 = vadd.f32 %v370_v5, %v370_v5  ;;  %v883_v20 = vadd.f32 %v371_v6, %v371_v6  ;;  %v375_v22 = vld [vmem:[#allocation2 + $0xb00] sm:$0xff] }
  0xbd   :  { %1898 = vst [vmem:[#allocation5 + $0xa98] sm:$0xff] %v1386_v8  ;;  %1899 = vst [vmem:[#allocation5 + $0xaa0] sm:$0xff] %v1387_v9  ;;  %v884_v21 = vadd.f32 %v372_v7, %v372_v7  ;;  %v376_v23 = vld [vmem:[#allocation2 + $0xb08] sm:$0xff]  ;;  %v377_v24 = vld [vmem:[#allocation2 + $0xb10] sm:$0xff]  ;;  %v1391_v25 = vmax.f32 %v879_v14, 0.0  ;;  %v1392_v26 = vmax.f32 %v880_v15, 0.0  ;;  %v885_v28 = vadd.f32 %v373_v12, %v373_v12 }
  0xbe   :  { %1900 = vst [vmem:[#allocation5 + $0xaa8] sm:$0xff] %v1388_v10  ;;  %1901 = vst [vmem:[#allocation5 + $0xab0] sm:$0xff] %v1389_v13  ;;  %v1393_v27 = vmax.f32 %v881_v16, 0.0  ;;  %v378_v29 = vld [vmem:[#allocation2 + $0xb18] sm:$0xff]  ;;  %v379_v30 = vld [vmem:[#allocation2 + $0xb20] sm:$0xff]  ;;  %v1394_v32 = vmax.f32 %v882_v19, 0.0  ;;  %v886_v35 = vadd.f32 %v374_v17, %v374_v17  ;;  %v887_v38 = vadd.f32 %v375_v22, %v375_v22 }
  0xbf   :  { %v380_v31 = vld [vmem:[#allocation2 + $0xb28] sm:$0xff]  ;;  %1902 = vst [vmem:[#allocation5 + $0xab8] sm:$0xff] %v1390_v18  ;;  %v1395_v33 = vmax.f32 %v883_v20, 0.0  ;;  %v1396_v34 = vmax.f32 %v884_v21, 0.0  ;;  %v381_v36 = vld [vmem:[#allocation2 + $0xb30] sm:$0xff]  ;;  %1903 = vst [vmem:[#allocation5 + $0xac0] sm:$0xff] %v1391_v25  ;;  %v888_v39 = vadd.f32 %v376_v23, %v376_v23  ;;  %v889_v40 = vadd.f32 %v377_v24, %v377_v24 }
  0xc0   :  { %1904 = vst [vmem:[#allocation5 + $0xac8] sm:$0xff] %v1392_v26  ;;  %1905 = vst [vmem:[#allocation5 + $0xad0] sm:$0xff] %v1393_v27  ;;  %v1397_v37 = vmax.f32 %v885_v28, 0.0  ;;  %v382_v41 = vld [vmem:[#allocation2 + $0xb38] sm:$0xff]  ;;  %v1398_v42 = vmax.f32 %v886_v35, 0.0  ;;  %v890_v43 = vadd.f32 %v378_v29, %v378_v29  ;;  %v891_v44 = vadd.f32 %v379_v30, %v379_v30  ;;  %v383_v46 = vld [vmem:[#allocation2 + $0xb40] sm:$0xff] }
  0xc1   :  { %1906 = vst [vmem:[#allocation5 + $0xad8] sm:$0xff] %v1394_v32  ;;  %1907 = vst [vmem:[#allocation5 + $0xae0] sm:$0xff] %v1395_v33  ;;  %v892_v45 = vadd.f32 %v380_v31, %v380_v31  ;;  %v384_v47 = vld [vmem:[#allocation2 + $0xb48] sm:$0xff]  ;;  %v385_v48 = vld [vmem:[#allocation2 + $0xb50] sm:$0xff]  ;;  %v1399_v49 = vmax.f32 %v887_v38, 0.0  ;;  %v1400_v50 = vmax.f32 %v888_v39, 0.0  ;;  %v893_v52 = vadd.f32 %v381_v36, %v381_v36 }
  0xc2   :  { %1908 = vst [vmem:[#allocation5 + $0xae8] sm:$0xff] %v1396_v34  ;;  %1909 = vst [vmem:[#allocation5 + $0xaf0] sm:$0xff] %v1397_v37  ;;  %v1401_v51 = vmax.f32 %v889_v40, 0.0  ;;  %v386_v53 = vld [vmem:[#allocation2 + $0xb58] sm:$0xff]  ;;  %v387_v54 = vld [vmem:[#allocation2 + $0xb60] sm:$0xff]  ;;  %v1402_v56 = vmax.f32 %v890_v43, 0.0  ;;  %v894_v59 = vadd.f32 %v382_v41, %v382_v41  ;;  %v895_v62 = vadd.f32 %v383_v46, %v383_v46 }
  0xc3   :  { %v388_v55 = vld [vmem:[#allocation2 + $0xb68] sm:$0xff]  ;;  %1910 = vst [vmem:[#allocation5 + $0xaf8] sm:$0xff] %v1398_v42  ;;  %v1403_v57 = vmax.f32 %v891_v44, 0.0  ;;  %v1404_v58 = vmax.f32 %v892_v45, 0.0  ;;  %v389_v60 = vld [vmem:[#allocation2 + $0xb70] sm:$0xff]  ;;  %1911 = vst [vmem:[#allocation5 + $0xb00] sm:$0xff] %v1399_v49  ;;  %v896_v63 = vadd.f32 %v384_v47, %v384_v47  ;;  %v897_v0 = vadd.f32 %v385_v48, %v385_v48 }
  0xc4   :  { %1912 = vst [vmem:[#allocation5 + $0xb08] sm:$0xff] %v1400_v50  ;;  %1913 = vst [vmem:[#allocation5 + $0xb10] sm:$0xff] %v1401_v51  ;;  %v1405_v61 = vmax.f32 %v893_v52, 0.0  ;;  %v390_v1 = vld [vmem:[#allocation2 + $0xb78] sm:$0xff]  ;;  %v1406_v2 = vmax.f32 %v894_v59, 0.0  ;;  %v898_v3 = vadd.f32 %v386_v53, %v386_v53  ;;  %v899_v4 = vadd.f32 %v387_v54, %v387_v54  ;;  %v391_v6 = vld [vmem:[#allocation2 + $0xb80] sm:$0xff] }
  0xc5   :  { %1914 = vst [vmem:[#allocation5 + $0xb18] sm:$0xff] %v1402_v56  ;;  %1915 = vst [vmem:[#allocation5 + $0xb20] sm:$0xff] %v1403_v57  ;;  %v900_v5 = vadd.f32 %v388_v55, %v388_v55  ;;  %v392_v7 = vld [vmem:[#allocation2 + $0xb88] sm:$0xff]  ;;  %v393_v8 = vld [vmem:[#allocation2 + $0xb90] sm:$0xff]  ;;  %v1407_v9 = vmax.f32 %v895_v62, 0.0  ;;  %v1408_v10 = vmax.f32 %v896_v63, 0.0  ;;  %v901_v12 = vadd.f32 %v389_v60, %v389_v60 }
  0xc6   :  { %1916 = vst [vmem:[#allocation5 + $0xb28] sm:$0xff] %v1404_v58  ;;  %1917 = vst [vmem:[#allocation5 + $0xb30] sm:$0xff] %v1405_v61  ;;  %v1409_v11 = vmax.f32 %v897_v0, 0.0  ;;  %v394_v13 = vld [vmem:[#allocation2 + $0xb98] sm:$0xff]  ;;  %v395_v14 = vld [vmem:[#allocation2 + $0xba0] sm:$0xff]  ;;  %v1410_v16 = vmax.f32 %v898_v3, 0.0  ;;  %v902_v19 = vadd.f32 %v390_v1, %v390_v1  ;;  %v903_v22 = vadd.f32 %v391_v6, %v391_v6 }
  0xc7   :  { %v396_v15 = vld [vmem:[#allocation2 + $0xba8] sm:$0xff]  ;;  %1918 = vst [vmem:[#allocation5 + $0xb38] sm:$0xff] %v1406_v2  ;;  %v1411_v17 = vmax.f32 %v899_v4, 0.0  ;;  %v1412_v18 = vmax.f32 %v900_v5, 0.0  ;;  %v397_v20 = vld [vmem:[#allocation2 + $0xbb0] sm:$0xff]  ;;  %1919 = vst [vmem:[#allocation5 + $0xb40] sm:$0xff] %v1407_v9  ;;  %v904_v23 = vadd.f32 %v392_v7, %v392_v7  ;;  %v905_v24 = vadd.f32 %v393_v8, %v393_v8 }
  0xc8   :  { %1920 = vst [vmem:[#allocation5 + $0xb48] sm:$0xff] %v1408_v10  ;;  %1921 = vst [vmem:[#allocation5 + $0xb50] sm:$0xff] %v1409_v11  ;;  %v1413_v21 = vmax.f32 %v901_v12, 0.0  ;;  %v398_v25 = vld [vmem:[#allocation2 + $0xbb8] sm:$0xff]  ;;  %v1414_v26 = vmax.f32 %v902_v19, 0.0  ;;  %v906_v27 = vadd.f32 %v394_v13, %v394_v13  ;;  %v907_v28 = vadd.f32 %v395_v14, %v395_v14  ;;  %v399_v30 = vld [vmem:[#allocation2 + $0xbc0] sm:$0xff] }
  0xc9   :  { %1922 = vst [vmem:[#allocation5 + $0xb58] sm:$0xff] %v1410_v16  ;;  %1923 = vst [vmem:[#allocation5 + $0xb60] sm:$0xff] %v1411_v17  ;;  %v908_v29 = vadd.f32 %v396_v15, %v396_v15  ;;  %v400_v31 = vld [vmem:[#allocation2 + $0xbc8] sm:$0xff]  ;;  %v401_v32 = vld [vmem:[#allocation2 + $0xbd0] sm:$0xff]  ;;  %v1415_v33 = vmax.f32 %v903_v22, 0.0  ;;  %v1416_v34 = vmax.f32 %v904_v23, 0.0  ;;  %v909_v36 = vadd.f32 %v397_v20, %v397_v20 }
  0xca   :  { %1924 = vst [vmem:[#allocation5 + $0xb68] sm:$0xff] %v1412_v18  ;;  %1925 = vst [vmem:[#allocation5 + $0xb70] sm:$0xff] %v1413_v21  ;;  %v1417_v35 = vmax.f32 %v905_v24, 0.0  ;;  %v402_v37 = vld [vmem:[#allocation2 + $0xbd8] sm:$0xff]  ;;  %v403_v38 = vld [vmem:[#allocation2 + $0xbe0] sm:$0xff]  ;;  %v1418_v40 = vmax.f32 %v906_v27, 0.0  ;;  %v910_v43 = vadd.f32 %v398_v25, %v398_v25  ;;  %v911_v46 = vadd.f32 %v399_v30, %v399_v30 }
  0xcb   :  { %v404_v39 = vld [vmem:[#allocation2 + $0xbe8] sm:$0xff]  ;;  %1926 = vst [vmem:[#allocation5 + $0xb78] sm:$0xff] %v1414_v26  ;;  %v1419_v41 = vmax.f32 %v907_v28, 0.0  ;;  %v1420_v42 = vmax.f32 %v908_v29, 0.0  ;;  %v405_v44 = vld [vmem:[#allocation2 + $0xbf0] sm:$0xff]  ;;  %1927 = vst [vmem:[#allocation5 + $0xb80] sm:$0xff] %v1415_v33  ;;  %v912_v47 = vadd.f32 %v400_v31, %v400_v31  ;;  %v913_v48 = vadd.f32 %v401_v32, %v401_v32 }
  0xcc   :  { %1928 = vst [vmem:[#allocation5 + $0xb88] sm:$0xff] %v1416_v34  ;;  %1929 = vst [vmem:[#allocation5 + $0xb90] sm:$0xff] %v1417_v35  ;;  %v1421_v45 = vmax.f32 %v909_v36, 0.0  ;;  %v406_v49 = vld [vmem:[#allocation2 + $0xbf8] sm:$0xff]  ;;  %v1422_v50 = vmax.f32 %v910_v43, 0.0  ;;  %v914_v51 = vadd.f32 %v402_v37, %v402_v37  ;;  %v915_v52 = vadd.f32 %v403_v38, %v403_v38  ;;  %v407_v54 = vld [vmem:[#allocation2 + $0xc00] sm:$0xff] }
  0xcd   :  { %1930 = vst [vmem:[#allocation5 + $0xb98] sm:$0xff] %v1418_v40  ;;  %1931 = vst [vmem:[#allocation5 + $0xba0] sm:$0xff] %v1419_v41  ;;  %v916_v53 = vadd.f32 %v404_v39, %v404_v39  ;;  %v408_v55 = vld [vmem:[#allocation2 + $0xc08] sm:$0xff]  ;;  %v409_v56 = vld [vmem:[#allocation2 + $0xc10] sm:$0xff]  ;;  %v1423_v57 = vmax.f32 %v911_v46, 0.0  ;;  %v1424_v58 = vmax.f32 %v912_v47, 0.0  ;;  %v917_v60 = vadd.f32 %v405_v44, %v405_v44 }
  0xce   :  { %1932 = vst [vmem:[#allocation5 + $0xba8] sm:$0xff] %v1420_v42  ;;  %1933 = vst [vmem:[#allocation5 + $0xbb0] sm:$0xff] %v1421_v45  ;;  %v1425_v59 = vmax.f32 %v913_v48, 0.0  ;;  %v410_v61 = vld [vmem:[#allocation2 + $0xc18] sm:$0xff]  ;;  %v411_v62 = vld [vmem:[#allocation2 + $0xc20] sm:$0xff]  ;;  %v1426_v0 = vmax.f32 %v914_v51, 0.0  ;;  %v918_v3 = vadd.f32 %v406_v49, %v406_v49  ;;  %v919_v6 = vadd.f32 %v407_v54, %v407_v54 }
  0xcf   :  { %v412_v63 = vld [vmem:[#allocation2 + $0xc28] sm:$0xff]  ;;  %1934 = vst [vmem:[#allocation5 + $0xbb8] sm:$0xff] %v1422_v50  ;;  %v1427_v1 = vmax.f32 %v915_v52, 0.0  ;;  %v1428_v2 = vmax.f32 %v916_v53, 0.0  ;;  %v413_v4 = vld [vmem:[#allocation2 + $0xc30] sm:$0xff]  ;;  %1935 = vst [vmem:[#allocation5 + $0xbc0] sm:$0xff] %v1423_v57  ;;  %v920_v7 = vadd.f32 %v408_v55, %v408_v55  ;;  %v921_v8 = vadd.f32 %v409_v56, %v409_v56 }
  0xd0   :  { %1936 = vst [vmem:[#allocation5 + $0xbc8] sm:$0xff] %v1424_v58  ;;  %1937 = vst [vmem:[#allocation5 + $0xbd0] sm:$0xff] %v1425_v59  ;;  %v1429_v5 = vmax.f32 %v917_v60, 0.0  ;;  %v414_v9 = vld [vmem:[#allocation2 + $0xc38] sm:$0xff]  ;;  %v1430_v10 = vmax.f32 %v918_v3, 0.0  ;;  %v922_v11 = vadd.f32 %v410_v61, %v410_v61  ;;  %v923_v12 = vadd.f32 %v411_v62, %v411_v62  ;;  %v415_v14 = vld [vmem:[#allocation2 + $0xc40] sm:$0xff] }
  0xd1   :  { %1938 = vst [vmem:[#allocation5 + $0xbd8] sm:$0xff] %v1426_v0  ;;  %1939 = vst [vmem:[#allocation5 + $0xbe0] sm:$0xff] %v1427_v1  ;;  %v924_v13 = vadd.f32 %v412_v63, %v412_v63  ;;  %v416_v15 = vld [vmem:[#allocation2 + $0xc48] sm:$0xff]  ;;  %v417_v16 = vld [vmem:[#allocation2 + $0xc50] sm:$0xff]  ;;  %v1431_v17 = vmax.f32 %v919_v6, 0.0  ;;  %v1432_v18 = vmax.f32 %v920_v7, 0.0  ;;  %v925_v20 = vadd.f32 %v413_v4, %v413_v4 }
  0xd2   :  { %1940 = vst [vmem:[#allocation5 + $0xbe8] sm:$0xff] %v1428_v2  ;;  %1941 = vst [vmem:[#allocation5 + $0xbf0] sm:$0xff] %v1429_v5  ;;  %v1433_v19 = vmax.f32 %v921_v8, 0.0  ;;  %v418_v21 = vld [vmem:[#allocation2 + $0xc58] sm:$0xff]  ;;  %v419_v22 = vld [vmem:[#allocation2 + $0xc60] sm:$0xff]  ;;  %v1434_v24 = vmax.f32 %v922_v11, 0.0  ;;  %v926_v27 = vadd.f32 %v414_v9, %v414_v9  ;;  %v927_v30 = vadd.f32 %v415_v14, %v415_v14 }
  0xd3   :  { %v420_v23 = vld [vmem:[#allocation2 + $0xc68] sm:$0xff]  ;;  %1942 = vst [vmem:[#allocation5 + $0xbf8] sm:$0xff] %v1430_v10  ;;  %v1435_v25 = vmax.f32 %v923_v12, 0.0  ;;  %v1436_v26 = vmax.f32 %v924_v13, 0.0  ;;  %v421_v28 = vld [vmem:[#allocation2 + $0xc70] sm:$0xff]  ;;  %1943 = vst [vmem:[#allocation5 + $0xc00] sm:$0xff] %v1431_v17  ;;  %v928_v31 = vadd.f32 %v416_v15, %v416_v15  ;;  %v929_v32 = vadd.f32 %v417_v16, %v417_v16 }
  0xd4   :  { %1944 = vst [vmem:[#allocation5 + $0xc08] sm:$0xff] %v1432_v18  ;;  %1945 = vst [vmem:[#allocation5 + $0xc10] sm:$0xff] %v1433_v19  ;;  %v1437_v29 = vmax.f32 %v925_v20, 0.0  ;;  %v422_v33 = vld [vmem:[#allocation2 + $0xc78] sm:$0xff]  ;;  %v1438_v34 = vmax.f32 %v926_v27, 0.0  ;;  %v930_v35 = vadd.f32 %v418_v21, %v418_v21  ;;  %v931_v36 = vadd.f32 %v419_v22, %v419_v22  ;;  %v423_v38 = vld [vmem:[#allocation2 + $0xc80] sm:$0xff] }
  0xd5   :  { %1946 = vst [vmem:[#allocation5 + $0xc18] sm:$0xff] %v1434_v24  ;;  %1947 = vst [vmem:[#allocation5 + $0xc20] sm:$0xff] %v1435_v25  ;;  %v932_v37 = vadd.f32 %v420_v23, %v420_v23  ;;  %v424_v39 = vld [vmem:[#allocation2 + $0xc88] sm:$0xff]  ;;  %v425_v40 = vld [vmem:[#allocation2 + $0xc90] sm:$0xff]  ;;  %v1439_v41 = vmax.f32 %v927_v30, 0.0  ;;  %v1440_v42 = vmax.f32 %v928_v31, 0.0  ;;  %v933_v44 = vadd.f32 %v421_v28, %v421_v28 }
  0xd6   :  { %1948 = vst [vmem:[#allocation5 + $0xc28] sm:$0xff] %v1436_v26  ;;  %1949 = vst [vmem:[#allocation5 + $0xc30] sm:$0xff] %v1437_v29  ;;  %v1441_v43 = vmax.f32 %v929_v32, 0.0  ;;  %v426_v45 = vld [vmem:[#allocation2 + $0xc98] sm:$0xff]  ;;  %v427_v46 = vld [vmem:[#allocation2 + $0xca0] sm:$0xff]  ;;  %v1442_v48 = vmax.f32 %v930_v35, 0.0  ;;  %v934_v51 = vadd.f32 %v422_v33, %v422_v33  ;;  %v935_v54 = vadd.f32 %v423_v38, %v423_v38 }
  0xd7   :  { %v428_v47 = vld [vmem:[#allocation2 + $0xca8] sm:$0xff]  ;;  %1950 = vst [vmem:[#allocation5 + $0xc38] sm:$0xff] %v1438_v34  ;;  %v1443_v49 = vmax.f32 %v931_v36, 0.0  ;;  %v1444_v50 = vmax.f32 %v932_v37, 0.0  ;;  %v429_v52 = vld [vmem:[#allocation2 + $0xcb0] sm:$0xff]  ;;  %1951 = vst [vmem:[#allocation5 + $0xc40] sm:$0xff] %v1439_v41  ;;  %v936_v55 = vadd.f32 %v424_v39, %v424_v39  ;;  %v937_v56 = vadd.f32 %v425_v40, %v425_v40 }
  0xd8   :  { %1952 = vst [vmem:[#allocation5 + $0xc48] sm:$0xff] %v1440_v42  ;;  %1953 = vst [vmem:[#allocation5 + $0xc50] sm:$0xff] %v1441_v43  ;;  %v1445_v53 = vmax.f32 %v933_v44, 0.0  ;;  %v430_v57 = vld [vmem:[#allocation2 + $0xcb8] sm:$0xff]  ;;  %v1446_v58 = vmax.f32 %v934_v51, 0.0  ;;  %v938_v59 = vadd.f32 %v426_v45, %v426_v45  ;;  %v939_v60 = vadd.f32 %v427_v46, %v427_v46  ;;  %v431_v62 = vld [vmem:[#allocation2 + $0xcc0] sm:$0xff] }
  0xd9   :  { %1954 = vst [vmem:[#allocation5 + $0xc58] sm:$0xff] %v1442_v48  ;;  %1955 = vst [vmem:[#allocation5 + $0xc60] sm:$0xff] %v1443_v49  ;;  %v940_v61 = vadd.f32 %v428_v47, %v428_v47  ;;  %v432_v63 = vld [vmem:[#allocation2 + $0xcc8] sm:$0xff]  ;;  %v433_v0 = vld [vmem:[#allocation2 + $0xcd0] sm:$0xff]  ;;  %v1447_v1 = vmax.f32 %v935_v54, 0.0  ;;  %v1448_v2 = vmax.f32 %v936_v55, 0.0  ;;  %v941_v4 = vadd.f32 %v429_v52, %v429_v52 }
  0xda   :  { %1956 = vst [vmem:[#allocation5 + $0xc68] sm:$0xff] %v1444_v50  ;;  %1957 = vst [vmem:[#allocation5 + $0xc70] sm:$0xff] %v1445_v53  ;;  %v1449_v3 = vmax.f32 %v937_v56, 0.0  ;;  %v434_v5 = vld [vmem:[#allocation2 + $0xcd8] sm:$0xff]  ;;  %v435_v6 = vld [vmem:[#allocation2 + $0xce0] sm:$0xff]  ;;  %v1450_v8 = vmax.f32 %v938_v59, 0.0  ;;  %v942_v11 = vadd.f32 %v430_v57, %v430_v57  ;;  %v943_v14 = vadd.f32 %v431_v62, %v431_v62 }
  0xdb   :  { %v436_v7 = vld [vmem:[#allocation2 + $0xce8] sm:$0xff]  ;;  %1958 = vst [vmem:[#allocation5 + $0xc78] sm:$0xff] %v1446_v58  ;;  %v1451_v9 = vmax.f32 %v939_v60, 0.0  ;;  %v1452_v10 = vmax.f32 %v940_v61, 0.0  ;;  %v437_v12 = vld [vmem:[#allocation2 + $0xcf0] sm:$0xff]  ;;  %1959 = vst [vmem:[#allocation5 + $0xc80] sm:$0xff] %v1447_v1  ;;  %v944_v15 = vadd.f32 %v432_v63, %v432_v63  ;;  %v945_v16 = vadd.f32 %v433_v0, %v433_v0 }
  0xdc   :  { %1960 = vst [vmem:[#allocation5 + $0xc88] sm:$0xff] %v1448_v2  ;;  %1961 = vst [vmem:[#allocation5 + $0xc90] sm:$0xff] %v1449_v3  ;;  %v1453_v13 = vmax.f32 %v941_v4, 0.0  ;;  %v438_v17 = vld [vmem:[#allocation2 + $0xcf8] sm:$0xff]  ;;  %v1454_v18 = vmax.f32 %v942_v11, 0.0  ;;  %v946_v19 = vadd.f32 %v434_v5, %v434_v5  ;;  %v947_v20 = vadd.f32 %v435_v6, %v435_v6  ;;  %v439_v22 = vld [vmem:[#allocation2 + $0xd00] sm:$0xff] }
  0xdd   :  { %1962 = vst [vmem:[#allocation5 + $0xc98] sm:$0xff] %v1450_v8  ;;  %1963 = vst [vmem:[#allocation5 + $0xca0] sm:$0xff] %v1451_v9  ;;  %v948_v21 = vadd.f32 %v436_v7, %v436_v7  ;;  %v440_v23 = vld [vmem:[#allocation2 + $0xd08] sm:$0xff]  ;;  %v441_v24 = vld [vmem:[#allocation2 + $0xd10] sm:$0xff]  ;;  %v1455_v25 = vmax.f32 %v943_v14, 0.0  ;;  %v1456_v26 = vmax.f32 %v944_v15, 0.0  ;;  %v949_v28 = vadd.f32 %v437_v12, %v437_v12 }
  0xde   :  { %1964 = vst [vmem:[#allocation5 + $0xca8] sm:$0xff] %v1452_v10  ;;  %1965 = vst [vmem:[#allocation5 + $0xcb0] sm:$0xff] %v1453_v13  ;;  %v1457_v27 = vmax.f32 %v945_v16, 0.0  ;;  %v442_v29 = vld [vmem:[#allocation2 + $0xd18] sm:$0xff]  ;;  %v443_v30 = vld [vmem:[#allocation2 + $0xd20] sm:$0xff]  ;;  %v1458_v32 = vmax.f32 %v946_v19, 0.0  ;;  %v950_v35 = vadd.f32 %v438_v17, %v438_v17  ;;  %v951_v38 = vadd.f32 %v439_v22, %v439_v22 }
  0xdf   :  { %v444_v31 = vld [vmem:[#allocation2 + $0xd28] sm:$0xff]  ;;  %1966 = vst [vmem:[#allocation5 + $0xcb8] sm:$0xff] %v1454_v18  ;;  %v1459_v33 = vmax.f32 %v947_v20, 0.0  ;;  %v1460_v34 = vmax.f32 %v948_v21, 0.0  ;;  %v445_v36 = vld [vmem:[#allocation2 + $0xd30] sm:$0xff]  ;;  %1967 = vst [vmem:[#allocation5 + $0xcc0] sm:$0xff] %v1455_v25  ;;  %v952_v39 = vadd.f32 %v440_v23, %v440_v23  ;;  %v953_v40 = vadd.f32 %v441_v24, %v441_v24 }
  0xe0   :  { %1968 = vst [vmem:[#allocation5 + $0xcc8] sm:$0xff] %v1456_v26  ;;  %1969 = vst [vmem:[#allocation5 + $0xcd0] sm:$0xff] %v1457_v27  ;;  %v1461_v37 = vmax.f32 %v949_v28, 0.0  ;;  %v446_v41 = vld [vmem:[#allocation2 + $0xd38] sm:$0xff]  ;;  %v1462_v42 = vmax.f32 %v950_v35, 0.0  ;;  %v954_v43 = vadd.f32 %v442_v29, %v442_v29  ;;  %v955_v44 = vadd.f32 %v443_v30, %v443_v30  ;;  %v447_v46 = vld [vmem:[#allocation2 + $0xd40] sm:$0xff] }
  0xe1   :  { %1970 = vst [vmem:[#allocation5 + $0xcd8] sm:$0xff] %v1458_v32  ;;  %1971 = vst [vmem:[#allocation5 + $0xce0] sm:$0xff] %v1459_v33  ;;  %v956_v45 = vadd.f32 %v444_v31, %v444_v31  ;;  %v448_v47 = vld [vmem:[#allocation2 + $0xd48] sm:$0xff]  ;;  %v449_v48 = vld [vmem:[#allocation2 + $0xd50] sm:$0xff]  ;;  %v1463_v49 = vmax.f32 %v951_v38, 0.0  ;;  %v1464_v50 = vmax.f32 %v952_v39, 0.0  ;;  %v957_v52 = vadd.f32 %v445_v36, %v445_v36 }
  0xe2   :  { %1972 = vst [vmem:[#allocation5 + $0xce8] sm:$0xff] %v1460_v34  ;;  %1973 = vst [vmem:[#allocation5 + $0xcf0] sm:$0xff] %v1461_v37  ;;  %v1465_v51 = vmax.f32 %v953_v40, 0.0  ;;  %v450_v53 = vld [vmem:[#allocation2 + $0xd58] sm:$0xff]  ;;  %v451_v54 = vld [vmem:[#allocation2 + $0xd60] sm:$0xff]  ;;  %v1466_v56 = vmax.f32 %v954_v43, 0.0  ;;  %v958_v59 = vadd.f32 %v446_v41, %v446_v41  ;;  %v959_v62 = vadd.f32 %v447_v46, %v447_v46 }
  0xe3   :  { %v452_v55 = vld [vmem:[#allocation2 + $0xd68] sm:$0xff]  ;;  %1974 = vst [vmem:[#allocation5 + $0xcf8] sm:$0xff] %v1462_v42  ;;  %v1467_v57 = vmax.f32 %v955_v44, 0.0  ;;  %v1468_v58 = vmax.f32 %v956_v45, 0.0  ;;  %v453_v60 = vld [vmem:[#allocation2 + $0xd70] sm:$0xff]  ;;  %1975 = vst [vmem:[#allocation5 + $0xd00] sm:$0xff] %v1463_v49  ;;  %v960_v63 = vadd.f32 %v448_v47, %v448_v47  ;;  %v961_v0 = vadd.f32 %v449_v48, %v449_v48 }
  0xe4   :  { %1976 = vst [vmem:[#allocation5 + $0xd08] sm:$0xff] %v1464_v50  ;;  %1977 = vst [vmem:[#allocation5 + $0xd10] sm:$0xff] %v1465_v51  ;;  %v1469_v61 = vmax.f32 %v957_v52, 0.0  ;;  %v454_v1 = vld [vmem:[#allocation2 + $0xd78] sm:$0xff]  ;;  %v1470_v2 = vmax.f32 %v958_v59, 0.0  ;;  %v962_v3 = vadd.f32 %v450_v53, %v450_v53  ;;  %v963_v4 = vadd.f32 %v451_v54, %v451_v54  ;;  %v455_v6 = vld [vmem:[#allocation2 + $0xd80] sm:$0xff] }
  0xe5   :  { %1978 = vst [vmem:[#allocation5 + $0xd18] sm:$0xff] %v1466_v56  ;;  %1979 = vst [vmem:[#allocation5 + $0xd20] sm:$0xff] %v1467_v57  ;;  %v964_v5 = vadd.f32 %v452_v55, %v452_v55  ;;  %v456_v7 = vld [vmem:[#allocation2 + $0xd88] sm:$0xff]  ;;  %v457_v8 = vld [vmem:[#allocation2 + $0xd90] sm:$0xff]  ;;  %v1471_v9 = vmax.f32 %v959_v62, 0.0  ;;  %v1472_v10 = vmax.f32 %v960_v63, 0.0  ;;  %v965_v12 = vadd.f32 %v453_v60, %v453_v60 }
  0xe6   :  { %1980 = vst [vmem:[#allocation5 + $0xd28] sm:$0xff] %v1468_v58  ;;  %1981 = vst [vmem:[#allocation5 + $0xd30] sm:$0xff] %v1469_v61  ;;  %v1473_v11 = vmax.f32 %v961_v0, 0.0  ;;  %v458_v13 = vld [vmem:[#allocation2 + $0xd98] sm:$0xff]  ;;  %v459_v14 = vld [vmem:[#allocation2 + $0xda0] sm:$0xff]  ;;  %v1474_v16 = vmax.f32 %v962_v3, 0.0  ;;  %v966_v19 = vadd.f32 %v454_v1, %v454_v1  ;;  %v967_v22 = vadd.f32 %v455_v6, %v455_v6 }
  0xe7   :  { %v460_v15 = vld [vmem:[#allocation2 + $0xda8] sm:$0xff]  ;;  %1982 = vst [vmem:[#allocation5 + $0xd38] sm:$0xff] %v1470_v2  ;;  %v1475_v17 = vmax.f32 %v963_v4, 0.0  ;;  %v1476_v18 = vmax.f32 %v964_v5, 0.0  ;;  %v461_v20 = vld [vmem:[#allocation2 + $0xdb0] sm:$0xff]  ;;  %1983 = vst [vmem:[#allocation5 + $0xd40] sm:$0xff] %v1471_v9  ;;  %v968_v23 = vadd.f32 %v456_v7, %v456_v7  ;;  %v969_v24 = vadd.f32 %v457_v8, %v457_v8 }
  0xe8   :  { %1984 = vst [vmem:[#allocation5 + $0xd48] sm:$0xff] %v1472_v10  ;;  %1985 = vst [vmem:[#allocation5 + $0xd50] sm:$0xff] %v1473_v11  ;;  %v1477_v21 = vmax.f32 %v965_v12, 0.0  ;;  %v462_v25 = vld [vmem:[#allocation2 + $0xdb8] sm:$0xff]  ;;  %v1478_v26 = vmax.f32 %v966_v19, 0.0  ;;  %v970_v27 = vadd.f32 %v458_v13, %v458_v13  ;;  %v971_v28 = vadd.f32 %v459_v14, %v459_v14  ;;  %v463_v30 = vld [vmem:[#allocation2 + $0xdc0] sm:$0xff] }
  0xe9   :  { %1986 = vst [vmem:[#allocation5 + $0xd58] sm:$0xff] %v1474_v16  ;;  %1987 = vst [vmem:[#allocation5 + $0xd60] sm:$0xff] %v1475_v17  ;;  %v972_v29 = vadd.f32 %v460_v15, %v460_v15  ;;  %v464_v31 = vld [vmem:[#allocation2 + $0xdc8] sm:$0xff]  ;;  %v465_v32 = vld [vmem:[#allocation2 + $0xdd0] sm:$0xff]  ;;  %v1479_v33 = vmax.f32 %v967_v22, 0.0  ;;  %v1480_v34 = vmax.f32 %v968_v23, 0.0  ;;  %v973_v36 = vadd.f32 %v461_v20, %v461_v20 }
  0xea   :  { %1988 = vst [vmem:[#allocation5 + $0xd68] sm:$0xff] %v1476_v18  ;;  %1989 = vst [vmem:[#allocation5 + $0xd70] sm:$0xff] %v1477_v21  ;;  %v1481_v35 = vmax.f32 %v969_v24, 0.0  ;;  %v466_v37 = vld [vmem:[#allocation2 + $0xdd8] sm:$0xff]  ;;  %v467_v38 = vld [vmem:[#allocation2 + $0xde0] sm:$0xff]  ;;  %v1482_v40 = vmax.f32 %v970_v27, 0.0  ;;  %v974_v43 = vadd.f32 %v462_v25, %v462_v25  ;;  %v975_v46 = vadd.f32 %v463_v30, %v463_v30 }
  0xeb   :  { %v468_v39 = vld [vmem:[#allocation2 + $0xde8] sm:$0xff]  ;;  %1990 = vst [vmem:[#allocation5 + $0xd78] sm:$0xff] %v1478_v26  ;;  %v1483_v41 = vmax.f32 %v971_v28, 0.0  ;;  %v1484_v42 = vmax.f32 %v972_v29, 0.0  ;;  %v469_v44 = vld [vmem:[#allocation2 + $0xdf0] sm:$0xff]  ;;  %1991 = vst [vmem:[#allocation5 + $0xd80] sm:$0xff] %v1479_v33  ;;  %v976_v47 = vadd.f32 %v464_v31, %v464_v31  ;;  %v977_v48 = vadd.f32 %v465_v32, %v465_v32 }
  0xec   :  { %1992 = vst [vmem:[#allocation5 + $0xd88] sm:$0xff] %v1480_v34  ;;  %1993 = vst [vmem:[#allocation5 + $0xd90] sm:$0xff] %v1481_v35  ;;  %v1485_v45 = vmax.f32 %v973_v36, 0.0  ;;  %v470_v49 = vld [vmem:[#allocation2 + $0xdf8] sm:$0xff]  ;;  %v1486_v50 = vmax.f32 %v974_v43, 0.0  ;;  %v978_v51 = vadd.f32 %v466_v37, %v466_v37  ;;  %v979_v52 = vadd.f32 %v467_v38, %v467_v38  ;;  %v471_v54 = vld [vmem:[#allocation2 + $0xe00] sm:$0xff] }
  0xed   :  { %1994 = vst [vmem:[#allocation5 + $0xd98] sm:$0xff] %v1482_v40  ;;  %1995 = vst [vmem:[#allocation5 + $0xda0] sm:$0xff] %v1483_v41  ;;  %v980_v53 = vadd.f32 %v468_v39, %v468_v39  ;;  %v472_v55 = vld [vmem:[#allocation2 + $0xe08] sm:$0xff]  ;;  %v473_v56 = vld [vmem:[#allocation2 + $0xe10] sm:$0xff]  ;;  %v1487_v57 = vmax.f32 %v975_v46, 0.0  ;;  %v1488_v58 = vmax.f32 %v976_v47, 0.0  ;;  %v981_v60 = vadd.f32 %v469_v44, %v469_v44 }
  0xee   :  { %1996 = vst [vmem:[#allocation5 + $0xda8] sm:$0xff] %v1484_v42  ;;  %1997 = vst [vmem:[#allocation5 + $0xdb0] sm:$0xff] %v1485_v45  ;;  %v1489_v59 = vmax.f32 %v977_v48, 0.0  ;;  %v474_v61 = vld [vmem:[#allocation2 + $0xe18] sm:$0xff]  ;;  %v475_v62 = vld [vmem:[#allocation2 + $0xe20] sm:$0xff]  ;;  %v1490_v0 = vmax.f32 %v978_v51, 0.0  ;;  %v982_v3 = vadd.f32 %v470_v49, %v470_v49  ;;  %v983_v6 = vadd.f32 %v471_v54, %v471_v54 }
  0xef   :  { %v476_v63 = vld [vmem:[#allocation2 + $0xe28] sm:$0xff]  ;;  %1998 = vst [vmem:[#allocation5 + $0xdb8] sm:$0xff] %v1486_v50  ;;  %v1491_v1 = vmax.f32 %v979_v52, 0.0  ;;  %v1492_v2 = vmax.f32 %v980_v53, 0.0  ;;  %v477_v4 = vld [vmem:[#allocation2 + $0xe30] sm:$0xff]  ;;  %1999 = vst [vmem:[#allocation5 + $0xdc0] sm:$0xff] %v1487_v57  ;;  %v984_v7 = vadd.f32 %v472_v55, %v472_v55  ;;  %v985_v8 = vadd.f32 %v473_v56, %v473_v56 }
  0xf0   :  { %2000 = vst [vmem:[#allocation5 + $0xdc8] sm:$0xff] %v1488_v58  ;;  %2001 = vst [vmem:[#allocation5 + $0xdd0] sm:$0xff] %v1489_v59  ;;  %v1493_v5 = vmax.f32 %v981_v60, 0.0  ;;  %v478_v9 = vld [vmem:[#allocation2 + $0xe38] sm:$0xff]  ;;  %v1494_v10 = vmax.f32 %v982_v3, 0.0  ;;  %v986_v11 = vadd.f32 %v474_v61, %v474_v61  ;;  %v987_v12 = vadd.f32 %v475_v62, %v475_v62  ;;  %v479_v14 = vld [vmem:[#allocation2 + $0xe40] sm:$0xff] }
  0xf1   :  { %2002 = vst [vmem:[#allocation5 + $0xdd8] sm:$0xff] %v1490_v0  ;;  %2003 = vst [vmem:[#allocation5 + $0xde0] sm:$0xff] %v1491_v1  ;;  %v988_v13 = vadd.f32 %v476_v63, %v476_v63  ;;  %v480_v15 = vld [vmem:[#allocation2 + $0xe48] sm:$0xff]  ;;  %v481_v16 = vld [vmem:[#allocation2 + $0xe50] sm:$0xff]  ;;  %v1495_v17 = vmax.f32 %v983_v6, 0.0  ;;  %v1496_v18 = vmax.f32 %v984_v7, 0.0  ;;  %v989_v20 = vadd.f32 %v477_v4, %v477_v4 }
  0xf2   :  { %2004 = vst [vmem:[#allocation5 + $0xde8] sm:$0xff] %v1492_v2  ;;  %2005 = vst [vmem:[#allocation5 + $0xdf0] sm:$0xff] %v1493_v5  ;;  %v1497_v19 = vmax.f32 %v985_v8, 0.0  ;;  %v482_v21 = vld [vmem:[#allocation2 + $0xe58] sm:$0xff]  ;;  %v483_v22 = vld [vmem:[#allocation2 + $0xe60] sm:$0xff]  ;;  %v1498_v24 = vmax.f32 %v986_v11, 0.0  ;;  %v990_v27 = vadd.f32 %v478_v9, %v478_v9  ;;  %v991_v30 = vadd.f32 %v479_v14, %v479_v14 }
  0xf3   :  { %v484_v23 = vld [vmem:[#allocation2 + $0xe68] sm:$0xff]  ;;  %2006 = vst [vmem:[#allocation5 + $0xdf8] sm:$0xff] %v1494_v10  ;;  %v1499_v25 = vmax.f32 %v987_v12, 0.0  ;;  %v1500_v26 = vmax.f32 %v988_v13, 0.0  ;;  %v485_v28 = vld [vmem:[#allocation2 + $0xe70] sm:$0xff]  ;;  %2007 = vst [vmem:[#allocation5 + $0xe00] sm:$0xff] %v1495_v17  ;;  %v992_v31 = vadd.f32 %v480_v15, %v480_v15  ;;  %v993_v32 = vadd.f32 %v481_v16, %v481_v16 }
  0xf4   :  { %2008 = vst [vmem:[#allocation5 + $0xe08] sm:$0xff] %v1496_v18  ;;  %2009 = vst [vmem:[#allocation5 + $0xe10] sm:$0xff] %v1497_v19  ;;  %v1501_v29 = vmax.f32 %v989_v20, 0.0  ;;  %v486_v33 = vld [vmem:[#allocation2 + $0xe78] sm:$0xff]  ;;  %v1502_v34 = vmax.f32 %v990_v27, 0.0  ;;  %v994_v35 = vadd.f32 %v482_v21, %v482_v21  ;;  %v995_v36 = vadd.f32 %v483_v22, %v483_v22  ;;  %v487_v38 = vld [vmem:[#allocation2 + $0xe80] sm:$0xff] }
  0xf5   :  { %2010 = vst [vmem:[#allocation5 + $0xe18] sm:$0xff] %v1498_v24  ;;  %2011 = vst [vmem:[#allocation5 + $0xe20] sm:$0xff] %v1499_v25  ;;  %v996_v37 = vadd.f32 %v484_v23, %v484_v23  ;;  %v488_v39 = vld [vmem:[#allocation2 + $0xe88] sm:$0xff]  ;;  %v489_v40 = vld [vmem:[#allocation2 + $0xe90] sm:$0xff]  ;;  %v1503_v41 = vmax.f32 %v991_v30, 0.0  ;;  %v1504_v42 = vmax.f32 %v992_v31, 0.0  ;;  %v997_v44 = vadd.f32 %v485_v28, %v485_v28 }
  0xf6   :  { %2012 = vst [vmem:[#allocation5 + $0xe28] sm:$0xff] %v1500_v26  ;;  %2013 = vst [vmem:[#allocation5 + $0xe30] sm:$0xff] %v1501_v29  ;;  %v1505_v43 = vmax.f32 %v993_v32, 0.0  ;;  %v490_v45 = vld [vmem:[#allocation2 + $0xe98] sm:$0xff]  ;;  %v491_v46 = vld [vmem:[#allocation2 + $0xea0] sm:$0xff]  ;;  %v1506_v48 = vmax.f32 %v994_v35, 0.0  ;;  %v998_v51 = vadd.f32 %v486_v33, %v486_v33  ;;  %v999_v54 = vadd.f32 %v487_v38, %v487_v38 }
  0xf7   :  { %v492_v47 = vld [vmem:[#allocation2 + $0xea8] sm:$0xff]  ;;  %2014 = vst [vmem:[#allocation5 + $0xe38] sm:$0xff] %v1502_v34  ;;  %v1507_v49 = vmax.f32 %v995_v36, 0.0  ;;  %v1508_v50 = vmax.f32 %v996_v37, 0.0  ;;  %v493_v52 = vld [vmem:[#allocation2 + $0xeb0] sm:$0xff]  ;;  %2015 = vst [vmem:[#allocation5 + $0xe40] sm:$0xff] %v1503_v41  ;;  %v1000_v55 = vadd.f32 %v488_v39, %v488_v39  ;;  %v1001_v56 = vadd.f32 %v489_v40, %v489_v40 }
  0xf8   :  { %2016 = vst [vmem:[#allocation5 + $0xe48] sm:$0xff] %v1504_v42  ;;  %2017 = vst [vmem:[#allocation5 + $0xe50] sm:$0xff] %v1505_v43  ;;  %v1509_v53 = vmax.f32 %v997_v44, 0.0  ;;  %v494_v57 = vld [vmem:[#allocation2 + $0xeb8] sm:$0xff]  ;;  %v1510_v58 = vmax.f32 %v998_v51, 0.0  ;;  %v1002_v59 = vadd.f32 %v490_v45, %v490_v45  ;;  %v1003_v60 = vadd.f32 %v491_v46, %v491_v46  ;;  %v495_v62 = vld [vmem:[#allocation2 + $0xec0] sm:$0xff] }
  0xf9   :  { %2018 = vst [vmem:[#allocation5 + $0xe58] sm:$0xff] %v1506_v48  ;;  %2019 = vst [vmem:[#allocation5 + $0xe60] sm:$0xff] %v1507_v49  ;;  %v1004_v61 = vadd.f32 %v492_v47, %v492_v47  ;;  %v496_v63 = vld [vmem:[#allocation2 + $0xec8] sm:$0xff]  ;;  %v497_v0 = vld [vmem:[#allocation2 + $0xed0] sm:$0xff]  ;;  %v1511_v1 = vmax.f32 %v999_v54, 0.0  ;;  %v1512_v2 = vmax.f32 %v1000_v55, 0.0  ;;  %v1005_v4 = vadd.f32 %v493_v52, %v493_v52 }
  0xfa   :  { %2020 = vst [vmem:[#allocation5 + $0xe68] sm:$0xff] %v1508_v50  ;;  %2021 = vst [vmem:[#allocation5 + $0xe70] sm:$0xff] %v1509_v53  ;;  %v1513_v3 = vmax.f32 %v1001_v56, 0.0  ;;  %v498_v5 = vld [vmem:[#allocation2 + $0xed8] sm:$0xff]  ;;  %v499_v6 = vld [vmem:[#allocation2 + $0xee0] sm:$0xff]  ;;  %v1514_v8 = vmax.f32 %v1002_v59, 0.0  ;;  %v1006_v11 = vadd.f32 %v494_v57, %v494_v57  ;;  %v1007_v14 = vadd.f32 %v495_v62, %v495_v62 }
  0xfb   :  { %v500_v7 = vld [vmem:[#allocation2 + $0xee8] sm:$0xff]  ;;  %2022 = vst [vmem:[#allocation5 + $0xe78] sm:$0xff] %v1510_v58  ;;  %v1515_v9 = vmax.f32 %v1003_v60, 0.0  ;;  %v1516_v10 = vmax.f32 %v1004_v61, 0.0  ;;  %v501_v12 = vld [vmem:[#allocation2 + $0xef0] sm:$0xff]  ;;  %2023 = vst [vmem:[#allocation5 + $0xe80] sm:$0xff] %v1511_v1  ;;  %v1008_v15 = vadd.f32 %v496_v63, %v496_v63  ;;  %v1009_v16 = vadd.f32 %v497_v0, %v497_v0 }
  0xfc   :  { %2024 = vst [vmem:[#allocation5 + $0xe88] sm:$0xff] %v1512_v2  ;;  %2025 = vst [vmem:[#allocation5 + $0xe90] sm:$0xff] %v1513_v3  ;;  %v1517_v13 = vmax.f32 %v1005_v4, 0.0  ;;  %v502_v17 = vld [vmem:[#allocation2 + $0xef8] sm:$0xff]  ;;  %v1518_v18 = vmax.f32 %v1006_v11, 0.0  ;;  %v1010_v19 = vadd.f32 %v498_v5, %v498_v5  ;;  %v1011_v20 = vadd.f32 %v499_v6, %v499_v6  ;;  %v503_v22 = vld [vmem:[#allocation2 + $0xf00] sm:$0xff] }
  0xfd   :  { %2026 = vst [vmem:[#allocation5 + $0xe98] sm:$0xff] %v1514_v8  ;;  %2027 = vst [vmem:[#allocation5 + $0xea0] sm:$0xff] %v1515_v9  ;;  %v1012_v21 = vadd.f32 %v500_v7, %v500_v7  ;;  %v504_v23 = vld [vmem:[#allocation2 + $0xf08] sm:$0xff]  ;;  %v505_v24 = vld [vmem:[#allocation2 + $0xf10] sm:$0xff]  ;;  %v1519_v25 = vmax.f32 %v1007_v14, 0.0  ;;  %v1520_v26 = vmax.f32 %v1008_v15, 0.0  ;;  %v1013_v28 = vadd.f32 %v501_v12, %v501_v12 }
  0xfe   :  { %2028 = vst [vmem:[#allocation5 + $0xea8] sm:$0xff] %v1516_v10  ;;  %2029 = vst [vmem:[#allocation5 + $0xeb0] sm:$0xff] %v1517_v13  ;;  %v1521_v27 = vmax.f32 %v1009_v16, 0.0  ;;  %v506_v29 = vld [vmem:[#allocation2 + $0xf18] sm:$0xff]  ;;  %v507_v30 = vld [vmem:[#allocation2 + $0xf20] sm:$0xff]  ;;  %v1522_v32 = vmax.f32 %v1010_v19, 0.0  ;;  %v1014_v35 = vadd.f32 %v502_v17, %v502_v17  ;;  %v1015_v38 = vadd.f32 %v503_v22, %v503_v22 }
  0xff   :  { %v508_v31 = vld [vmem:[#allocation2 + $0xf28] sm:$0xff]  ;;  %2030 = vst [vmem:[#allocation5 + $0xeb8] sm:$0xff] %v1518_v18  ;;  %v1523_v33 = vmax.f32 %v1011_v20, 0.0  ;;  %v1524_v34 = vmax.f32 %v1012_v21, 0.0  ;;  %v509_v36 = vld [vmem:[#allocation2 + $0xf30] sm:$0xff]  ;;  %2031 = vst [vmem:[#allocation5 + $0xec0] sm:$0xff] %v1519_v25  ;;  %v1016_v39 = vadd.f32 %v504_v23, %v504_v23  ;;  %v1017_v40 = vadd.f32 %v505_v24, %v505_v24 }
 0x100   :  { %2032 = vst [vmem:[#allocation5 + $0xec8] sm:$0xff] %v1520_v26  ;;  %2033 = vst [vmem:[#allocation5 + $0xed0] sm:$0xff] %v1521_v27  ;;  %v1525_v37 = vmax.f32 %v1013_v28, 0.0  ;;  %v510_v41 = vld [vmem:[#allocation2 + $0xf38] sm:$0xff]  ;;  %v1526_v42 = vmax.f32 %v1014_v35, 0.0  ;;  %v1018_v43 = vadd.f32 %v506_v29, %v506_v29  ;;  %v1019_v44 = vadd.f32 %v507_v30, %v507_v30  ;;  %v511_v46 = vld [vmem:[#allocation2 + $0xf40] sm:$0xff] }
 0x101   :  { %2034 = vst [vmem:[#allocation5 + $0xed8] sm:$0xff] %v1522_v32  ;;  %2035 = vst [vmem:[#allocation5 + $0xee0] sm:$0xff] %v1523_v33  ;;  %v1020_v45 = vadd.f32 %v508_v31, %v508_v31  ;;  %v512_v47 = vld [vmem:[#allocation2 + $0xf48] sm:$0xff]  ;;  %v513_v48 = vld [vmem:[#allocation2 + $0xf50] sm:$0xff]  ;;  %v1527_v49 = vmax.f32 %v1015_v38, 0.0  ;;  %v1528_v50 = vmax.f32 %v1016_v39, 0.0  ;;  %v1021_v52 = vadd.f32 %v509_v36, %v509_v36 }
 0x102   :  { %2036 = vst [vmem:[#allocation5 + $0xee8] sm:$0xff] %v1524_v34  ;;  %2037 = vst [vmem:[#allocation5 + $0xef0] sm:$0xff] %v1525_v37  ;;  %v1529_v51 = vmax.f32 %v1017_v40, 0.0  ;;  %v514_v53 = vld [vmem:[#allocation2 + $0xf58] sm:$0xff]  ;;  %v515_v54 = vld [vmem:[#allocation2 + $0xf60] sm:$0xff]  ;;  %v1530_v56 = vmax.f32 %v1018_v43, 0.0  ;;  %v1022_v59 = vadd.f32 %v510_v41, %v510_v41  ;;  %v1023_v62 = vadd.f32 %v511_v46, %v511_v46 }
 0x103   :  { %v516_v55 = vld [vmem:[#allocation2 + $0xf68] sm:$0xff]  ;;  %2038 = vst [vmem:[#allocation5 + $0xef8] sm:$0xff] %v1526_v42  ;;  %v1531_v57 = vmax.f32 %v1019_v44, 0.0  ;;  %v1532_v58 = vmax.f32 %v1020_v45, 0.0  ;;  %v517_v60 = vld [vmem:[#allocation2 + $0xf70] sm:$0xff]  ;;  %2039 = vst [vmem:[#allocation5 + $0xf00] sm:$0xff] %v1527_v49  ;;  %v1024_v63 = vadd.f32 %v512_v47, %v512_v47  ;;  %v1025_v0 = vadd.f32 %v513_v48, %v513_v48 }
 0x104   :  { %2040 = vst [vmem:[#allocation5 + $0xf08] sm:$0xff] %v1528_v50  ;;  %2041 = vst [vmem:[#allocation5 + $0xf10] sm:$0xff] %v1529_v51  ;;  %v1533_v61 = vmax.f32 %v1021_v52, 0.0  ;;  %v518_v1 = vld [vmem:[#allocation2 + $0xf78] sm:$0xff]  ;;  %v1534_v2 = vmax.f32 %v1022_v59, 0.0  ;;  %v1026_v3 = vadd.f32 %v514_v53, %v514_v53  ;;  %v1027_v4 = vadd.f32 %v515_v54, %v515_v54  ;;  %v519_v6 = vld [vmem:[#allocation2 + $0xf80] sm:$0xff] }
 0x105   :  { %2042 = vst [vmem:[#allocation5 + $0xf18] sm:$0xff] %v1530_v56  ;;  %2043 = vst [vmem:[#allocation5 + $0xf20] sm:$0xff] %v1531_v57  ;;  %v1028_v5 = vadd.f32 %v516_v55, %v516_v55  ;;  %v520_v7 = vld [vmem:[#allocation2 + $0xf88] sm:$0xff]  ;;  %v521_v8 = vld [vmem:[#allocation2 + $0xf90] sm:$0xff]  ;;  %v1535_v9 = vmax.f32 %v1023_v62, 0.0  ;;  %v1536_v10 = vmax.f32 %v1024_v63, 0.0  ;;  %v1029_v12 = vadd.f32 %v517_v60, %v517_v60 }
 0x106   :  { %2044 = vst [vmem:[#allocation5 + $0xf28] sm:$0xff] %v1532_v58  ;;  %2045 = vst [vmem:[#allocation5 + $0xf30] sm:$0xff] %v1533_v61  ;;  %v1537_v11 = vmax.f32 %v1025_v0, 0.0  ;;  %v522_v13 = vld [vmem:[#allocation2 + $0xf98] sm:$0xff]  ;;  %v523_v14 = vld [vmem:[#allocation2 + $0xfa0] sm:$0xff]  ;;  %v1538_v16 = vmax.f32 %v1026_v3, 0.0  ;;  %v1030_v19 = vadd.f32 %v518_v1, %v518_v1  ;;  %v1031_v22 = vadd.f32 %v519_v6, %v519_v6 }
 0x107   :  { %v524_v15 = vld [vmem:[#allocation2 + $0xfa8] sm:$0xff]  ;;  %2046 = vst [vmem:[#allocation5 + $0xf38] sm:$0xff] %v1534_v2  ;;  %v1539_v17 = vmax.f32 %v1027_v4, 0.0  ;;  %v1540_v18 = vmax.f32 %v1028_v5, 0.0  ;;  %v525_v20 = vld [vmem:[#allocation2 + $0xfb0] sm:$0xff]  ;;  %2047 = vst [vmem:[#allocation5 + $0xf40] sm:$0xff] %v1535_v9  ;;  %v1032_v23 = vadd.f32 %v520_v7, %v520_v7  ;;  %v1033_v24 = vadd.f32 %v521_v8, %v521_v8 }
 0x108   :  { %2048 = vst [vmem:[#allocation5 + $0xf48] sm:$0xff] %v1536_v10  ;;  %2049 = vst [vmem:[#allocation5 + $0xf50] sm:$0xff] %v1537_v11  ;;  %v1541_v21 = vmax.f32 %v1029_v12, 0.0  ;;  %v526_v25 = vld [vmem:[#allocation2 + $0xfb8] sm:$0xff]  ;;  %v1542_v26 = vmax.f32 %v1030_v19, 0.0  ;;  %v1034_v27 = vadd.f32 %v522_v13, %v522_v13  ;;  %v1035_v28 = vadd.f32 %v523_v14, %v523_v14  ;;  %v527_v30 = vld [vmem:[#allocation2 + $0xfc0] sm:$0xff] }
 0x109   :  { %2050 = vst [vmem:[#allocation5 + $0xf58] sm:$0xff] %v1538_v16  ;;  %2051 = vst [vmem:[#allocation5 + $0xf60] sm:$0xff] %v1539_v17  ;;  %v1036_v29 = vadd.f32 %v524_v15, %v524_v15  ;;  %v528_v31 = vld [vmem:[#allocation2 + $0xfc8] sm:$0xff]  ;;  %v529_v32 = vld [vmem:[#allocation2 + $0xfd0] sm:$0xff]  ;;  %v1543_v33 = vmax.f32 %v1031_v22, 0.0  ;;  %v1544_v34 = vmax.f32 %v1032_v23, 0.0  ;;  %v1037_v36 = vadd.f32 %v525_v20, %v525_v20 }
 0x10a   :  { %2052 = vst [vmem:[#allocation5 + $0xf68] sm:$0xff] %v1540_v18  ;;  %2053 = vst [vmem:[#allocation5 + $0xf70] sm:$0xff] %v1541_v21  ;;  %v1545_v35 = vmax.f32 %v1033_v24, 0.0  ;;  %v530_v37 = vld [vmem:[#allocation2 + $0xfd8] sm:$0xff]  ;;  %v531_v38 = vld [vmem:[#allocation2 + $0xfe0] sm:$0xff]  ;;  %v1546_v40 = vmax.f32 %v1034_v27, 0.0  ;;  %v1038_v43 = vadd.f32 %v526_v25, %v526_v25  ;;  %v1039_v46 = vadd.f32 %v527_v30, %v527_v30 }
 0x10b   :  { %v532_v39 = vld [vmem:[#allocation2 + $0xfe8] sm:$0xff]  ;;  %2054 = vst [vmem:[#allocation5 + $0xf78] sm:$0xff] %v1542_v26  ;;  %v1547_v41 = vmax.f32 %v1035_v28, 0.0  ;;  %v1548_v42 = vmax.f32 %v1036_v29, 0.0  ;;  %v533_v44 = vld [vmem:[#allocation2 + $0xff0] sm:$0xff]  ;;  %2055 = vst [vmem:[#allocation5 + $0xf80] sm:$0xff] %v1543_v33  ;;  %v1040_v47 = vadd.f32 %v528_v31, %v528_v31  ;;  %v1041_v48 = vadd.f32 %v529_v32, %v529_v32 }
 0x10c   :  { %2056 = vst [vmem:[#allocation5 + $0xf88] sm:$0xff] %v1544_v34  ;;  %2057 = vst [vmem:[#allocation5 + $0xf90] sm:$0xff] %v1545_v35  ;;  %v1549_v45 = vmax.f32 %v1037_v36, 0.0  ;;  %v534_v49 = vld [vmem:[#allocation2 + $0xff8] sm:$0xff]  ;;  %v1550_v50 = vmax.f32 %v1038_v43, 0.0  ;;  %v1042_v51 = vadd.f32 %v530_v37, %v530_v37  ;;  %v1043_v52 = vadd.f32 %v531_v38, %v531_v38 }
 0x10d   :  { %2058 = vst [vmem:[#allocation5 + $0xf98] sm:$0xff] %v1546_v40  ;;  %2059 = vst [vmem:[#allocation5 + $0xfa0] sm:$0xff] %v1547_v41  ;;  %v1044_v53 = vadd.f32 %v532_v39, %v532_v39  ;;  %v1551_v54 = vmax.f32 %v1039_v46, 0.0  ;;  %v1552_v55 = vmax.f32 %v1040_v47, 0.0  ;;  %v1553_v56 = vmax.f32 %v1041_v48, 0.0 }
 0x10e   :  { %2060 = vst [vmem:[#allocation5 + $0xfa8] sm:$0xff] %v1548_v42  ;;  %2061 = vst [vmem:[#allocation5 + $0xfb0] sm:$0xff] %v1549_v45  ;;  %v1045_v57 = vadd.f32 %v533_v44, %v533_v44  ;;  %v1554_v58 = vmax.f32 %v1042_v51, 0.0  ;;  %v1555_v59 = vmax.f32 %v1043_v52, 0.0  ;;  %v1046_v61 = vadd.f32 %v534_v49, %v534_v49 }
 0x10f   :  { %2062 = vst [vmem:[#allocation5 + $0xfb8] sm:$0xff] %v1550_v50  ;;  %v1556_v60 = vmax.f32 %v1044_v53, 0.0  ;;  %2063 = vst [vmem:[#allocation5 + $0xfc0] sm:$0xff] %v1551_v54 }
 0x110   :  { %2064 = vst [vmem:[#allocation5 + $0xfc8] sm:$0xff] %v1552_v55  ;;  %2065 = vst [vmem:[#allocation5 + $0xfd0] sm:$0xff] %v1553_v56  ;;  %v1557_v62 = vmax.f32 %v1045_v57, 0.0  ;;  %v1558_v63 = vmax.f32 %v1046_v61, 0.0 }
 0x111   :  { %2066 = vst [vmem:[#allocation5 + $0xfd8] sm:$0xff] %v1554_v58  ;;  %2067 = vst [vmem:[#allocation5 + $0xfe0] sm:$0xff] %v1555_v59 }
 0x112   :  { %2068 = vst [vmem:[#allocation5 + $0xfe8] sm:$0xff] %v1556_v60  ;;  %2069 = vst [vmem:[#allocation5 + $0xff0] sm:$0xff] %v1557_v62 }
 0x113   :  { %2070 = vst [vmem:[#allocation5 + $0xff8] sm:$0xff] %v1558_v63 }
 0x114   :  { %2123 = shalt.err (!%p2120_p9)
}
 0x115   :  { %2082 = dma.vmem_to_hbm [thread:$0]  %s2077_s13, 65536, %s2163_s1, [#allocation4], %s2137_s9, %s2137_s9, %s2138_s10  }
 0x116   :  { %2134 = dma.done.wait [#allocation4], 65536  }
 0x117   :  { %2135 = vsyncadd [#allocation4], 4294901760 }
 0x118   :  { %2086 = vsyncpa [#allocation3], 1 }
 0x119   :  { %2087 = vsyncpa [#allocation4], 1 }

</bundles_post_ra>
